<compile_context>
chip_gen: v5e
topology: v5e:2x2
jax: 0.10.0
libtpu: 0.0.40
codegen_flags: <defaults>
</compile_context>

<pallas_src>
import jax
import jax.numpy as jnp
from jax.experimental import pallas as pl
from jax.experimental.pallas import tpu as pltpu

OUT_FEATURES = 60                 # final Linear out_features ("BATCH_SIZE" in the PyTorch code)
L_IN = 2167                       # input length so that 32 * conv2_len == 7680 (fc1 in_features)
L1 = (L_IN - 4) // 3 + 1          # 722 : conv1 output length
L2 = (L1 - 4) // 3 + 1            # 240 : conv2 output length
FLAT = 32 * L2                    # 7680
N_GROUPS = 4                      # fc1 is evaluated as 4 groups of 8 conv channels
GROUP = 8
GN = GROUP * 128                  # 1024 lanes per group matmul

_VMEM = pl.BlockSpec(memory_space=pltpu.MemorySpace.VMEM)
_ANY = pl.BlockSpec(memory_space=pl.ANY)


# ----------------------------- fused Pallas kernel -----------------------------

def _fused_forward_kernel(p_ref, w1_ref, w2_ref, fw1_hbm, fb1_ref,
                          fw2_ref, fb2_ref, fw3_ref, fb3_ref, o_ref,
                          fw1_vmem, dma_sem):
    # Kick off the big fc1-weight DMA (HBM -> VMEM, ~1.9 MiB bf16) immediately so
    # it overlaps with the conv1/conv2 matmuls below.
    fw1_copy = pltpu.make_async_copy(fw1_hbm, fw1_vmem, dma_sem)
    fw1_copy.start()

    # conv1 + ReLU, all 4 stride-phases at once:
    #   h1[r*16 + c, l] = relu(conv1 channel c at output position 3l + r)
    #   row 64 stays exactly 1.0 and carries the biases of the next layer.
    h1 = jnp.maximum(
        jnp.dot(w1_ref[...], p_ref[...], preferred_element_type=jnp.float32), 0.0)   # (65, 240)

    # conv2 + ReLU: the 4 taps are folded into the 65-wide contraction.
    h2 = jnp.maximum(
        jnp.dot(w2_ref[...], h1, preferred_element_type=jnp.float32), 0.0)           # (32, 240)
    h2b = h2.astype(jnp.bfloat16)

    # fc1 weights must be resident before the group matmuls.
    fw1_copy.wait()

    # Linear(7680, 128) + ReLU.
    # PyTorch's channel-major flatten (ch*240 + pos) is folded into the
    # block-diagonal weight packing fw1[g, p, m*128 + n] = fc1_w[n, (g*8+m)*240 + p].
    # Each group matmul contracts over the 240 positions for 8 channels at once;
    # the wanted per-channel results sit on the 8 diagonal 128-lane blocks.
    acc = fb1_ref[...]                                                                # (1, 128) f32
    for g in range(N_GROUPS):
        q = jnp.dot(h2b[g * GROUP:(g + 1) * GROUP, :], fw1_vmem[g],
                    preferred_element_type=jnp.float32)                               # (8, 1024)
        part = q[0:1, 0:128]
        for m in range(1, GROUP):
            part = part + q[m:m + 1, m * 128:(m + 1) * 128]
        acc = acc + part
    h3 = jnp.maximum(acc, 0.0)                                                        # (1, 128)

    # Dropout(0.4): identity in inference / eval mode.

    # Linear(128, 64) + ReLU
    h4 = jnp.maximum(
        jnp.dot(h3, fw2_ref[...], preferred_element_type=jnp.float32) + fb2_ref[...], 0.0)  # (1, 64)

    # Linear(64, 60)
    o_ref[...] = jnp.dot(h4, fw3_ref[...],
                         preferred_element_type=jnp.float32) + fb3_ref[...]           # (1, 60)


def fused_forward(p_aug, kp):
    return pl.pallas_call(
        _fused_forward_kernel,
        out_shape=jax.ShapeDtypeStruct((1, OUT_FEATURES), jnp.float32),
        in_specs=[_VMEM,            # p_aug  (14, 240)
                  _VMEM,            # w1a    (65, 14)
                  _VMEM,            # w2a    (32, 65)
                  _ANY,             # fw1    (4, 240, 1024) bf16 -- stays in HBM, manual DMA
                  _VMEM,            # fb1    (1, 128)
                  _VMEM,            # fw2    (128, 64)
                  _VMEM,            # fb2    (1, 64)
                  _VMEM,            # fw3    (64, 60)
                  _VMEM],           # fb3    (1, 60)
        out_specs=_VMEM,
        scratch_shapes=[
            pltpu.VMEM((N_GROUPS, L2, GN), jnp.bfloat16),   # fc1 weight staging buffer
            pltpu.SemaphoreType.DMA,
        ],
    )(p_aug, kp["w1a"], kp["w2a"], kp["fw1"], kp["fb1"],
      kp["fw2"], kp["fb2"], kp["fw3"], kp["fb3"])


# ----------------------------- parameter packing -----------------------------

def init_raw_params(key):
    """Parameters with the exact PyTorch shapes."""
    ks = jax.random.split(key, 10)
    s = 0.02
    return dict(
        conv1_w=s * jax.random.normal(ks[0], (16, 1, 4), jnp.float32),
        conv1_b=s * jax.random.normal(ks[1], (16,), jnp.float32),
        conv2_w=s * jax.random.normal(ks[2], (32, 16, 4), jnp.float32),
        conv2_b=s * jax.random.normal(ks[3], (32,), jnp.float32),
        fc1_w=s * jax.random.normal(ks[4], (128, FLAT), jnp.float32),
        fc1_b=s * jax.random.normal(ks[5], (128,), jnp.float32),
        fc2_w=s * jax.random.normal(ks[6], (64, 128), jnp.float32),
        fc2_b=s * jax.random.normal(ks[7], (64,), jnp.float32),
        fc3_w=s * jax.random.normal(ks[8], (OUT_FEATURES, 64), jnp.float32),
        fc3_b=s * jax.random.normal(ks[9], (OUT_FEATURES,), jnp.float32),
    )


def pack_params(raw):
    """One-time re-layout of the PyTorch weights for the fused kernel."""
    # conv1: fold the 4 stride-phases and the bias into one (65, 14) matrix.
    #   P_aug[k, l] = x[9l + k] (k = 3*phase + tap), row 13 = 1.0
    #   h1_aug = relu(W1a @ P_aug);  h1_aug[r*16+c, l] = conv1[c, 3l+r];  row 64 = 1.
    w1a = jnp.zeros((65, 14), jnp.float32)
    for r in range(4):
        w1a = w1a.at[r * 16:(r + 1) * 16, 3 * r:3 * r + 4].set(raw["conv1_w"][:, 0, :])
        w1a = w1a.at[r * 16:(r + 1) * 16, 13].set(raw["conv1_b"])
    w1a = w1a.at[64, 13].set(1.0)

    # conv2: fold the 4 taps and the bias into one (32, 65) matrix over the phase rows.
    w2a = jnp.zeros((32, 65), jnp.float32)
    for r in range(4):
        w2a = w2a.at[:, r * 16:(r + 1) * 16].set(raw["conv2_w"][:, :, r])
    w2a = w2a.at[:, 64].set(raw["conv2_b"])

    # fc1: block-diagonal packing (bf16), PyTorch channel-major flatten folded in:
    #   fw1[g, p, m*128 + n] = fc1_w[n, (g*8 + m)*240 + p]
    b = raw["fc1_w"].reshape(128, 32, L2).transpose(1, 2, 0)        # (32, 240, 128) [ch, p, n]
    fw1 = (b.reshape(N_GROUPS, GROUP, L2, 128)                      # (4, 8, 240, 128)
             .transpose(0, 2, 1, 3)                                 # (4, 240, 8, 128)
             .reshape(N_GROUPS, L2, GN)                             # (4, 240, 1024)
             .astype(jnp.bfloat16))

    return dict(
        w1a=w1a, w2a=w2a,
        fw1=fw1, fb1=raw["fc1_b"].reshape(1, 128),
        fw2=raw["fc2_w"].T, fb2=raw["fc2_b"].reshape(1, 64),
        fw3=raw["fc3_w"].T, fb3=raw["fc3_b"].reshape(1, OUT_FEATURES),
    )


# --------------------------------- forward ---------------------------------

@jax.jit
def forward(x, kp):
    # x: (1, 1, L_IN) in PyTorch NCL layout.
    x1d = x.reshape(-1)
    # One tiny host-side gather: P[k, m] = x[9*m + k]  (lane-dense (13, 240)),
    # plus a ones row that carries the conv biases through the fused matmuls.
    idx = 9 * jnp.arange(L2)[None, :] + jnp.arange(13)[:, None]          # (13, 240)
    p_aug = jnp.concatenate([x1d[idx], jnp.ones((1, L2), jnp.float32)], axis=0)   # (14, 240)
    out = fused_forward(p_aug, kp)                                       # (1, 60)
    return out.reshape(OUT_FEATURES, 1)                                  # .unsqueeze(1)


# Pure-JAX reference mirroring the PyTorch module exactly (for validation).
def reference_forward(x, raw):
    xl = x[0, 0]
    i1 = jnp.arange(L1)[:, None] * 3 + jnp.arange(4)[None, :]
    h1 = jnp.maximum(jnp.einsum('lj,oj->lo', xl[i1], raw["conv1_w"][:, 0, :]) + raw["conv1_b"], 0.0)
    i2 = jnp.arange(L2)[:, None] * 3 + jnp.arange(4)[None, :]
    h2 = jnp.maximum(jnp.einsum('ljc,ocj->lo', h1[i2], raw["conv2_w"]) + raw["conv2_b"], 0.0)
    v = h2.T.reshape(-1)                                  # PyTorch flatten order: ch*240 + pos
    z = jnp.maximum(v @ raw["fc1_w"].T + raw["fc1_b"], 0.0)
    z = jnp.maximum(z @ raw["fc2_w"].T + raw["fc2_b"], 0.0)
    z = z @ raw["fc3_w"].T + raw["fc3_b"]
    return z.reshape(OUT_FEATURES, 1)


if __name__ == "__main__":
    key = jax.random.PRNGKey(0)
    pkey, xkey = jax.random.split(key)
    raw = init_raw_params(pkey)
    kp = pack_params(raw)

    # L = 2167 -> conv1 len 722 -> conv2 len 240 -> 32*240 = 7680 flat features.
    x = jax.random.normal(xkey, (1, 1, L_IN), jnp.float32)

    out = forward(x, kp)
    jax.block_until_ready(out)
    assert out.shape == (OUT_FEATURES, 1) and out.dtype == jnp.float32

    ref = reference_forward(x, raw)
    # fc1 weights/activations are bf16 inside the kernel -> tolerance loosened accordingly.
    assert jnp.allclose(out, ref, atol=1e-3, rtol=2e-2), float(jnp.max(jnp.abs(out - ref)))
    print("KERNEL_OK")
</pallas_src>

<mosaic_0001>
module attributes {stable_mosaic.version = 11 : i64} {
  func.func @_fused_forward_kernel(%arg0: memref<14x240xf32, #tpu.memory_space<vmem>>, %arg1: memref<65x14xf32, #tpu.memory_space<vmem>>, %arg2: memref<32x65xf32, #tpu.memory_space<vmem>>, %arg3: memref<4x240x1024xbf16, #tpu.memory_space<any>>, %arg4: memref<1x128xf32, #tpu.memory_space<vmem>>, %arg5: memref<128x64xf32, #tpu.memory_space<vmem>>, %arg6: memref<1x64xf32, #tpu.memory_space<vmem>>, %arg7: memref<64x60xf32, #tpu.memory_space<vmem>>, %arg8: memref<1x60xf32, #tpu.memory_space<vmem>>, %arg9: memref<1x60xf32, #tpu.memory_space<vmem>>, %arg10: memref<4x240x1024xbf16, #tpu.memory_space<vmem>>, %arg11: memref<!tpu.dma_semaphore, #tpu.memory_space<semaphore_mem>>) attributes {dimension_semantics = [], scalar_prefetch = 0 : i64, scratch_operands = 2 : i64, tpu.core_type = #tpu.core_type<tc>} {
    tpu.enqueue_dma source(%arg3 : memref<4x240x1024xbf16, #tpu.memory_space<any>>) target(%arg10 : memref<4x240x1024xbf16, #tpu.memory_space<vmem>>) target_semaphore(%arg11 : memref<!tpu.dma_semaphore, #tpu.memory_space<semaphore_mem>>)
    %c0 = arith.constant 0 : index
    %c0_0 = arith.constant 0 : index
    %0 = vector.load %arg1[%c0, %c0_0] : memref<65x14xf32, #tpu.memory_space<vmem>>, vector<65x14xf32>
    %c0_1 = arith.constant 0 : index
    %c0_2 = arith.constant 0 : index
    %1 = vector.load %arg0[%c0_1, %c0_2] : memref<14x240xf32, #tpu.memory_space<vmem>>, vector<14x240xf32>
    %cst = arith.constant dense<0.000000e+00> : vector<65x240xf32>
    %2 = tpu.matmul %0, %1, %cst {dimension_numbers = #tpu.dot_dimension_numbers<[1], [0], [0], [1], [0, 0, 1, 1], [], []>} : vector<65x14xf32>, vector<14x240xf32>, vector<65x240xf32> -> vector<65x240xf32>
    %cst_3 = arith.constant 0.000000e+00 : f32
    %3 = vector.broadcast %cst_3 : f32 to vector<65x240xf32>
    %4 = arith.maximumf %2, %3 : vector<65x240xf32>
    %c0_4 = arith.constant 0 : index
    %c0_5 = arith.constant 0 : index
    %5 = vector.load %arg2[%c0_4, %c0_5] : memref<32x65xf32, #tpu.memory_space<vmem>>, vector<32x65xf32>
    %cst_6 = arith.constant dense<0.000000e+00> : vector<32x240xf32>
    %6 = tpu.matmul %5, %4, %cst_6 {dimension_numbers = #tpu.dot_dimension_numbers<[1], [0], [0], [1], [0, 0, 1, 1], [], []>} : vector<32x65xf32>, vector<65x240xf32>, vector<32x240xf32> -> vector<32x240xf32>
    %cst_7 = arith.constant 0.000000e+00 : f32
    %7 = vector.broadcast %cst_7 : f32 to vector<32x240xf32>
    %8 = arith.maximumf %6, %7 : vector<32x240xf32>
    %9 = arith.truncf %8 : vector<32x240xf32> to vector<32x240xbf16>
    tpu.wait_dma2 semaphore(%arg11 : memref<!tpu.dma_semaphore, #tpu.memory_space<semaphore_mem>>) src(%arg3 : memref<4x240x1024xbf16, #tpu.memory_space<any>>) dst(%arg10 : memref<4x240x1024xbf16, #tpu.memory_space<vmem>>)
    %c0_8 = arith.constant 0 : index
    %c0_9 = arith.constant 0 : index
    %10 = vector.load %arg4[%c0_8, %c0_9] : memref<1x128xf32, #tpu.memory_space<vmem>>, vector<1x128xf32>
    %11 = vector.extract_strided_slice %9 {offsets = [0, 0], sizes = [8, 240], strides = [1, 1]} : vector<32x240xbf16> to vector<8x240xbf16>
    %c0_10 = arith.constant 0 : index
    %c0_11 = arith.constant 0 : index
    %c0_12 = arith.constant 0 : index
    %12 = vector.load %arg10[%c0_10, %c0_11, %c0_12] : memref<4x240x1024xbf16, #tpu.memory_space<vmem>>, vector<1x240x1024xbf16>
    %13 = vector.shape_cast %12 : vector<1x240x1024xbf16> to vector<240x1024xbf16>
    %cst_13 = arith.constant dense<0.000000e+00> : vector<8x1024xf32>
    %14 = tpu.matmul %11, %13, %cst_13 {dimension_numbers = #tpu.dot_dimension_numbers<[1], [0], [0], [1], [0, 0, 1, 1], [], []>} : vector<8x240xbf16>, vector<240x1024xbf16>, vector<8x1024xf32> -> vector<8x1024xf32>
    %15 = vector.extract_strided_slice %14 {offsets = [0, 0], sizes = [1, 128], strides = [1, 1]} : vector<8x1024xf32> to vector<1x128xf32>
    %16 = vector.extract_strided_slice %14 {offsets = [1, 128], sizes = [1, 128], strides = [1, 1]} : vector<8x1024xf32> to vector<1x128xf32>
    %17 = arith.addf %15, %16 : vector<1x128xf32>
    %18 = vector.extract_strided_slice %14 {offsets = [2, 256], sizes = [1, 128], strides = [1, 1]} : vector<8x1024xf32> to vector<1x128xf32>
    %19 = arith.addf %17, %18 : vector<1x128xf32>
    %20 = vector.extract_strided_slice %14 {offsets = [3, 384], sizes = [1, 128], strides = [1, 1]} : vector<8x1024xf32> to vector<1x128xf32>
    %21 = arith.addf %19, %20 : vector<1x128xf32>
    %22 = vector.extract_strided_slice %14 {offsets = [4, 512], sizes = [1, 128], strides = [1, 1]} : vector<8x1024xf32> to vector<1x128xf32>
    %23 = arith.addf %21, %22 : vector<1x128xf32>
    %24 = vector.extract_strided_slice %14 {offsets = [5, 640], sizes = [1, 128], strides = [1, 1]} : vector<8x1024xf32> to vector<1x128xf32>
    %25 = arith.addf %23, %24 : vector<1x128xf32>
    %26 = vector.extract_strided_slice %14 {offsets = [6, 768], sizes = [1, 128], strides = [1, 1]} : vector<8x1024xf32> to vector<1x128xf32>
    %27 = arith.addf %25, %26 : vector<1x128xf32>
    %28 = vector.extract_strided_slice %14 {offsets = [7, 896], sizes = [1, 128], strides = [1, 1]} : vector<8x1024xf32> to vector<1x128xf32>
    %29 = arith.addf %27, %28 : vector<1x128xf32>
    %30 = arith.addf %10, %29 : vector<1x128xf32>
    %31 = vector.extract_strided_slice %9 {offsets = [8, 0], sizes = [8, 240], strides = [1, 1]} : vector<32x240xbf16> to vector<8x240xbf16>
    %c1 = arith.constant 1 : index
    %c0_14 = arith.constant 0 : index
    %c0_15 = arith.constant 0 : index
    %32 = vector.load %arg10[%c1, %c0_14, %c0_15] : memref<4x240x1024xbf16, #tpu.memory_space<vmem>>, vector<1x240x1024xbf16>
    %33 = vector.shape_cast %32 : vector<1x240x1024xbf16> to vector<240x1024xbf16>
    %cst_16 = arith.constant dense<0.000000e+00> : vector<8x1024xf32>
    %34 = tpu.matmul %31, %33, %cst_16 {dimension_numbers = #tpu.dot_dimension_numbers<[1], [0], [0], [1], [0, 0, 1, 1], [], []>} : vector<8x240xbf16>, vector<240x1024xbf16>, vector<8x1024xf32> -> vector<8x1024xf32>
    %35 = vector.extract_strided_slice %34 {offsets = [0, 0], sizes = [1, 128], strides = [1, 1]} : vector<8x1024xf32> to vector<1x128xf32>
    %36 = vector.extract_strided_slice %34 {offsets = [1, 128], sizes = [1, 128], strides = [1, 1]} : vector<8x1024xf32> to vector<1x128xf32>
    %37 = arith.addf %35, %36 : vector<1x128xf32>
    %38 = vector.extract_strided_slice %34 {offsets = [2, 256], sizes = [1, 128], strides = [1, 1]} : vector<8x1024xf32> to vector<1x128xf32>
    %39 = arith.addf %37, %38 : vector<1x128xf32>
    %40 = vector.extract_strided_slice %34 {offsets = [3, 384], sizes = [1, 128], strides = [1, 1]} : vector<8x1024xf32> to vector<1x128xf32>
    %41 = arith.addf %39, %40 : vector<1x128xf32>
    %42 = vector.extract_strided_slice %34 {offsets = [4, 512], sizes = [1, 128], strides = [1, 1]} : vector<8x1024xf32> to vector<1x128xf32>
    %43 = arith.addf %41, %42 : vector<1x128xf32>
    %44 = vector.extract_strided_slice %34 {offsets = [5, 640], sizes = [1, 128], strides = [1, 1]} : vector<8x1024xf32> to vector<1x128xf32>
    %45 = arith.addf %43, %44 : vector<1x128xf32>
    %46 = vector.extract_strided_slice %34 {offsets = [6, 768], sizes = [1, 128], strides = [1, 1]} : vector<8x1024xf32> to vector<1x128xf32>
    %47 = arith.addf %45, %46 : vector<1x128xf32>
    %48 = vector.extract_strided_slice %34 {offsets = [7, 896], sizes = [1, 128], strides = [1, 1]} : vector<8x1024xf32> to vector<1x128xf32>
    %49 = arith.addf %47, %48 : vector<1x128xf32>
    %50 = arith.addf %30, %49 : vector<1x128xf32>
    %51 = vector.extract_strided_slice %9 {offsets = [16, 0], sizes = [8, 240], strides = [1, 1]} : vector<32x240xbf16> to vector<8x240xbf16>
    %c2 = arith.constant 2 : index
    %c0_17 = arith.constant 0 : index
    %c0_18 = arith.constant 0 : index
    %52 = vector.load %arg10[%c2, %c0_17, %c0_18] : memref<4x240x1024xbf16, #tpu.memory_space<vmem>>, vector<1x240x1024xbf16>
    %53 = vector.shape_cast %52 : vector<1x240x1024xbf16> to vector<240x1024xbf16>
    %cst_19 = arith.constant dense<0.000000e+00> : vector<8x1024xf32>
    %54 = tpu.matmul %51, %53, %cst_19 {dimension_numbers = #tpu.dot_dimension_numbers<[1], [0], [0], [1], [0, 0, 1, 1], [], []>} : vector<8x240xbf16>, vector<240x1024xbf16>, vector<8x1024xf32> -> vector<8x1024xf32>
    %55 = vector.extract_strided_slice %54 {offsets = [0, 0], sizes = [1, 128], strides = [1, 1]} : vector<8x1024xf32> to vector<1x128xf32>
    %56 = vector.extract_strided_slice %54 {offsets = [1, 128], sizes = [1, 128], strides = [1, 1]} : vector<8x1024xf32> to vector<1x128xf32>
    %57 = arith.addf %55, %56 : vector<1x128xf32>
    %58 = vector.extract_strided_slice %54 {offsets = [2, 256], sizes = [1, 128], strides = [1, 1]} : vector<8x1024xf32> to vector<1x128xf32>
    %59 = arith.addf %57, %58 : vector<1x128xf32>
    %60 = vector.extract_strided_slice %54 {offsets = [3, 384], sizes = [1, 128], strides = [1, 1]} : vector<8x1024xf32> to vector<1x128xf32>
    %61 = arith.addf %59, %60 : vector<1x128xf32>
    %62 = vector.extract_strided_slice %54 {offsets = [4, 512], sizes = [1, 128], strides = [1, 1]} : vector<8x1024xf32> to vector<1x128xf32>
    %63 = arith.addf %61, %62 : vector<1x128xf32>
    %64 = vector.extract_strided_slice %54 {offsets = [5, 640], sizes = [1, 128], strides = [1, 1]} : vector<8x1024xf32> to vector<1x128xf32>
    %65 = arith.addf %63, %64 : vector<1x128xf32>
    %66 = vector.extract_strided_slice %54 {offsets = [6, 768], sizes = [1, 128], strides = [1, 1]} : vector<8x1024xf32> to vector<1x128xf32>
    %67 = arith.addf %65, %66 : vector<1x128xf32>
    %68 = vector.extract_strided_slice %54 {offsets = [7, 896], sizes = [1, 128], strides = [1, 1]} : vector<8x1024xf32> to vector<1x128xf32>
    %69 = arith.addf %67, %68 : vector<1x128xf32>
    %70 = arith.addf %50, %69 : vector<1x128xf32>
    %71 = vector.extract_strided_slice %9 {offsets = [24, 0], sizes = [8, 240], strides = [1, 1]} : vector<32x240xbf16> to vector<8x240xbf16>
    %c3 = arith.constant 3 : index
    %c0_20 = arith.constant 0 : index
    %c0_21 = arith.constant 0 : index
    %72 = vector.load %arg10[%c3, %c0_20, %c0_21] : memref<4x240x1024xbf16, #tpu.memory_space<vmem>>, vector<1x240x1024xbf16>
    %73 = vector.shape_cast %72 : vector<1x240x1024xbf16> to vector<240x1024xbf16>
    %cst_22 = arith.constant dense<0.000000e+00> : vector<8x1024xf32>
    %74 = tpu.matmul %71, %73, %cst_22 {dimension_numbers = #tpu.dot_dimension_numbers<[1], [0], [0], [1], [0, 0, 1, 1], [], []>} : vector<8x240xbf16>, vector<240x1024xbf16>, vector<8x1024xf32> -> vector<8x1024xf32>
    %75 = vector.extract_strided_slice %74 {offsets = [0, 0], sizes = [1, 128], strides = [1, 1]} : vector<8x1024xf32> to vector<1x128xf32>
    %76 = vector.extract_strided_slice %74 {offsets = [1, 128], sizes = [1, 128], strides = [1, 1]} : vector<8x1024xf32> to vector<1x128xf32>
    %77 = arith.addf %75, %76 : vector<1x128xf32>
    %78 = vector.extract_strided_slice %74 {offsets = [2, 256], sizes = [1, 128], strides = [1, 1]} : vector<8x1024xf32> to vector<1x128xf32>
    %79 = arith.addf %77, %78 : vector<1x128xf32>
    %80 = vector.extract_strided_slice %74 {offsets = [3, 384], sizes = [1, 128], strides = [1, 1]} : vector<8x1024xf32> to vector<1x128xf32>
    %81 = arith.addf %79, %80 : vector<1x128xf32>
    %82 = vector.extract_strided_slice %74 {offsets = [4, 512], sizes = [1, 128], strides = [1, 1]} : vector<8x1024xf32> to vector<1x128xf32>
    %83 = arith.addf %81, %82 : vector<1x128xf32>
    %84 = vector.extract_strided_slice %74 {offsets = [5, 640], sizes = [1, 128], strides = [1, 1]} : vector<8x1024xf32> to vector<1x128xf32>
    %85 = arith.addf %83, %84 : vector<1x128xf32>
    %86 = vector.extract_strided_slice %74 {offsets = [6, 768], sizes = [1, 128], strides = [1, 1]} : vector<8x1024xf32> to vector<1x128xf32>
    %87 = arith.addf %85, %86 : vector<1x128xf32>
    %88 = vector.extract_strided_slice %74 {offsets = [7, 896], sizes = [1, 128], strides = [1, 1]} : vector<8x1024xf32> to vector<1x128xf32>
    %89 = arith.addf %87, %88 : vector<1x128xf32>
    %90 = arith.addf %70, %89 : vector<1x128xf32>
    %cst_23 = arith.constant 0.000000e+00 : f32
    %91 = vector.broadcast %cst_23 : f32 to vector<1x128xf32>
    %92 = arith.maximumf %90, %91 : vector<1x128xf32>
    %c0_24 = arith.constant 0 : index
    %c0_25 = arith.constant 0 : index
    %93 = vector.load %arg5[%c0_24, %c0_25] : memref<128x64xf32, #tpu.memory_space<vmem>>, vector<128x64xf32>
    %cst_26 = arith.constant dense<0.000000e+00> : vector<1x64xf32>
    %94 = tpu.matmul %92, %93, %cst_26 {dimension_numbers = #tpu.dot_dimension_numbers<[1], [0], [0], [1], [0, 0, 1, 1], [], []>} : vector<1x128xf32>, vector<128x64xf32>, vector<1x64xf32> -> vector<1x64xf32>
    %c0_27 = arith.constant 0 : index
    %c0_28 = arith.constant 0 : index
    %95 = vector.load %arg6[%c0_27, %c0_28] : memref<1x64xf32, #tpu.memory_space<vmem>>, vector<1x64xf32>
    %96 = arith.addf %94, %95 : vector<1x64xf32>
    %cst_29 = arith.constant 0.000000e+00 : f32
    %97 = vector.broadcast %cst_29 : f32 to vector<1x64xf32>
    %98 = arith.maximumf %96, %97 : vector<1x64xf32>
    %c0_30 = arith.constant 0 : index
    %c0_31 = arith.constant 0 : index
    %99 = vector.load %arg7[%c0_30, %c0_31] : memref<64x60xf32, #tpu.memory_space<vmem>>, vector<64x60xf32>
    %cst_32 = arith.constant dense<0.000000e+00> : vector<1x60xf32>
    %100 = tpu.matmul %98, %99, %cst_32 {dimension_numbers = #tpu.dot_dimension_numbers<[1], [0], [0], [1], [0, 0, 1, 1], [], []>} : vector<1x64xf32>, vector<64x60xf32>, vector<1x60xf32> -> vector<1x60xf32>
    %c0_33 = arith.constant 0 : index
    %c0_34 = arith.constant 0 : index
    %101 = vector.load %arg8[%c0_33, %c0_34] : memref<1x60xf32, #tpu.memory_space<vmem>>, vector<1x60xf32>
    %102 = arith.addf %100, %101 : vector<1x60xf32>
    %c0_35 = arith.constant 0 : index
    %c0_36 = arith.constant 0 : index
    %103 = vector.load %arg9[%c0_35, %c0_36] : memref<1x60xf32, #tpu.memory_space<vmem>>, vector<1x60xf32>
    tpu.vector_store %arg9[%c0_35, %c0_36], %102 {strides = array<i32>} : memref<1x60xf32, #tpu.memory_space<vmem>>, vector<1x60xf32>,
    return
  }
}

</mosaic_0001>

<bundles_post_ra>
// kernel: forward.1
= control target key start
LH: loop header
LB: loop body
LE: loop exit
PB: predicated region body
PF: predicated region fallthrough
CT: control target
= control target key end

     0   :  { %14 = vsyncpa [#allocation5], 0  ;;  %s9543_s0 = inlined_call_operand.vmem [shape: f32[14,240], index: 0, kind: input, shape index: {}]   ;;  %s9544_s1 = inlined_call_operand.vmem [shape: f32[65,14], index: 1, kind: input, shape index: {}]   ;;  %s9545_s2 = inlined_call_operand.vmem [shape: f32[32,65], index: 2, kind: input, shape index: {}]   ;;  %s9546_s3 = inlined_call_operand.vmem [shape: bf16[4,240,1024], index: 3, kind: input, shape index: {}]   ;;  %s9547_s4 = inlined_call_operand.vmem [shape: f32[1,128], index: 4, kind: input, shape index: {}]   ;;  %s9548_s5 = inlined_call_operand.vmem [shape: f32[128,64], index: 5, kind: input, shape index: {}]   ;;  %s9549_s6 = inlined_call_operand.vmem [shape: f32[1,64], index: 6, kind: input, shape index: {}]   ;;  %s9550_s7 = inlined_call_operand.vmem [shape: f32[64,60], index: 7, kind: input, shape index: {}]   ;;  %s9551_s8 = inlined_call_operand.vmem [shape: f32[1,60], index: 8, kind: input, shape index: {}]   ;;  %s9552_s9 = inlined_call_operand.hbm [shape: f32[1,60], index: 9, kind: output, shape index: {}]  }
   0x1   :  { %v42_v0 = vld [vmem:[%s9546_s3] sm:$0xff]  ;;  %v44_v1 = vld [vmem:[%s9546_s3 + $0x8] sm:$0xff]  ;;  %v46_v2 = vld [vmem:[%s9546_s3 + $0x10] sm:$0xff] }
   0x2   :  { %43 = vst [vmem:[#allocation2] sm:$0xff] %v42_v0  ;;  %v48_v3 = vld [vmem:[%s9546_s3 + $0x18] sm:$0xff]  ;;  %v50_v4 = vld [vmem:[%s9546_s3 + $0x20] sm:$0xff]  ;;  %v52_v5 = vld [vmem:[%s9546_s3 + $0x28] sm:$0xff] }
   0x3   :  { %45 = vst [vmem:[#allocation2 + $0x8] sm:$0xff] %v44_v1  ;;  %v54_v6 = vld [vmem:[%s9546_s3 + $0x30] sm:$0xff]  ;;  %v56_v7 = vld [vmem:[%s9546_s3 + $0x38] sm:$0xff]  ;;  %v58_v8 = vld [vmem:[%s9546_s3 + $0x40] sm:$0xff] }
   0x4   :  { %47 = vst [vmem:[#allocation2 + $0x10] sm:$0xff] %v46_v2  ;;  %v60_v9 = vld [vmem:[%s9546_s3 + $0x48] sm:$0xff]  ;;  %v62_v10 = vld [vmem:[%s9546_s3 + $0x50] sm:$0xff]  ;;  %v64_v11 = vld [vmem:[%s9546_s3 + $0x58] sm:$0xff] }
   0x5   :  { %49 = vst [vmem:[#allocation2 + $0x18] sm:$0xff] %v48_v3  ;;  %v66_v12 = vld [vmem:[%s9546_s3 + $0x60] sm:$0xff]  ;;  %v68_v13 = vld [vmem:[%s9546_s3 + $0x68] sm:$0xff]  ;;  %v70_v14 = vld [vmem:[%s9546_s3 + $0x70] sm:$0xff] }
   0x6   :  { %51 = vst [vmem:[#allocation2 + $0x20] sm:$0xff] %v50_v4  ;;  %v72_v15 = vld [vmem:[%s9546_s3 + $0x78] sm:$0xff]  ;;  %v74_v16 = vld [vmem:[%s9546_s3 + $0x80] sm:$0xff]  ;;  %v76_v17 = vld [vmem:[%s9546_s3 + $0x88] sm:$0xff] }
   0x7   :  { %53 = vst [vmem:[#allocation2 + $0x28] sm:$0xff] %v52_v5  ;;  %v78_v18 = vld [vmem:[%s9546_s3 + $0x90] sm:$0xff]  ;;  %v80_v19 = vld [vmem:[%s9546_s3 + $0x98] sm:$0xff]  ;;  %v82_v20 = vld [vmem:[%s9546_s3 + $0xa0] sm:$0xff] }
   0x8   :  { %55 = vst [vmem:[#allocation2 + $0x30] sm:$0xff] %v54_v6  ;;  %v84_v21 = vld [vmem:[%s9546_s3 + $0xa8] sm:$0xff]  ;;  %v86_v22 = vld [vmem:[%s9546_s3 + $0xb0] sm:$0xff]  ;;  %v88_v23 = vld [vmem:[%s9546_s3 + $0xb8] sm:$0xff] }
   0x9   :  { %57 = vst [vmem:[#allocation2 + $0x38] sm:$0xff] %v56_v7  ;;  %v90_v24 = vld [vmem:[%s9546_s3 + $0xc0] sm:$0xff]  ;;  %v92_v25 = vld [vmem:[%s9546_s3 + $0xc8] sm:$0xff]  ;;  %v94_v26 = vld [vmem:[%s9546_s3 + $0xd0] sm:$0xff] }
   0xa   :  { %59 = vst [vmem:[#allocation2 + $0x40] sm:$0xff] %v58_v8  ;;  %v96_v27 = vld [vmem:[%s9546_s3 + $0xd8] sm:$0xff]  ;;  %v98_v28 = vld [vmem:[%s9546_s3 + $0xe0] sm:$0xff]  ;;  %v100_v29 = vld [vmem:[%s9546_s3 + $0xe8] sm:$0xff] }
   0xb   :  { %61 = vst [vmem:[#allocation2 + $0x48] sm:$0xff] %v60_v9  ;;  %v102_v30 = vld [vmem:[%s9546_s3 + $0xf0] sm:$0xff]  ;;  %v104_v31 = vld [vmem:[%s9546_s3 + $0xf8] sm:$0xff]  ;;  %v106_v32 = vld [vmem:[%s9546_s3 + $0x100] sm:$0xff] }
   0xc   :  { %63 = vst [vmem:[#allocation2 + $0x50] sm:$0xff] %v62_v10  ;;  %v108_v33 = vld [vmem:[%s9546_s3 + $0x108] sm:$0xff]  ;;  %v110_v34 = vld [vmem:[%s9546_s3 + $0x110] sm:$0xff]  ;;  %v112_v35 = vld [vmem:[%s9546_s3 + $0x118] sm:$0xff] }
   0xd   :  { %65 = vst [vmem:[#allocation2 + $0x58] sm:$0xff] %v64_v11  ;;  %v114_v36 = vld [vmem:[%s9546_s3 + $0x120] sm:$0xff]  ;;  %v116_v37 = vld [vmem:[%s9546_s3 + $0x128] sm:$0xff]  ;;  %v118_v38 = vld [vmem:[%s9546_s3 + $0x130] sm:$0xff] }
   0xe   :  { %67 = vst [vmem:[#allocation2 + $0x60] sm:$0xff] %v66_v12  ;;  %v120_v39 = vld [vmem:[%s9546_s3 + $0x138] sm:$0xff]  ;;  %v122_v40 = vld [vmem:[%s9546_s3 + $0x140] sm:$0xff]  ;;  %v124_v41 = vld [vmem:[%s9546_s3 + $0x148] sm:$0xff] }
   0xf   :  { %69 = vst [vmem:[#allocation2 + $0x68] sm:$0xff] %v68_v13  ;;  %v126_v42 = vld [vmem:[%s9546_s3 + $0x150] sm:$0xff]  ;;  %v128_v43 = vld [vmem:[%s9546_s3 + $0x158] sm:$0xff]  ;;  %v130_v44 = vld [vmem:[%s9546_s3 + $0x160] sm:$0xff] }
  0x10   :  { %71 = vst [vmem:[#allocation2 + $0x70] sm:$0xff] %v70_v14  ;;  %v132_v45 = vld [vmem:[%s9546_s3 + $0x168] sm:$0xff]  ;;  %v134_v46 = vld [vmem:[%s9546_s3 + $0x170] sm:$0xff]  ;;  %v136_v47 = vld [vmem:[%s9546_s3 + $0x178] sm:$0xff] }
  0x11   :  { %73 = vst [vmem:[#allocation2 + $0x78] sm:$0xff] %v72_v15  ;;  %v138_v48 = vld [vmem:[%s9546_s3 + $0x180] sm:$0xff]  ;;  %v140_v49 = vld [vmem:[%s9546_s3 + $0x188] sm:$0xff]  ;;  %v142_v50 = vld [vmem:[%s9546_s3 + $0x190] sm:$0xff] }
  0x12   :  { %75 = vst [vmem:[#allocation2 + $0x80] sm:$0xff] %v74_v16  ;;  %v144_v51 = vld [vmem:[%s9546_s3 + $0x198] sm:$0xff]  ;;  %v146_v52 = vld [vmem:[%s9546_s3 + $0x1a0] sm:$0xff]  ;;  %v148_v53 = vld [vmem:[%s9546_s3 + $0x1a8] sm:$0xff] }
  0x13   :  { %77 = vst [vmem:[#allocation2 + $0x88] sm:$0xff] %v76_v17  ;;  %v150_v54 = vld [vmem:[%s9546_s3 + $0x1b0] sm:$0xff]  ;;  %v152_v55 = vld [vmem:[%s9546_s3 + $0x1b8] sm:$0xff]  ;;  %v154_v56 = vld [vmem:[%s9546_s3 + $0x1c0] sm:$0xff] }
  0x14   :  { %79 = vst [vmem:[#allocation2 + $0x90] sm:$0xff] %v78_v18  ;;  %v156_v57 = vld [vmem:[%s9546_s3 + $0x1c8] sm:$0xff]  ;;  %v158_v58 = vld [vmem:[%s9546_s3 + $0x1d0] sm:$0xff]  ;;  %v160_v59 = vld [vmem:[%s9546_s3 + $0x1d8] sm:$0xff] }
  0x15   :  { %81 = vst [vmem:[#allocation2 + $0x98] sm:$0xff] %v80_v19  ;;  %v162_v60 = vld [vmem:[%s9546_s3 + $0x1e0] sm:$0xff]  ;;  %v164_v61 = vld [vmem:[%s9546_s3 + $0x1e8] sm:$0xff]  ;;  %v166_v62 = vld [vmem:[%s9546_s3 + $0x1f0] sm:$0xff] }
  0x16   :  { %83 = vst [vmem:[#allocation2 + $0xa0] sm:$0xff] %v82_v20  ;;  %v168_v63 = vld [vmem:[%s9546_s3 + $0x1f8] sm:$0xff]  ;;  %v170_v0 = vld [vmem:[%s9546_s3 + $0x200] sm:$0xff]  ;;  %v172_v1 = vld [vmem:[%s9546_s3 + $0x208] sm:$0xff] }
  0x17   :  { %85 = vst [vmem:[#allocation2 + $0xa8] sm:$0xff] %v84_v21  ;;  %v174_v2 = vld [vmem:[%s9546_s3 + $0x210] sm:$0xff]  ;;  %v176_v3 = vld [vmem:[%s9546_s3 + $0x218] sm:$0xff]  ;;  %v178_v4 = vld [vmem:[%s9546_s3 + $0x220] sm:$0xff] }
  0x18   :  { %87 = vst [vmem:[#allocation2 + $0xb0] sm:$0xff] %v86_v22  ;;  %v180_v5 = vld [vmem:[%s9546_s3 + $0x228] sm:$0xff]  ;;  %v182_v6 = vld [vmem:[%s9546_s3 + $0x230] sm:$0xff]  ;;  %v184_v7 = vld [vmem:[%s9546_s3 + $0x238] sm:$0xff] }
  0x19   :  { %89 = vst [vmem:[#allocation2 + $0xb8] sm:$0xff] %v88_v23  ;;  %v186_v8 = vld [vmem:[%s9546_s3 + $0x240] sm:$0xff]  ;;  %v188_v9 = vld [vmem:[%s9546_s3 + $0x248] sm:$0xff]  ;;  %v190_v10 = vld [vmem:[%s9546_s3 + $0x250] sm:$0xff] }
  0x1a   :  { %91 = vst [vmem:[#allocation2 + $0xc0] sm:$0xff] %v90_v24  ;;  %v192_v11 = vld [vmem:[%s9546_s3 + $0x258] sm:$0xff]  ;;  %v194_v12 = vld [vmem:[%s9546_s3 + $0x260] sm:$0xff]  ;;  %v196_v13 = vld [vmem:[%s9546_s3 + $0x268] sm:$0xff] }
  0x1b   :  { %93 = vst [vmem:[#allocation2 + $0xc8] sm:$0xff] %v92_v25  ;;  %v198_v14 = vld [vmem:[%s9546_s3 + $0x270] sm:$0xff]  ;;  %v200_v15 = vld [vmem:[%s9546_s3 + $0x278] sm:$0xff]  ;;  %v202_v16 = vld [vmem:[%s9546_s3 + $0x280] sm:$0xff] }
  0x1c   :  { %95 = vst [vmem:[#allocation2 + $0xd0] sm:$0xff] %v94_v26  ;;  %v204_v17 = vld [vmem:[%s9546_s3 + $0x288] sm:$0xff]  ;;  %v206_v18 = vld [vmem:[%s9546_s3 + $0x290] sm:$0xff]  ;;  %v208_v19 = vld [vmem:[%s9546_s3 + $0x298] sm:$0xff] }
  0x1d   :  { %97 = vst [vmem:[#allocation2 + $0xd8] sm:$0xff] %v96_v27  ;;  %v210_v20 = vld [vmem:[%s9546_s3 + $0x2a0] sm:$0xff]  ;;  %v212_v21 = vld [vmem:[%s9546_s3 + $0x2a8] sm:$0xff]  ;;  %v214_v22 = vld [vmem:[%s9546_s3 + $0x2b0] sm:$0xff] }
  0x1e   :  { %99 = vst [vmem:[#allocation2 + $0xe0] sm:$0xff] %v98_v28  ;;  %v216_v23 = vld [vmem:[%s9546_s3 + $0x2b8] sm:$0xff]  ;;  %v218_v24 = vld [vmem:[%s9546_s3 + $0x2c0] sm:$0xff]  ;;  %v220_v25 = vld [vmem:[%s9546_s3 + $0x2c8] sm:$0xff] }
  0x1f   :  { %101 = vst [vmem:[#allocation2 + $0xe8] sm:$0xff] %v100_v29  ;;  %v222_v26 = vld [vmem:[%s9546_s3 + $0x2d0] sm:$0xff]  ;;  %v224_v27 = vld [vmem:[%s9546_s3 + $0x2d8] sm:$0xff]  ;;  %v226_v28 = vld [vmem:[%s9546_s3 + $0x2e0] sm:$0xff] }
  0x20   :  { %103 = vst [vmem:[#allocation2 + $0xf0] sm:$0xff] %v102_v30  ;;  %v228_v29 = vld [vmem:[%s9546_s3 + $0x2e8] sm:$0xff]  ;;  %v230_v30 = vld [vmem:[%s9546_s3 + $0x2f0] sm:$0xff] }
  0x21   :  { %105 = vst [vmem:[#allocation2 + $0xf8] sm:$0xff] %v104_v31  ;;  %v232_v31 = vld [vmem:[%s9546_s3 + $0x2f8] sm:$0xff] }
  0x22   :  { %107 = vst [vmem:[#allocation2 + $0x100] sm:$0xff] %v106_v32  ;;  %v234_v32 = vld [vmem:[%s9546_s3 + $0x300] sm:$0xff] }
  0x23   :  { %109 = vst [vmem:[#allocation2 + $0x108] sm:$0xff] %v108_v33  ;;  %v236_v33 = vld [vmem:[%s9546_s3 + $0x308] sm:$0xff] }
  0x24   :  { %111 = vst [vmem:[#allocation2 + $0x110] sm:$0xff] %v110_v34  ;;  %v238_v34 = vld [vmem:[%s9546_s3 + $0x310] sm:$0xff] }
  0x25   :  { %113 = vst [vmem:[#allocation2 + $0x118] sm:$0xff] %v112_v35  ;;  %v240_v35 = vld [vmem:[%s9546_s3 + $0x318] sm:$0xff] }
  0x26   :  { %115 = vst [vmem:[#allocation2 + $0x120] sm:$0xff] %v114_v36  ;;  %v242_v36 = vld [vmem:[%s9546_s3 + $0x320] sm:$0xff] }
  0x27   :  { %117 = vst [vmem:[#allocation2 + $0x128] sm:$0xff] %v116_v37  ;;  %v244_v37 = vld [vmem:[%s9546_s3 + $0x328] sm:$0xff] }
  0x28   :  { %119 = vst [vmem:[#allocation2 + $0x130] sm:$0xff] %v118_v38  ;;  %v246_v38 = vld [vmem:[%s9546_s3 + $0x330] sm:$0xff] }
  0x29   :  { %121 = vst [vmem:[#allocation2 + $0x138] sm:$0xff] %v120_v39  ;;  %v248_v39 = vld [vmem:[%s9546_s3 + $0x338] sm:$0xff] }
  0x2a   :  { %123 = vst [vmem:[#allocation2 + $0x140] sm:$0xff] %v122_v40  ;;  %v250_v40 = vld [vmem:[%s9546_s3 + $0x340] sm:$0xff] }
  0x2b   :  { %125 = vst [vmem:[#allocation2 + $0x148] sm:$0xff] %v124_v41  ;;  %v252_v41 = vld [vmem:[%s9546_s3 + $0x348] sm:$0xff] }
  0x2c   :  { %127 = vst [vmem:[#allocation2 + $0x150] sm:$0xff] %v126_v42  ;;  %v254_v42 = vld [vmem:[%s9546_s3 + $0x350] sm:$0xff] }
  0x2d   :  { %129 = vst [vmem:[#allocation2 + $0x158] sm:$0xff] %v128_v43  ;;  %v256_v43 = vld [vmem:[%s9546_s3 + $0x358] sm:$0xff] }
  0x2e   :  { %131 = vst [vmem:[#allocation2 + $0x160] sm:$0xff] %v130_v44  ;;  %v258_v44 = vld [vmem:[%s9546_s3 + $0x360] sm:$0xff] }
  0x2f   :  { %133 = vst [vmem:[#allocation2 + $0x168] sm:$0xff] %v132_v45  ;;  %v260_v45 = vld [vmem:[%s9546_s3 + $0x368] sm:$0xff] }
  0x30   :  { %135 = vst [vmem:[#allocation2 + $0x170] sm:$0xff] %v134_v46  ;;  %v262_v46 = vld [vmem:[%s9546_s3 + $0x370] sm:$0xff] }
  0x31   :  { %137 = vst [vmem:[#allocation2 + $0x178] sm:$0xff] %v136_v47  ;;  %v264_v47 = vld [vmem:[%s9546_s3 + $0x378] sm:$0xff] }
  0x32   :  { %139 = vst [vmem:[#allocation2 + $0x180] sm:$0xff] %v138_v48  ;;  %v266_v48 = vld [vmem:[%s9546_s3 + $0x380] sm:$0xff] }
  0x33   :  { %141 = vst [vmem:[#allocation2 + $0x188] sm:$0xff] %v140_v49  ;;  %v268_v49 = vld [vmem:[%s9546_s3 + $0x388] sm:$0xff] }
  0x34   :  { %143 = vst [vmem:[#allocation2 + $0x190] sm:$0xff] %v142_v50  ;;  %v270_v50 = vld [vmem:[%s9546_s3 + $0x390] sm:$0xff] }
  0x35   :  { %145 = vst [vmem:[#allocation2 + $0x198] sm:$0xff] %v144_v51  ;;  %v272_v51 = vld [vmem:[%s9546_s3 + $0x398] sm:$0xff] }
  0x36   :  { %147 = vst [vmem:[#allocation2 + $0x1a0] sm:$0xff] %v146_v52  ;;  %v274_v52 = vld [vmem:[%s9546_s3 + $0x3a0] sm:$0xff] }
  0x37   :  { %149 = vst [vmem:[#allocation2 + $0x1a8] sm:$0xff] %v148_v53  ;;  %v276_v53 = vld [vmem:[%s9546_s3 + $0x3a8] sm:$0xff] }
  0x38   :  { %151 = vst [vmem:[#allocation2 + $0x1b0] sm:$0xff] %v150_v54  ;;  %v278_v54 = vld [vmem:[%s9546_s3 + $0x3b0] sm:$0xff] }
  0x39   :  { %153 = vst [vmem:[#allocation2 + $0x1b8] sm:$0xff] %v152_v55  ;;  %v280_v55 = vld [vmem:[%s9546_s3 + $0x3b8] sm:$0xff] }
  0x3a   :  { %155 = vst [vmem:[#allocation2 + $0x1c0] sm:$0xff] %v154_v56  ;;  %v282_v56 = vld [vmem:[%s9546_s3 + $0x3c0] sm:$0xff] }
  0x3b   :  { %157 = vst [vmem:[#allocation2 + $0x1c8] sm:$0xff] %v156_v57  ;;  %v284_v57 = vld [vmem:[%s9546_s3 + $0x3c8] sm:$0xff] }
  0x3c   :  { %159 = vst [vmem:[#allocation2 + $0x1d0] sm:$0xff] %v158_v58  ;;  %v286_v58 = vld [vmem:[%s9546_s3 + $0x3d0] sm:$0xff] }
  0x3d   :  { %161 = vst [vmem:[#allocation2 + $0x1d8] sm:$0xff] %v160_v59  ;;  %v288_v59 = vld [vmem:[%s9546_s3 + $0x3d8] sm:$0xff] }
  0x3e   :  { %163 = vst [vmem:[#allocation2 + $0x1e0] sm:$0xff] %v162_v60  ;;  %v290_v60 = vld [vmem:[%s9546_s3 + $0x3e0] sm:$0xff] }
  0x3f   :  { %165 = vst [vmem:[#allocation2 + $0x1e8] sm:$0xff] %v164_v61  ;;  %v292_v61 = vld [vmem:[%s9546_s3 + $0x3e8] sm:$0xff] }
  0x40   :  { %167 = vst [vmem:[#allocation2 + $0x1f0] sm:$0xff] %v166_v62  ;;  %v294_v62 = vld [vmem:[%s9546_s3 + $0x3f0] sm:$0xff] }
  0x41   :  { %169 = vst [vmem:[#allocation2 + $0x1f8] sm:$0xff] %v168_v63  ;;  %v296_v63 = vld [vmem:[%s9546_s3 + $0x3f8] sm:$0xff] }
  0x42   :  { %171 = vst [vmem:[#allocation2 + $0x200] sm:$0xff] %v170_v0  ;;  %v298_v0 = vld [vmem:[%s9546_s3 + $0x400] sm:$0xff] }
  0x43   :  { %173 = vst [vmem:[#allocation2 + $0x208] sm:$0xff] %v172_v1  ;;  %v300_v1 = vld [vmem:[%s9546_s3 + $0x408] sm:$0xff] }
  0x44   :  { %175 = vst [vmem:[#allocation2 + $0x210] sm:$0xff] %v174_v2  ;;  %v302_v2 = vld [vmem:[%s9546_s3 + $0x410] sm:$0xff] }
  0x45   :  { %177 = vst [vmem:[#allocation2 + $0x218] sm:$0xff] %v176_v3  ;;  %v304_v3 = vld [vmem:[%s9546_s3 + $0x418] sm:$0xff] }
  0x46   :  { %179 = vst [vmem:[#allocation2 + $0x220] sm:$0xff] %v178_v4  ;;  %v306_v4 = vld [vmem:[%s9546_s3 + $0x420] sm:$0xff] }
  0x47   :  { %181 = vst [vmem:[#allocation2 + $0x228] sm:$0xff] %v180_v5  ;;  %v308_v5 = vld [vmem:[%s9546_s3 + $0x428] sm:$0xff] }
  0x48   :  { %183 = vst [vmem:[#allocation2 + $0x230] sm:$0xff] %v182_v6  ;;  %v310_v6 = vld [vmem:[%s9546_s3 + $0x430] sm:$0xff] }
  0x49   :  { %185 = vst [vmem:[#allocation2 + $0x238] sm:$0xff] %v184_v7  ;;  %v312_v7 = vld [vmem:[%s9546_s3 + $0x438] sm:$0xff] }
  0x4a   :  { %187 = vst [vmem:[#allocation2 + $0x240] sm:$0xff] %v186_v8  ;;  %v314_v8 = vld [vmem:[%s9546_s3 + $0x440] sm:$0xff] }
  0x4b   :  { %189 = vst [vmem:[#allocation2 + $0x248] sm:$0xff] %v188_v9  ;;  %v316_v9 = vld [vmem:[%s9546_s3 + $0x448] sm:$0xff] }
  0x4c   :  { %191 = vst [vmem:[#allocation2 + $0x250] sm:$0xff] %v190_v10  ;;  %v318_v10 = vld [vmem:[%s9546_s3 + $0x450] sm:$0xff] }
  0x4d   :  { %193 = vst [vmem:[#allocation2 + $0x258] sm:$0xff] %v192_v11  ;;  %v320_v11 = vld [vmem:[%s9546_s3 + $0x458] sm:$0xff] }
  0x4e   :  { %195 = vst [vmem:[#allocation2 + $0x260] sm:$0xff] %v194_v12  ;;  %v322_v12 = vld [vmem:[%s9546_s3 + $0x460] sm:$0xff] }
  0x4f   :  { %197 = vst [vmem:[#allocation2 + $0x268] sm:$0xff] %v196_v13  ;;  %v324_v13 = vld [vmem:[%s9546_s3 + $0x468] sm:$0xff] }
  0x50   :  { %199 = vst [vmem:[#allocation2 + $0x270] sm:$0xff] %v198_v14  ;;  %v326_v14 = vld [vmem:[%s9546_s3 + $0x470] sm:$0xff] }
  0x51   :  { %201 = vst [vmem:[#allocation2 + $0x278] sm:$0xff] %v200_v15  ;;  %v328_v15 = vld [vmem:[%s9546_s3 + $0x478] sm:$0xff] }
  0x52   :  { %203 = vst [vmem:[#allocation2 + $0x280] sm:$0xff] %v202_v16  ;;  %v330_v16 = vld [vmem:[%s9546_s3 + $0x480] sm:$0xff] }
  0x53   :  { %205 = vst [vmem:[#allocation2 + $0x288] sm:$0xff] %v204_v17  ;;  %v332_v17 = vld [vmem:[%s9546_s3 + $0x488] sm:$0xff] }
  0x54   :  { %207 = vst [vmem:[#allocation2 + $0x290] sm:$0xff] %v206_v18  ;;  %v334_v18 = vld [vmem:[%s9546_s3 + $0x490] sm:$0xff] }
  0x55   :  { %209 = vst [vmem:[#allocation2 + $0x298] sm:$0xff] %v208_v19  ;;  %v336_v19 = vld [vmem:[%s9546_s3 + $0x498] sm:$0xff] }
  0x56   :  { %211 = vst [vmem:[#allocation2 + $0x2a0] sm:$0xff] %v210_v20  ;;  %v338_v20 = vld [vmem:[%s9546_s3 + $0x4a0] sm:$0xff] }
  0x57   :  { %213 = vst [vmem:[#allocation2 + $0x2a8] sm:$0xff] %v212_v21  ;;  %v340_v21 = vld [vmem:[%s9546_s3 + $0x4a8] sm:$0xff] }
  0x58   :  { %215 = vst [vmem:[#allocation2 + $0x2b0] sm:$0xff] %v214_v22  ;;  %v342_v22 = vld [vmem:[%s9546_s3 + $0x4b0] sm:$0xff] }
  0x59   :  { %217 = vst [vmem:[#allocation2 + $0x2b8] sm:$0xff] %v216_v23  ;;  %v344_v23 = vld [vmem:[%s9546_s3 + $0x4b8] sm:$0xff] }
  0x5a   :  { %219 = vst [vmem:[#allocation2 + $0x2c0] sm:$0xff] %v218_v24  ;;  %v346_v24 = vld [vmem:[%s9546_s3 + $0x4c0] sm:$0xff] }
  0x5b   :  { %221 = vst [vmem:[#allocation2 + $0x2c8] sm:$0xff] %v220_v25  ;;  %v348_v25 = vld [vmem:[%s9546_s3 + $0x4c8] sm:$0xff] }
  0x5c   :  { %223 = vst [vmem:[#allocation2 + $0x2d0] sm:$0xff] %v222_v26  ;;  %v350_v26 = vld [vmem:[%s9546_s3 + $0x4d0] sm:$0xff] }
  0x5d   :  { %225 = vst [vmem:[#allocation2 + $0x2d8] sm:$0xff] %v224_v27  ;;  %v352_v27 = vld [vmem:[%s9546_s3 + $0x4d8] sm:$0xff] }
  0x5e   :  { %227 = vst [vmem:[#allocation2 + $0x2e0] sm:$0xff] %v226_v28  ;;  %v354_v28 = vld [vmem:[%s9546_s3 + $0x4e0] sm:$0xff] }
  0x5f   :  { %229 = vst [vmem:[#allocation2 + $0x2e8] sm:$0xff] %v228_v29  ;;  %v356_v29 = vld [vmem:[%s9546_s3 + $0x4e8] sm:$0xff] }
  0x60   :  { %231 = vst [vmem:[#allocation2 + $0x2f0] sm:$0xff] %v230_v30  ;;  %v358_v30 = vld [vmem:[%s9546_s3 + $0x4f0] sm:$0xff] }
  0x61   :  { %233 = vst [vmem:[#allocation2 + $0x2f8] sm:$0xff] %v232_v31  ;;  %v360_v31 = vld [vmem:[%s9546_s3 + $0x4f8] sm:$0xff] }
  0x62   :  { %235 = vst [vmem:[#allocation2 + $0x300] sm:$0xff] %v234_v32  ;;  %v362_v32 = vld [vmem:[%s9546_s3 + $0x500] sm:$0xff] }
  0x63   :  { %237 = vst [vmem:[#allocation2 + $0x308] sm:$0xff] %v236_v33  ;;  %v364_v33 = vld [vmem:[%s9546_s3 + $0x508] sm:$0xff] }
  0x64   :  { %239 = vst [vmem:[#allocation2 + $0x310] sm:$0xff] %v238_v34  ;;  %v366_v34 = vld [vmem:[%s9546_s3 + $0x510] sm:$0xff] }
  0x65   :  { %241 = vst [vmem:[#allocation2 + $0x318] sm:$0xff] %v240_v35  ;;  %v368_v35 = vld [vmem:[%s9546_s3 + $0x518] sm:$0xff] }
  0x66   :  { %243 = vst [vmem:[#allocation2 + $0x320] sm:$0xff] %v242_v36  ;;  %v370_v36 = vld [vmem:[%s9546_s3 + $0x520] sm:$0xff] }
  0x67   :  { %245 = vst [vmem:[#allocation2 + $0x328] sm:$0xff] %v244_v37  ;;  %v372_v37 = vld [vmem:[%s9546_s3 + $0x528] sm:$0xff] }
  0x68   :  { %247 = vst [vmem:[#allocation2 + $0x330] sm:$0xff] %v246_v38  ;;  %v374_v38 = vld [vmem:[%s9546_s3 + $0x530] sm:$0xff] }
  0x69   :  { %249 = vst [vmem:[#allocation2 + $0x338] sm:$0xff] %v248_v39  ;;  %v376_v39 = vld [vmem:[%s9546_s3 + $0x538] sm:$0xff] }
  0x6a   :  { %251 = vst [vmem:[#allocation2 + $0x340] sm:$0xff] %v250_v40  ;;  %v378_v40 = vld [vmem:[%s9546_s3 + $0x540] sm:$0xff] }
  0x6b   :  { %253 = vst [vmem:[#allocation2 + $0x348] sm:$0xff] %v252_v41  ;;  %v380_v41 = vld [vmem:[%s9546_s3 + $0x548] sm:$0xff] }
  0x6c   :  { %255 = vst [vmem:[#allocation2 + $0x350] sm:$0xff] %v254_v42  ;;  %v382_v42 = vld [vmem:[%s9546_s3 + $0x550] sm:$0xff] }
  0x6d   :  { %257 = vst [vmem:[#allocation2 + $0x358] sm:$0xff] %v256_v43  ;;  %v384_v43 = vld [vmem:[%s9546_s3 + $0x558] sm:$0xff] }
  0x6e   :  { %259 = vst [vmem:[#allocation2 + $0x360] sm:$0xff] %v258_v44  ;;  %v386_v44 = vld [vmem:[%s9546_s3 + $0x560] sm:$0xff] }
  0x6f   :  { %261 = vst [vmem:[#allocation2 + $0x368] sm:$0xff] %v260_v45  ;;  %v388_v45 = vld [vmem:[%s9546_s3 + $0x568] sm:$0xff] }
  0x70   :  { %263 = vst [vmem:[#allocation2 + $0x370] sm:$0xff] %v262_v46  ;;  %v390_v46 = vld [vmem:[%s9546_s3 + $0x570] sm:$0xff] }
  0x71   :  { %265 = vst [vmem:[#allocation2 + $0x378] sm:$0xff] %v264_v47  ;;  %v392_v47 = vld [vmem:[%s9546_s3 + $0x578] sm:$0xff] }
  0x72   :  { %267 = vst [vmem:[#allocation2 + $0x380] sm:$0xff] %v266_v48  ;;  %v394_v48 = vld [vmem:[%s9546_s3 + $0x580] sm:$0xff] }
  0x73   :  { %269 = vst [vmem:[#allocation2 + $0x388] sm:$0xff] %v268_v49  ;;  %v396_v49 = vld [vmem:[%s9546_s3 + $0x588] sm:$0xff] }
  0x74   :  { %271 = vst [vmem:[#allocation2 + $0x390] sm:$0xff] %v270_v50  ;;  %v398_v50 = vld [vmem:[%s9546_s3 + $0x590] sm:$0xff] }
  0x75   :  { %273 = vst [vmem:[#allocation2 + $0x398] sm:$0xff] %v272_v51  ;;  %v400_v51 = vld [vmem:[%s9546_s3 + $0x598] sm:$0xff] }
  0x76   :  { %275 = vst [vmem:[#allocation2 + $0x3a0] sm:$0xff] %v274_v52  ;;  %v402_v52 = vld [vmem:[%s9546_s3 + $0x5a0] sm:$0xff] }
  0x77   :  { %277 = vst [vmem:[#allocation2 + $0x3a8] sm:$0xff] %v276_v53  ;;  %v404_v53 = vld [vmem:[%s9546_s3 + $0x5a8] sm:$0xff] }
  0x78   :  { %279 = vst [vmem:[#allocation2 + $0x3b0] sm:$0xff] %v278_v54  ;;  %v406_v54 = vld [vmem:[%s9546_s3 + $0x5b0] sm:$0xff] }
  0x79   :  { %281 = vst [vmem:[#allocation2 + $0x3b8] sm:$0xff] %v280_v55  ;;  %v408_v55 = vld [vmem:[%s9546_s3 + $0x5b8] sm:$0xff] }
  0x7a   :  { %283 = vst [vmem:[#allocation2 + $0x3c0] sm:$0xff] %v282_v56  ;;  %v410_v56 = vld [vmem:[%s9546_s3 + $0x5c0] sm:$0xff] }
  0x7b   :  { %285 = vst [vmem:[#allocation2 + $0x3c8] sm:$0xff] %v284_v57  ;;  %v412_v57 = vld [vmem:[%s9546_s3 + $0x5c8] sm:$0xff] }
  0x7c   :  { %287 = vst [vmem:[#allocation2 + $0x3d0] sm:$0xff] %v286_v58  ;;  %v414_v58 = vld [vmem:[%s9546_s3 + $0x5d0] sm:$0xff] }
  0x7d   :  { %289 = vst [vmem:[#allocation2 + $0x3d8] sm:$0xff] %v288_v59  ;;  %v416_v59 = vld [vmem:[%s9546_s3 + $0x5d8] sm:$0xff] }
  0x7e   :  { %291 = vst [vmem:[#allocation2 + $0x3e0] sm:$0xff] %v290_v60  ;;  %v418_v60 = vld [vmem:[%s9546_s3 + $0x5e0] sm:$0xff] }
  0x7f   :  { %293 = vst [vmem:[#allocation2 + $0x3e8] sm:$0xff] %v292_v61  ;;  %v420_v61 = vld [vmem:[%s9546_s3 + $0x5e8] sm:$0xff] }
  0x80   :  { %295 = vst [vmem:[#allocation2 + $0x3f0] sm:$0xff] %v294_v62  ;;  %v422_v62 = vld [vmem:[%s9546_s3 + $0x5f0] sm:$0xff] }
  0x81   :  { %297 = vst [vmem:[#allocation2 + $0x3f8] sm:$0xff] %v296_v63  ;;  %v424_v63 = vld [vmem:[%s9546_s3 + $0x5f8] sm:$0xff] }
  0x82   :  { %299 = vst [vmem:[#allocation2 + $0x400] sm:$0xff] %v298_v0  ;;  %v426_v0 = vld [vmem:[%s9546_s3 + $0x600] sm:$0xff] }
  0x83   :  { %301 = vst [vmem:[#allocation2 + $0x408] sm:$0xff] %v300_v1  ;;  %v428_v1 = vld [vmem:[%s9546_s3 + $0x608] sm:$0xff] }
  0x84   :  { %303 = vst [vmem:[#allocation2 + $0x410] sm:$0xff] %v302_v2  ;;  %v430_v2 = vld [vmem:[%s9546_s3 + $0x610] sm:$0xff] }
  0x85   :  { %305 = vst [vmem:[#allocation2 + $0x418] sm:$0xff] %v304_v3  ;;  %v432_v3 = vld [vmem:[%s9546_s3 + $0x618] sm:$0xff] }
  0x86   :  { %307 = vst [vmem:[#allocation2 + $0x420] sm:$0xff] %v306_v4  ;;  %v434_v4 = vld [vmem:[%s9546_s3 + $0x620] sm:$0xff] }
  0x87   :  { %309 = vst [vmem:[#allocation2 + $0x428] sm:$0xff] %v308_v5  ;;  %v436_v5 = vld [vmem:[%s9546_s3 + $0x628] sm:$0xff] }
  0x88   :  { %311 = vst [vmem:[#allocation2 + $0x430] sm:$0xff] %v310_v6  ;;  %v438_v6 = vld [vmem:[%s9546_s3 + $0x630] sm:$0xff] }
  0x89   :  { %313 = vst [vmem:[#allocation2 + $0x438] sm:$0xff] %v312_v7  ;;  %v440_v7 = vld [vmem:[%s9546_s3 + $0x638] sm:$0xff] }
  0x8a   :  { %315 = vst [vmem:[#allocation2 + $0x440] sm:$0xff] %v314_v8  ;;  %v442_v8 = vld [vmem:[%s9546_s3 + $0x640] sm:$0xff] }
  0x8b   :  { %317 = vst [vmem:[#allocation2 + $0x448] sm:$0xff] %v316_v9  ;;  %v444_v9 = vld [vmem:[%s9546_s3 + $0x648] sm:$0xff] }
  0x8c   :  { %319 = vst [vmem:[#allocation2 + $0x450] sm:$0xff] %v318_v10  ;;  %v446_v10 = vld [vmem:[%s9546_s3 + $0x650] sm:$0xff] }
  0x8d   :  { %321 = vst [vmem:[#allocation2 + $0x458] sm:$0xff] %v320_v11  ;;  %v448_v11 = vld [vmem:[%s9546_s3 + $0x658] sm:$0xff] }
  0x8e   :  { %323 = vst [vmem:[#allocation2 + $0x460] sm:$0xff] %v322_v12  ;;  %v450_v12 = vld [vmem:[%s9546_s3 + $0x660] sm:$0xff] }
  0x8f   :  { %325 = vst [vmem:[#allocation2 + $0x468] sm:$0xff] %v324_v13  ;;  %v452_v13 = vld [vmem:[%s9546_s3 + $0x668] sm:$0xff] }
  0x90   :  { %327 = vst [vmem:[#allocation2 + $0x470] sm:$0xff] %v326_v14  ;;  %v454_v14 = vld [vmem:[%s9546_s3 + $0x670] sm:$0xff] }
  0x91   :  { %329 = vst [vmem:[#allocation2 + $0x478] sm:$0xff] %v328_v15  ;;  %v456_v15 = vld [vmem:[%s9546_s3 + $0x678] sm:$0xff] }
  0x92   :  { %331 = vst [vmem:[#allocation2 + $0x480] sm:$0xff] %v330_v16  ;;  %v458_v16 = vld [vmem:[%s9546_s3 + $0x680] sm:$0xff] }
  0x93   :  { %333 = vst [vmem:[#allocation2 + $0x488] sm:$0xff] %v332_v17  ;;  %v460_v17 = vld [vmem:[%s9546_s3 + $0x688] sm:$0xff] }
  0x94   :  { %335 = vst [vmem:[#allocation2 + $0x490] sm:$0xff] %v334_v18  ;;  %v462_v18 = vld [vmem:[%s9546_s3 + $0x690] sm:$0xff] }
  0x95   :  { %337 = vst [vmem:[#allocation2 + $0x498] sm:$0xff] %v336_v19  ;;  %v464_v19 = vld [vmem:[%s9546_s3 + $0x698] sm:$0xff] }
  0x96   :  { %339 = vst [vmem:[#allocation2 + $0x4a0] sm:$0xff] %v338_v20  ;;  %v466_v20 = vld [vmem:[%s9546_s3 + $0x6a0] sm:$0xff] }
  0x97   :  { %341 = vst [vmem:[#allocation2 + $0x4a8] sm:$0xff] %v340_v21  ;;  %v468_v21 = vld [vmem:[%s9546_s3 + $0x6a8] sm:$0xff] }
  0x98   :  { %343 = vst [vmem:[#allocation2 + $0x4b0] sm:$0xff] %v342_v22  ;;  %v470_v22 = vld [vmem:[%s9546_s3 + $0x6b0] sm:$0xff] }
  0x99   :  { %345 = vst [vmem:[#allocation2 + $0x4b8] sm:$0xff] %v344_v23  ;;  %v472_v23 = vld [vmem:[%s9546_s3 + $0x6b8] sm:$0xff] }
  0x9a   :  { %347 = vst [vmem:[#allocation2 + $0x4c0] sm:$0xff] %v346_v24  ;;  %v474_v24 = vld [vmem:[%s9546_s3 + $0x6c0] sm:$0xff] }
  0x9b   :  { %349 = vst [vmem:[#allocation2 + $0x4c8] sm:$0xff] %v348_v25  ;;  %v476_v25 = vld [vmem:[%s9546_s3 + $0x6c8] sm:$0xff] }
  0x9c   :  { %351 = vst [vmem:[#allocation2 + $0x4d0] sm:$0xff] %v350_v26  ;;  %v478_v26 = vld [vmem:[%s9546_s3 + $0x6d0] sm:$0xff] }
  0x9d   :  { %353 = vst [vmem:[#allocation2 + $0x4d8] sm:$0xff] %v352_v27  ;;  %v480_v27 = vld [vmem:[%s9546_s3 + $0x6d8] sm:$0xff] }
  0x9e   :  { %355 = vst [vmem:[#allocation2 + $0x4e0] sm:$0xff] %v354_v28  ;;  %v482_v28 = vld [vmem:[%s9546_s3 + $0x6e0] sm:$0xff] }
  0x9f   :  { %357 = vst [vmem:[#allocation2 + $0x4e8] sm:$0xff] %v356_v29  ;;  %v484_v29 = vld [vmem:[%s9546_s3 + $0x6e8] sm:$0xff] }
  0xa0   :  { %359 = vst [vmem:[#allocation2 + $0x4f0] sm:$0xff] %v358_v30  ;;  %v486_v30 = vld [vmem:[%s9546_s3 + $0x6f0] sm:$0xff] }
  0xa1   :  { %361 = vst [vmem:[#allocation2 + $0x4f8] sm:$0xff] %v360_v31  ;;  %v488_v31 = vld [vmem:[%s9546_s3 + $0x6f8] sm:$0xff] }
  0xa2   :  { %363 = vst [vmem:[#allocation2 + $0x500] sm:$0xff] %v362_v32  ;;  %v490_v32 = vld [vmem:[%s9546_s3 + $0x700] sm:$0xff] }
  0xa3   :  { %365 = vst [vmem:[#allocation2 + $0x508] sm:$0xff] %v364_v33  ;;  %v492_v33 = vld [vmem:[%s9546_s3 + $0x708] sm:$0xff] }
  0xa4   :  { %367 = vst [vmem:[#allocation2 + $0x510] sm:$0xff] %v366_v34  ;;  %v494_v34 = vld [vmem:[%s9546_s3 + $0x710] sm:$0xff] }
  0xa5   :  { %369 = vst [vmem:[#allocation2 + $0x518] sm:$0xff] %v368_v35  ;;  %v496_v35 = vld [vmem:[%s9546_s3 + $0x718] sm:$0xff] }
  0xa6   :  { %371 = vst [vmem:[#allocation2 + $0x520] sm:$0xff] %v370_v36  ;;  %v498_v36 = vld [vmem:[%s9546_s3 + $0x720] sm:$0xff] }
  0xa7   :  { %373 = vst [vmem:[#allocation2 + $0x528] sm:$0xff] %v372_v37  ;;  %v500_v37 = vld [vmem:[%s9546_s3 + $0x728] sm:$0xff] }
  0xa8   :  { %375 = vst [vmem:[#allocation2 + $0x530] sm:$0xff] %v374_v38  ;;  %v502_v38 = vld [vmem:[%s9546_s3 + $0x730] sm:$0xff] }
  0xa9   :  { %377 = vst [vmem:[#allocation2 + $0x538] sm:$0xff] %v376_v39  ;;  %v504_v39 = vld [vmem:[%s9546_s3 + $0x738] sm:$0xff] }
  0xaa   :  { %379 = vst [vmem:[#allocation2 + $0x540] sm:$0xff] %v378_v40  ;;  %v506_v40 = vld [vmem:[%s9546_s3 + $0x740] sm:$0xff] }
  0xab   :  { %381 = vst [vmem:[#allocation2 + $0x548] sm:$0xff] %v380_v41  ;;  %v508_v41 = vld [vmem:[%s9546_s3 + $0x748] sm:$0xff] }
  0xac   :  { %383 = vst [vmem:[#allocation2 + $0x550] sm:$0xff] %v382_v42  ;;  %v510_v42 = vld [vmem:[%s9546_s3 + $0x750] sm:$0xff] }
  0xad   :  { %385 = vst [vmem:[#allocation2 + $0x558] sm:$0xff] %v384_v43  ;;  %v512_v43 = vld [vmem:[%s9546_s3 + $0x758] sm:$0xff] }
  0xae   :  { %387 = vst [vmem:[#allocation2 + $0x560] sm:$0xff] %v386_v44  ;;  %v514_v44 = vld [vmem:[%s9546_s3 + $0x760] sm:$0xff] }
  0xaf   :  { %389 = vst [vmem:[#allocation2 + $0x568] sm:$0xff] %v388_v45  ;;  %v516_v45 = vld [vmem:[%s9546_s3 + $0x768] sm:$0xff] }
  0xb0   :  { %391 = vst [vmem:[#allocation2 + $0x570] sm:$0xff] %v390_v46  ;;  %v518_v46 = vld [vmem:[%s9546_s3 + $0x770] sm:$0xff] }
  0xb1   :  { %393 = vst [vmem:[#allocation2 + $0x578] sm:$0xff] %v392_v47  ;;  %v520_v47 = vld [vmem:[%s9546_s3 + $0x778] sm:$0xff] }
  0xb2   :  { %395 = vst [vmem:[#allocation2 + $0x580] sm:$0xff] %v394_v48  ;;  %v522_v48 = vld [vmem:[%s9546_s3 + $0x780] sm:$0xff] }
  0xb3   :  { %397 = vst [vmem:[#allocation2 + $0x588] sm:$0xff] %v396_v49  ;;  %v524_v49 = vld [vmem:[%s9546_s3 + $0x788] sm:$0xff] }
  0xb4   :  { %399 = vst [vmem:[#allocation2 + $0x590] sm:$0xff] %v398_v50  ;;  %v526_v50 = vld [vmem:[%s9546_s3 + $0x790] sm:$0xff] }
  0xb5   :  { %401 = vst [vmem:[#allocation2 + $0x598] sm:$0xff] %v400_v51  ;;  %v528_v51 = vld [vmem:[%s9546_s3 + $0x798] sm:$0xff] }
  0xb6   :  { %403 = vst [vmem:[#allocation2 + $0x5a0] sm:$0xff] %v402_v52  ;;  %v530_v52 = vld [vmem:[%s9546_s3 + $0x7a0] sm:$0xff] }
  0xb7   :  { %405 = vst [vmem:[#allocation2 + $0x5a8] sm:$0xff] %v404_v53  ;;  %v532_v53 = vld [vmem:[%s9546_s3 + $0x7a8] sm:$0xff] }
  0xb8   :  { %407 = vst [vmem:[#allocation2 + $0x5b0] sm:$0xff] %v406_v54  ;;  %v534_v54 = vld [vmem:[%s9546_s3 + $0x7b0] sm:$0xff] }
  0xb9   :  { %409 = vst [vmem:[#allocation2 + $0x5b8] sm:$0xff] %v408_v55  ;;  %v536_v55 = vld [vmem:[%s9546_s3 + $0x7b8] sm:$0xff] }
  0xba   :  { %411 = vst [vmem:[#allocation2 + $0x5c0] sm:$0xff] %v410_v56  ;;  %v538_v56 = vld [vmem:[%s9546_s3 + $0x7c0] sm:$0xff] }
  0xbb   :  { %413 = vst [vmem:[#allocation2 + $0x5c8] sm:$0xff] %v412_v57  ;;  %v540_v57 = vld [vmem:[%s9546_s3 + $0x7c8] sm:$0xff] }
  0xbc   :  { %415 = vst [vmem:[#allocation2 + $0x5d0] sm:$0xff] %v414_v58  ;;  %v542_v58 = vld [vmem:[%s9546_s3 + $0x7d0] sm:$0xff] }
  0xbd   :  { %417 = vst [vmem:[#allocation2 + $0x5d8] sm:$0xff] %v416_v59  ;;  %v544_v59 = vld [vmem:[%s9546_s3 + $0x7d8] sm:$0xff] }
  0xbe   :  { %419 = vst [vmem:[#allocation2 + $0x5e0] sm:$0xff] %v418_v60  ;;  %v546_v60 = vld [vmem:[%s9546_s3 + $0x7e0] sm:$0xff] }
  0xbf   :  { %421 = vst [vmem:[#allocation2 + $0x5e8] sm:$0xff] %v420_v61  ;;  %v548_v61 = vld [vmem:[%s9546_s3 + $0x7e8] sm:$0xff] }
  0xc0   :  { %423 = vst [vmem:[#allocation2 + $0x5f0] sm:$0xff] %v422_v62  ;;  %v550_v62 = vld [vmem:[%s9546_s3 + $0x7f0] sm:$0xff] }
  0xc1   :  { %425 = vst [vmem:[#allocation2 + $0x5f8] sm:$0xff] %v424_v63  ;;  %v552_v63 = vld [vmem:[%s9546_s3 + $0x7f8] sm:$0xff] }
  0xc2   :  { %427 = vst [vmem:[#allocation2 + $0x600] sm:$0xff] %v426_v0  ;;  %v554_v0 = vld [vmem:[%s9546_s3 + $0x800] sm:$0xff] }
  0xc3   :  { %429 = vst [vmem:[#allocation2 + $0x608] sm:$0xff] %v428_v1  ;;  %v556_v1 = vld [vmem:[%s9546_s3 + $0x808] sm:$0xff] }
  0xc4   :  { %431 = vst [vmem:[#allocation2 + $0x610] sm:$0xff] %v430_v2  ;;  %v558_v2 = vld [vmem:[%s9546_s3 + $0x810] sm:$0xff] }
  0xc5   :  { %433 = vst [vmem:[#allocation2 + $0x618] sm:$0xff] %v432_v3  ;;  %v560_v3 = vld [vmem:[%s9546_s3 + $0x818] sm:$0xff] }
  0xc6   :  { %435 = vst [vmem:[#allocation2 + $0x620] sm:$0xff] %v434_v4  ;;  %v562_v4 = vld [vmem:[%s9546_s3 + $0x820] sm:$0xff] }
  0xc7   :  { %437 = vst [vmem:[#allocation2 + $0x628] sm:$0xff] %v436_v5  ;;  %v564_v5 = vld [vmem:[%s9546_s3 + $0x828] sm:$0xff] }
  0xc8   :  { %439 = vst [vmem:[#allocation2 + $0x630] sm:$0xff] %v438_v6  ;;  %v566_v6 = vld [vmem:[%s9546_s3 + $0x830] sm:$0xff] }
  0xc9   :  { %441 = vst [vmem:[#allocation2 + $0x638] sm:$0xff] %v440_v7  ;;  %v568_v7 = vld [vmem:[%s9546_s3 + $0x838] sm:$0xff] }
  0xca   :  { %443 = vst [vmem:[#allocation2 + $0x640] sm:$0xff] %v442_v8  ;;  %v570_v8 = vld [vmem:[%s9546_s3 + $0x840] sm:$0xff] }
  0xcb   :  { %445 = vst [vmem:[#allocation2 + $0x648] sm:$0xff] %v444_v9  ;;  %v572_v9 = vld [vmem:[%s9546_s3 + $0x848] sm:$0xff] }
  0xcc   :  { %447 = vst [vmem:[#allocation2 + $0x650] sm:$0xff] %v446_v10  ;;  %v574_v10 = vld [vmem:[%s9546_s3 + $0x850] sm:$0xff] }
  0xcd   :  { %449 = vst [vmem:[#allocation2 + $0x658] sm:$0xff] %v448_v11  ;;  %v576_v11 = vld [vmem:[%s9546_s3 + $0x858] sm:$0xff] }
  0xce   :  { %451 = vst [vmem:[#allocation2 + $0x660] sm:$0xff] %v450_v12  ;;  %v578_v12 = vld [vmem:[%s9546_s3 + $0x860] sm:$0xff] }
  0xcf   :  { %453 = vst [vmem:[#allocation2 + $0x668] sm:$0xff] %v452_v13  ;;  %v580_v13 = vld [vmem:[%s9546_s3 + $0x868] sm:$0xff] }
  0xd0   :  { %455 = vst [vmem:[#allocation2 + $0x670] sm:$0xff] %v454_v14  ;;  %v582_v14 = vld [vmem:[%s9546_s3 + $0x870] sm:$0xff] }
  0xd1   :  { %457 = vst [vmem:[#allocation2 + $0x678] sm:$0xff] %v456_v15  ;;  %v584_v15 = vld [vmem:[%s9546_s3 + $0x878] sm:$0xff] }
  0xd2   :  { %459 = vst [vmem:[#allocation2 + $0x680] sm:$0xff] %v458_v16  ;;  %v586_v16 = vld [vmem:[%s9546_s3 + $0x880] sm:$0xff] }
  0xd3   :  { %461 = vst [vmem:[#allocation2 + $0x688] sm:$0xff] %v460_v17  ;;  %v588_v17 = vld [vmem:[%s9546_s3 + $0x888] sm:$0xff] }
  0xd4   :  { %463 = vst [vmem:[#allocation2 + $0x690] sm:$0xff] %v462_v18  ;;  %v590_v18 = vld [vmem:[%s9546_s3 + $0x890] sm:$0xff] }
  0xd5   :  { %465 = vst [vmem:[#allocation2 + $0x698] sm:$0xff] %v464_v19  ;;  %v592_v19 = vld [vmem:[%s9546_s3 + $0x898] sm:$0xff] }
  0xd6   :  { %467 = vst [vmem:[#allocation2 + $0x6a0] sm:$0xff] %v466_v20  ;;  %v594_v20 = vld [vmem:[%s9546_s3 + $0x8a0] sm:$0xff] }
  0xd7   :  { %469 = vst [vmem:[#allocation2 + $0x6a8] sm:$0xff] %v468_v21  ;;  %v596_v21 = vld [vmem:[%s9546_s3 + $0x8a8] sm:$0xff] }
  0xd8   :  { %471 = vst [vmem:[#allocation2 + $0x6b0] sm:$0xff] %v470_v22  ;;  %v598_v22 = vld [vmem:[%s9546_s3 + $0x8b0] sm:$0xff] }
  0xd9   :  { %473 = vst [vmem:[#allocation2 + $0x6b8] sm:$0xff] %v472_v23  ;;  %v600_v23 = vld [vmem:[%s9546_s3 + $0x8b8] sm:$0xff] }
  0xda   :  { %475 = vst [vmem:[#allocation2 + $0x6c0] sm:$0xff] %v474_v24  ;;  %v602_v24 = vld [vmem:[%s9546_s3 + $0x8c0] sm:$0xff] }
  0xdb   :  { %477 = vst [vmem:[#allocation2 + $0x6c8] sm:$0xff] %v476_v25  ;;  %v604_v25 = vld [vmem:[%s9546_s3 + $0x8c8] sm:$0xff] }
  0xdc   :  { %479 = vst [vmem:[#allocation2 + $0x6d0] sm:$0xff] %v478_v26  ;;  %v606_v26 = vld [vmem:[%s9546_s3 + $0x8d0] sm:$0xff] }
  0xdd   :  { %481 = vst [vmem:[#allocation2 + $0x6d8] sm:$0xff] %v480_v27  ;;  %v608_v27 = vld [vmem:[%s9546_s3 + $0x8d8] sm:$0xff] }
  0xde   :  { %483 = vst [vmem:[#allocation2 + $0x6e0] sm:$0xff] %v482_v28  ;;  %v610_v28 = vld [vmem:[%s9546_s3 + $0x8e0] sm:$0xff] }
  0xdf   :  { %485 = vst [vmem:[#allocation2 + $0x6e8] sm:$0xff] %v484_v29  ;;  %v612_v29 = vld [vmem:[%s9546_s3 + $0x8e8] sm:$0xff] }
  0xe0   :  { %487 = vst [vmem:[#allocation2 + $0x6f0] sm:$0xff] %v486_v30  ;;  %v614_v30 = vld [vmem:[%s9546_s3 + $0x8f0] sm:$0xff] }
  0xe1   :  { %489 = vst [vmem:[#allocation2 + $0x6f8] sm:$0xff] %v488_v31  ;;  %v616_v31 = vld [vmem:[%s9546_s3 + $0x8f8] sm:$0xff] }
  0xe2   :  { %491 = vst [vmem:[#allocation2 + $0x700] sm:$0xff] %v490_v32  ;;  %v618_v32 = vld [vmem:[%s9546_s3 + $0x900] sm:$0xff] }
  0xe3   :  { %493 = vst [vmem:[#allocation2 + $0x708] sm:$0xff] %v492_v33  ;;  %v620_v33 = vld [vmem:[%s9546_s3 + $0x908] sm:$0xff] }
  0xe4   :  { %495 = vst [vmem:[#allocation2 + $0x710] sm:$0xff] %v494_v34  ;;  %v622_v34 = vld [vmem:[%s9546_s3 + $0x910] sm:$0xff] }
  0xe5   :  { %497 = vst [vmem:[#allocation2 + $0x718] sm:$0xff] %v496_v35  ;;  %v624_v35 = vld [vmem:[%s9546_s3 + $0x918] sm:$0xff] }
  0xe6   :  { %499 = vst [vmem:[#allocation2 + $0x720] sm:$0xff] %v498_v36  ;;  %v626_v36 = vld [vmem:[%s9546_s3 + $0x920] sm:$0xff] }
  0xe7   :  { %501 = vst [vmem:[#allocation2 + $0x728] sm:$0xff] %v500_v37  ;;  %v628_v37 = vld [vmem:[%s9546_s3 + $0x928] sm:$0xff] }
  0xe8   :  { %503 = vst [vmem:[#allocation2 + $0x730] sm:$0xff] %v502_v38  ;;  %v630_v38 = vld [vmem:[%s9546_s3 + $0x930] sm:$0xff] }
  0xe9   :  { %505 = vst [vmem:[#allocation2 + $0x738] sm:$0xff] %v504_v39  ;;  %v632_v39 = vld [vmem:[%s9546_s3 + $0x938] sm:$0xff] }
  0xea   :  { %507 = vst [vmem:[#allocation2 + $0x740] sm:$0xff] %v506_v40  ;;  %v634_v40 = vld [vmem:[%s9546_s3 + $0x940] sm:$0xff] }
  0xeb   :  { %509 = vst [vmem:[#allocation2 + $0x748] sm:$0xff] %v508_v41  ;;  %v636_v41 = vld [vmem:[%s9546_s3 + $0x948] sm:$0xff] }
  0xec   :  { %511 = vst [vmem:[#allocation2 + $0x750] sm:$0xff] %v510_v42  ;;  %v638_v42 = vld [vmem:[%s9546_s3 + $0x950] sm:$0xff] }
  0xed   :  { %513 = vst [vmem:[#allocation2 + $0x758] sm:$0xff] %v512_v43  ;;  %v640_v43 = vld [vmem:[%s9546_s3 + $0x958] sm:$0xff] }
  0xee   :  { %515 = vst [vmem:[#allocation2 + $0x760] sm:$0xff] %v514_v44  ;;  %v642_v44 = vld [vmem:[%s9546_s3 + $0x960] sm:$0xff] }
  0xef   :  { %517 = vst [vmem:[#allocation2 + $0x768] sm:$0xff] %v516_v45  ;;  %v644_v45 = vld [vmem:[%s9546_s3 + $0x968] sm:$0xff] }
  0xf0   :  { %519 = vst [vmem:[#allocation2 + $0x770] sm:$0xff] %v518_v46  ;;  %v646_v46 = vld [vmem:[%s9546_s3 + $0x970] sm:$0xff] }
  0xf1   :  { %521 = vst [vmem:[#allocation2 + $0x778] sm:$0xff] %v520_v47  ;;  %v648_v47 = vld [vmem:[%s9546_s3 + $0x978] sm:$0xff] }
  0xf2   :  { %523 = vst [vmem:[#allocation2 + $0x780] sm:$0xff] %v522_v48  ;;  %v650_v48 = vld [vmem:[%s9546_s3 + $0x980] sm:$0xff] }
  0xf3   :  { %525 = vst [vmem:[#allocation2 + $0x788] sm:$0xff] %v524_v49  ;;  %v652_v49 = vld [vmem:[%s9546_s3 + $0x988] sm:$0xff] }
  0xf4   :  { %527 = vst [vmem:[#allocation2 + $0x790] sm:$0xff] %v526_v50  ;;  %v654_v50 = vld [vmem:[%s9546_s3 + $0x990] sm:$0xff] }
  0xf5   :  { %529 = vst [vmem:[#allocation2 + $0x798] sm:$0xff] %v528_v51  ;;  %v656_v51 = vld [vmem:[%s9546_s3 + $0x998] sm:$0xff] }
  0xf6   :  { %531 = vst [vmem:[#allocation2 + $0x7a0] sm:$0xff] %v530_v52  ;;  %v658_v52 = vld [vmem:[%s9546_s3 + $0x9a0] sm:$0xff] }
  0xf7   :  { %533 = vst [vmem:[#allocation2 + $0x7a8] sm:$0xff] %v532_v53  ;;  %v660_v53 = vld [vmem:[%s9546_s3 + $0x9a8] sm:$0xff] }
  0xf8   :  { %535 = vst [vmem:[#allocation2 + $0x7b0] sm:$0xff] %v534_v54  ;;  %v662_v54 = vld [vmem:[%s9546_s3 + $0x9b0] sm:$0xff] }
  0xf9   :  { %537 = vst [vmem:[#allocation2 + $0x7b8] sm:$0xff] %v536_v55  ;;  %v664_v55 = vld [vmem:[%s9546_s3 + $0x9b8] sm:$0xff] }
  0xfa   :  { %539 = vst [vmem:[#allocation2 + $0x7c0] sm:$0xff] %v538_v56  ;;  %v666_v56 = vld [vmem:[%s9546_s3 + $0x9c0] sm:$0xff] }
  0xfb   :  { %541 = vst [vmem:[#allocation2 + $0x7c8] sm:$0xff] %v540_v57  ;;  %v668_v57 = vld [vmem:[%s9546_s3 + $0x9c8] sm:$0xff] }
  0xfc   :  { %543 = vst [vmem:[#allocation2 + $0x7d0] sm:$0xff] %v542_v58  ;;  %v670_v58 = vld [vmem:[%s9546_s3 + $0x9d0] sm:$0xff] }
  0xfd   :  { %545 = vst [vmem:[#allocation2 + $0x7d8] sm:$0xff] %v544_v59  ;;  %v672_v59 = vld [vmem:[%s9546_s3 + $0x9d8] sm:$0xff] }
  0xfe   :  { %547 = vst [vmem:[#allocation2 + $0x7e0] sm:$0xff] %v546_v60  ;;  %v674_v60 = vld [vmem:[%s9546_s3 + $0x9e0] sm:$0xff] }
  0xff   :  { %549 = vst [vmem:[#allocation2 + $0x7e8] sm:$0xff] %v548_v61  ;;  %v676_v61 = vld [vmem:[%s9546_s3 + $0x9e8] sm:$0xff] }
 0x100   :  { %551 = vst [vmem:[#allocation2 + $0x7f0] sm:$0xff] %v550_v62  ;;  %v678_v62 = vld [vmem:[%s9546_s3 + $0x9f0] sm:$0xff] }
 0x101   :  { %553 = vst [vmem:[#allocation2 + $0x7f8] sm:$0xff] %v552_v63  ;;  %v680_v63 = vld [vmem:[%s9546_s3 + $0x9f8] sm:$0xff] }
 0x102   :  { %555 = vst [vmem:[#allocation2 + $0x800] sm:$0xff] %v554_v0  ;;  %v682_v0 = vld [vmem:[%s9546_s3 + $0xa00] sm:$0xff] }
 0x103   :  { %557 = vst [vmem:[#allocation2 + $0x808] sm:$0xff] %v556_v1  ;;  %v684_v1 = vld [vmem:[%s9546_s3 + $0xa08] sm:$0xff] }
 0x104   :  { %559 = vst [vmem:[#allocation2 + $0x810] sm:$0xff] %v558_v2  ;;  %v686_v2 = vld [vmem:[%s9546_s3 + $0xa10] sm:$0xff] }
 0x105   :  { %561 = vst [vmem:[#allocation2 + $0x818] sm:$0xff] %v560_v3  ;;  %v688_v3 = vld [vmem:[%s9546_s3 + $0xa18] sm:$0xff] }
 0x106   :  { %563 = vst [vmem:[#allocation2 + $0x820] sm:$0xff] %v562_v4  ;;  %v690_v4 = vld [vmem:[%s9546_s3 + $0xa20] sm:$0xff] }
 0x107   :  { %565 = vst [vmem:[#allocation2 + $0x828] sm:$0xff] %v564_v5  ;;  %v692_v5 = vld [vmem:[%s9546_s3 + $0xa28] sm:$0xff] }
 0x108   :  { %567 = vst [vmem:[#allocation2 + $0x830] sm:$0xff] %v566_v6  ;;  %v694_v6 = vld [vmem:[%s9546_s3 + $0xa30] sm:$0xff] }
 0x109   :  { %569 = vst [vmem:[#allocation2 + $0x838] sm:$0xff] %v568_v7  ;;  %v696_v7 = vld [vmem:[%s9546_s3 + $0xa38] sm:$0xff] }
 0x10a   :  { %571 = vst [vmem:[#allocation2 + $0x840] sm:$0xff] %v570_v8  ;;  %v698_v8 = vld [vmem:[%s9546_s3 + $0xa40] sm:$0xff] }
 0x10b   :  { %573 = vst [vmem:[#allocation2 + $0x848] sm:$0xff] %v572_v9  ;;  %v700_v9 = vld [vmem:[%s9546_s3 + $0xa48] sm:$0xff] }
 0x10c   :  { %575 = vst [vmem:[#allocation2 + $0x850] sm:$0xff] %v574_v10  ;;  %v702_v10 = vld [vmem:[%s9546_s3 + $0xa50] sm:$0xff] }
 0x10d   :  { %577 = vst [vmem:[#allocation2 + $0x858] sm:$0xff] %v576_v11  ;;  %v704_v11 = vld [vmem:[%s9546_s3 + $0xa58] sm:$0xff] }
 0x10e   :  { %579 = vst [vmem:[#allocation2 + $0x860] sm:$0xff] %v578_v12  ;;  %v706_v12 = vld [vmem:[%s9546_s3 + $0xa60] sm:$0xff] }
 0x10f   :  { %581 = vst [vmem:[#allocation2 + $0x868] sm:$0xff] %v580_v13  ;;  %v708_v13 = vld [vmem:[%s9546_s3 + $0xa68] sm:$0xff] }
 0x110   :  { %583 = vst [vmem:[#allocation2 + $0x870] sm:$0xff] %v582_v14  ;;  %v710_v14 = vld [vmem:[%s9546_s3 + $0xa70] sm:$0xff] }
 0x111   :  { %585 = vst [vmem:[#allocation2 + $0x878] sm:$0xff] %v584_v15  ;;  %v712_v15 = vld [vmem:[%s9546_s3 + $0xa78] sm:$0xff] }
 0x112   :  { %587 = vst [vmem:[#allocation2 + $0x880] sm:$0xff] %v586_v16  ;;  %v714_v16 = vld [vmem:[%s9546_s3 + $0xa80] sm:$0xff] }
 0x113   :  { %589 = vst [vmem:[#allocation2 + $0x888] sm:$0xff] %v588_v17  ;;  %v716_v17 = vld [vmem:[%s9546_s3 + $0xa88] sm:$0xff] }
 0x114   :  { %591 = vst [vmem:[#allocation2 + $0x890] sm:$0xff] %v590_v18  ;;  %v718_v18 = vld [vmem:[%s9546_s3 + $0xa90] sm:$0xff] }
 0x115   :  { %593 = vst [vmem:[#allocation2 + $0x898] sm:$0xff] %v592_v19  ;;  %v720_v19 = vld [vmem:[%s9546_s3 + $0xa98] sm:$0xff] }
 0x116   :  { %595 = vst [vmem:[#allocation2 + $0x8a0] sm:$0xff] %v594_v20  ;;  %v722_v20 = vld [vmem:[%s9546_s3 + $0xaa0] sm:$0xff] }
 0x117   :  { %597 = vst [vmem:[#allocation2 + $0x8a8] sm:$0xff] %v596_v21  ;;  %v724_v21 = vld [vmem:[%s9546_s3 + $0xaa8] sm:$0xff] }
 0x118   :  { %599 = vst [vmem:[#allocation2 + $0x8b0] sm:$0xff] %v598_v22  ;;  %v726_v22 = vld [vmem:[%s9546_s3 + $0xab0] sm:$0xff] }
 0x119   :  { %601 = vst [vmem:[#allocation2 + $0x8b8] sm:$0xff] %v600_v23  ;;  %v728_v23 = vld [vmem:[%s9546_s3 + $0xab8] sm:$0xff] }
 0x11a   :  { %603 = vst [vmem:[#allocation2 + $0x8c0] sm:$0xff] %v602_v24  ;;  %v730_v24 = vld [vmem:[%s9546_s3 + $0xac0] sm:$0xff] }
 0x11b   :  { %605 = vst [vmem:[#allocation2 + $0x8c8] sm:$0xff] %v604_v25  ;;  %v732_v25 = vld [vmem:[%s9546_s3 + $0xac8] sm:$0xff] }
 0x11c   :  { %607 = vst [vmem:[#allocation2 + $0x8d0] sm:$0xff] %v606_v26  ;;  %v734_v26 = vld [vmem:[%s9546_s3 + $0xad0] sm:$0xff] }
 0x11d   :  { %609 = vst [vmem:[#allocation2 + $0x8d8] sm:$0xff] %v608_v27  ;;  %v736_v27 = vld [vmem:[%s9546_s3 + $0xad8] sm:$0xff] }
 0x11e   :  { %611 = vst [vmem:[#allocation2 + $0x8e0] sm:$0xff] %v610_v28  ;;  %v738_v28 = vld [vmem:[%s9546_s3 + $0xae0] sm:$0xff] }
 0x11f   :  { %613 = vst [vmem:[#allocation2 + $0x8e8] sm:$0xff] %v612_v29  ;;  %v740_v29 = vld [vmem:[%s9546_s3 + $0xae8] sm:$0xff] }
 0x120   :  { %615 = vst [vmem:[#allocation2 + $0x8f0] sm:$0xff] %v614_v30  ;;  %v742_v30 = vld [vmem:[%s9546_s3 + $0xaf0] sm:$0xff] }
 0x121   :  { %617 = vst [vmem:[#allocation2 + $0x8f8] sm:$0xff] %v616_v31  ;;  %v744_v31 = vld [vmem:[%s9546_s3 + $0xaf8] sm:$0xff] }
 0x122   :  { %619 = vst [vmem:[#allocation2 + $0x900] sm:$0xff] %v618_v32  ;;  %v746_v32 = vld [vmem:[%s9546_s3 + $0xb00] sm:$0xff] }
 0x123   :  { %621 = vst [vmem:[#allocation2 + $0x908] sm:$0xff] %v620_v33  ;;  %v748_v33 = vld [vmem:[%s9546_s3 + $0xb08] sm:$0xff] }
 0x124   :  { %623 = vst [vmem:[#allocation2 + $0x910] sm:$0xff] %v622_v34  ;;  %v750_v34 = vld [vmem:[%s9546_s3 + $0xb10] sm:$0xff] }
 0x125   :  { %625 = vst [vmem:[#allocation2 + $0x918] sm:$0xff] %v624_v35  ;;  %v752_v35 = vld [vmem:[%s9546_s3 + $0xb18] sm:$0xff] }
 0x126   :  { %627 = vst [vmem:[#allocation2 + $0x920] sm:$0xff] %v626_v36  ;;  %v754_v36 = vld [vmem:[%s9546_s3 + $0xb20] sm:$0xff] }
 0x127   :  { %629 = vst [vmem:[#allocation2 + $0x928] sm:$0xff] %v628_v37  ;;  %v756_v37 = vld [vmem:[%s9546_s3 + $0xb28] sm:$0xff] }
 0x128   :  { %631 = vst [vmem:[#allocation2 + $0x930] sm:$0xff] %v630_v38  ;;  %v758_v38 = vld [vmem:[%s9546_s3 + $0xb30] sm:$0xff] }
 0x129   :  { %633 = vst [vmem:[#allocation2 + $0x938] sm:$0xff] %v632_v39  ;;  %v760_v39 = vld [vmem:[%s9546_s3 + $0xb38] sm:$0xff] }
 0x12a   :  { %635 = vst [vmem:[#allocation2 + $0x940] sm:$0xff] %v634_v40  ;;  %v762_v40 = vld [vmem:[%s9546_s3 + $0xb40] sm:$0xff] }
 0x12b   :  { %637 = vst [vmem:[#allocation2 + $0x948] sm:$0xff] %v636_v41  ;;  %v764_v41 = vld [vmem:[%s9546_s3 + $0xb48] sm:$0xff] }
 0x12c   :  { %639 = vst [vmem:[#allocation2 + $0x950] sm:$0xff] %v638_v42  ;;  %v766_v42 = vld [vmem:[%s9546_s3 + $0xb50] sm:$0xff] }
 0x12d   :  { %641 = vst [vmem:[#allocation2 + $0x958] sm:$0xff] %v640_v43  ;;  %v768_v43 = vld [vmem:[%s9546_s3 + $0xb58] sm:$0xff] }
 0x12e   :  { %643 = vst [vmem:[#allocation2 + $0x960] sm:$0xff] %v642_v44  ;;  %v770_v44 = vld [vmem:[%s9546_s3 + $0xb60] sm:$0xff] }
 0x12f   :  { %645 = vst [vmem:[#allocation2 + $0x968] sm:$0xff] %v644_v45  ;;  %v772_v45 = vld [vmem:[%s9546_s3 + $0xb68] sm:$0xff] }
 0x130   :  { %647 = vst [vmem:[#allocation2 + $0x970] sm:$0xff] %v646_v46  ;;  %v774_v46 = vld [vmem:[%s9546_s3 + $0xb70] sm:$0xff] }
 0x131   :  { %649 = vst [vmem:[#allocation2 + $0x978] sm:$0xff] %v648_v47  ;;  %v776_v47 = vld [vmem:[%s9546_s3 + $0xb78] sm:$0xff] }
 0x132   :  { %651 = vst [vmem:[#allocation2 + $0x980] sm:$0xff] %v650_v48  ;;  %v778_v48 = vld [vmem:[%s9546_s3 + $0xb80] sm:$0xff] }
 0x133   :  { %653 = vst [vmem:[#allocation2 + $0x988] sm:$0xff] %v652_v49  ;;  %v780_v49 = vld [vmem:[%s9546_s3 + $0xb88] sm:$0xff] }
 0x134   :  { %655 = vst [vmem:[#allocation2 + $0x990] sm:$0xff] %v654_v50  ;;  %v782_v50 = vld [vmem:[%s9546_s3 + $0xb90] sm:$0xff] }
 0x135   :  { %657 = vst [vmem:[#allocation2 + $0x998] sm:$0xff] %v656_v51  ;;  %v784_v51 = vld [vmem:[%s9546_s3 + $0xb98] sm:$0xff] }
 0x136   :  { %659 = vst [vmem:[#allocation2 + $0x9a0] sm:$0xff] %v658_v52  ;;  %v786_v52 = vld [vmem:[%s9546_s3 + $0xba0] sm:$0xff] }
 0x137   :  { %661 = vst [vmem:[#allocation2 + $0x9a8] sm:$0xff] %v660_v53  ;;  %v788_v53 = vld [vmem:[%s9546_s3 + $0xba8] sm:$0xff] }
 0x138   :  { %663 = vst [vmem:[#allocation2 + $0x9b0] sm:$0xff] %v662_v54  ;;  %v790_v54 = vld [vmem:[%s9546_s3 + $0xbb0] sm:$0xff] }
 0x139   :  { %665 = vst [vmem:[#allocation2 + $0x9b8] sm:$0xff] %v664_v55  ;;  %v792_v55 = vld [vmem:[%s9546_s3 + $0xbb8] sm:$0xff] }
 0x13a   :  { %667 = vst [vmem:[#allocation2 + $0x9c0] sm:$0xff] %v666_v56  ;;  %v794_v56 = vld [vmem:[%s9546_s3 + $0xbc0] sm:$0xff] }
 0x13b   :  { %669 = vst [vmem:[#allocation2 + $0x9c8] sm:$0xff] %v668_v57  ;;  %v796_v57 = vld [vmem:[%s9546_s3 + $0xbc8] sm:$0xff] }
 0x13c   :  { %671 = vst [vmem:[#allocation2 + $0x9d0] sm:$0xff] %v670_v58  ;;  %v798_v58 = vld [vmem:[%s9546_s3 + $0xbd0] sm:$0xff] }
 0x13d   :  { %673 = vst [vmem:[#allocation2 + $0x9d8] sm:$0xff] %v672_v59  ;;  %v800_v59 = vld [vmem:[%s9546_s3 + $0xbd8] sm:$0xff] }
 0x13e   :  { %675 = vst [vmem:[#allocation2 + $0x9e0] sm:$0xff] %v674_v60  ;;  %v802_v60 = vld [vmem:[%s9546_s3 + $0xbe0] sm:$0xff] }
 0x13f   :  { %677 = vst [vmem:[#allocation2 + $0x9e8] sm:$0xff] %v676_v61  ;;  %v804_v61 = vld [vmem:[%s9546_s3 + $0xbe8] sm:$0xff] }
 0x140   :  { %679 = vst [vmem:[#allocation2 + $0x9f0] sm:$0xff] %v678_v62  ;;  %v806_v62 = vld [vmem:[%s9546_s3 + $0xbf0] sm:$0xff] }
 0x141   :  { %681 = vst [vmem:[#allocation2 + $0x9f8] sm:$0xff] %v680_v63  ;;  %v808_v63 = vld [vmem:[%s9546_s3 + $0xbf8] sm:$0xff] }
 0x142   :  { %683 = vst [vmem:[#allocation2 + $0xa00] sm:$0xff] %v682_v0  ;;  %v810_v0 = vld [vmem:[%s9546_s3 + $0xc00] sm:$0xff] }
 0x143   :  { %685 = vst [vmem:[#allocation2 + $0xa08] sm:$0xff] %v684_v1  ;;  %v812_v1 = vld [vmem:[%s9546_s3 + $0xc08] sm:$0xff] }
 0x144   :  { %687 = vst [vmem:[#allocation2 + $0xa10] sm:$0xff] %v686_v2  ;;  %v814_v2 = vld [vmem:[%s9546_s3 + $0xc10] sm:$0xff] }
 0x145   :  { %689 = vst [vmem:[#allocation2 + $0xa18] sm:$0xff] %v688_v3  ;;  %v816_v3 = vld [vmem:[%s9546_s3 + $0xc18] sm:$0xff] }
 0x146   :  { %691 = vst [vmem:[#allocation2 + $0xa20] sm:$0xff] %v690_v4  ;;  %v818_v4 = vld [vmem:[%s9546_s3 + $0xc20] sm:$0xff] }
 0x147   :  { %693 = vst [vmem:[#allocation2 + $0xa28] sm:$0xff] %v692_v5  ;;  %v820_v5 = vld [vmem:[%s9546_s3 + $0xc28] sm:$0xff] }
 0x148   :  { %695 = vst [vmem:[#allocation2 + $0xa30] sm:$0xff] %v694_v6  ;;  %v822_v6 = vld [vmem:[%s9546_s3 + $0xc30] sm:$0xff] }
 0x149   :  { %697 = vst [vmem:[#allocation2 + $0xa38] sm:$0xff] %v696_v7  ;;  %v824_v7 = vld [vmem:[%s9546_s3 + $0xc38] sm:$0xff] }
 0x14a   :  { %699 = vst [vmem:[#allocation2 + $0xa40] sm:$0xff] %v698_v8  ;;  %v826_v8 = vld [vmem:[%s9546_s3 + $0xc40] sm:$0xff] }
 0x14b   :  { %701 = vst [vmem:[#allocation2 + $0xa48] sm:$0xff] %v700_v9  ;;  %v828_v9 = vld [vmem:[%s9546_s3 + $0xc48] sm:$0xff] }
 0x14c   :  { %703 = vst [vmem:[#allocation2 + $0xa50] sm:$0xff] %v702_v10  ;;  %v830_v10 = vld [vmem:[%s9546_s3 + $0xc50] sm:$0xff] }
 0x14d   :  { %705 = vst [vmem:[#allocation2 + $0xa58] sm:$0xff] %v704_v11  ;;  %v832_v11 = vld [vmem:[%s9546_s3 + $0xc58] sm:$0xff] }
 0x14e   :  { %707 = vst [vmem:[#allocation2 + $0xa60] sm:$0xff] %v706_v12  ;;  %v834_v12 = vld [vmem:[%s9546_s3 + $0xc60] sm:$0xff] }
 0x14f   :  { %709 = vst [vmem:[#allocation2 + $0xa68] sm:$0xff] %v708_v13  ;;  %v836_v13 = vld [vmem:[%s9546_s3 + $0xc68] sm:$0xff] }
 0x150   :  { %711 = vst [vmem:[#allocation2 + $0xa70] sm:$0xff] %v710_v14  ;;  %v838_v14 = vld [vmem:[%s9546_s3 + $0xc70] sm:$0xff] }
 0x151   :  { %713 = vst [vmem:[#allocation2 + $0xa78] sm:$0xff] %v712_v15  ;;  %v840_v15 = vld [vmem:[%s9546_s3 + $0xc78] sm:$0xff] }
 0x152   :  { %715 = vst [vmem:[#allocation2 + $0xa80] sm:$0xff] %v714_v16  ;;  %v842_v16 = vld [vmem:[%s9546_s3 + $0xc80] sm:$0xff] }
 0x153   :  { %717 = vst [vmem:[#allocation2 + $0xa88] sm:$0xff] %v716_v17  ;;  %v844_v17 = vld [vmem:[%s9546_s3 + $0xc88] sm:$0xff] }
 0x154   :  { %719 = vst [vmem:[#allocation2 + $0xa90] sm:$0xff] %v718_v18  ;;  %v846_v18 = vld [vmem:[%s9546_s3 + $0xc90] sm:$0xff] }
 0x155   :  { %721 = vst [vmem:[#allocation2 + $0xa98] sm:$0xff] %v720_v19  ;;  %v848_v19 = vld [vmem:[%s9546_s3 + $0xc98] sm:$0xff] }
 0x156   :  { %723 = vst [vmem:[#allocation2 + $0xaa0] sm:$0xff] %v722_v20  ;;  %v850_v20 = vld [vmem:[%s9546_s3 + $0xca0] sm:$0xff] }
 0x157   :  { %725 = vst [vmem:[#allocation2 + $0xaa8] sm:$0xff] %v724_v21  ;;  %v852_v21 = vld [vmem:[%s9546_s3 + $0xca8] sm:$0xff] }
 0x158   :  { %727 = vst [vmem:[#allocation2 + $0xab0] sm:$0xff] %v726_v22  ;;  %v854_v22 = vld [vmem:[%s9546_s3 + $0xcb0] sm:$0xff] }
 0x159   :  { %729 = vst [vmem:[#allocation2 + $0xab8] sm:$0xff] %v728_v23  ;;  %v856_v23 = vld [vmem:[%s9546_s3 + $0xcb8] sm:$0xff] }
 0x15a   :  { %731 = vst [vmem:[#allocation2 + $0xac0] sm:$0xff] %v730_v24  ;;  %v858_v24 = vld [vmem:[%s9546_s3 + $0xcc0] sm:$0xff] }
 0x15b   :  { %733 = vst [vmem:[#allocation2 + $0xac8] sm:$0xff] %v732_v25  ;;  %v860_v25 = vld [vmem:[%s9546_s3 + $0xcc8] sm:$0xff] }
 0x15c   :  { %735 = vst [vmem:[#allocation2 + $0xad0] sm:$0xff] %v734_v26  ;;  %v862_v26 = vld [vmem:[%s9546_s3 + $0xcd0] sm:$0xff] }
 0x15d   :  { %737 = vst [vmem:[#allocation2 + $0xad8] sm:$0xff] %v736_v27  ;;  %v864_v27 = vld [vmem:[%s9546_s3 + $0xcd8] sm:$0xff] }
 0x15e   :  { %739 = vst [vmem:[#allocation2 + $0xae0] sm:$0xff] %v738_v28  ;;  %v866_v28 = vld [vmem:[%s9546_s3 + $0xce0] sm:$0xff] }
 0x15f   :  { %741 = vst [vmem:[#allocation2 + $0xae8] sm:$0xff] %v740_v29  ;;  %v868_v29 = vld [vmem:[%s9546_s3 + $0xce8] sm:$0xff] }
 0x160   :  { %743 = vst [vmem:[#allocation2 + $0xaf0] sm:$0xff] %v742_v30  ;;  %v870_v30 = vld [vmem:[%s9546_s3 + $0xcf0] sm:$0xff] }
 0x161   :  { %745 = vst [vmem:[#allocation2 + $0xaf8] sm:$0xff] %v744_v31  ;;  %v872_v31 = vld [vmem:[%s9546_s3 + $0xcf8] sm:$0xff] }
 0x162   :  { %747 = vst [vmem:[#allocation2 + $0xb00] sm:$0xff] %v746_v32  ;;  %v874_v32 = vld [vmem:[%s9546_s3 + $0xd00] sm:$0xff] }
 0x163   :  { %749 = vst [vmem:[#allocation2 + $0xb08] sm:$0xff] %v748_v33  ;;  %v876_v33 = vld [vmem:[%s9546_s3 + $0xd08] sm:$0xff] }
 0x164   :  { %751 = vst [vmem:[#allocation2 + $0xb10] sm:$0xff] %v750_v34  ;;  %v878_v34 = vld [vmem:[%s9546_s3 + $0xd10] sm:$0xff] }
 0x165   :  { %753 = vst [vmem:[#allocation2 + $0xb18] sm:$0xff] %v752_v35  ;;  %v880_v35 = vld [vmem:[%s9546_s3 + $0xd18] sm:$0xff] }
 0x166   :  { %755 = vst [vmem:[#allocation2 + $0xb20] sm:$0xff] %v754_v36  ;;  %v882_v36 = vld [vmem:[%s9546_s3 + $0xd20] sm:$0xff] }
 0x167   :  { %757 = vst [vmem:[#allocation2 + $0xb28] sm:$0xff] %v756_v37  ;;  %v884_v37 = vld [vmem:[%s9546_s3 + $0xd28] sm:$0xff] }
 0x168   :  { %759 = vst [vmem:[#allocation2 + $0xb30] sm:$0xff] %v758_v38  ;;  %v886_v38 = vld [vmem:[%s9546_s3 + $0xd30] sm:$0xff] }
 0x169   :  { %761 = vst [vmem:[#allocation2 + $0xb38] sm:$0xff] %v760_v39  ;;  %v888_v39 = vld [vmem:[%s9546_s3 + $0xd38] sm:$0xff] }
 0x16a   :  { %763 = vst [vmem:[#allocation2 + $0xb40] sm:$0xff] %v762_v40  ;;  %v890_v40 = vld [vmem:[%s9546_s3 + $0xd40] sm:$0xff] }
 0x16b   :  { %765 = vst [vmem:[#allocation2 + $0xb48] sm:$0xff] %v764_v41  ;;  %v892_v41 = vld [vmem:[%s9546_s3 + $0xd48] sm:$0xff] }
 0x16c   :  { %767 = vst [vmem:[#allocation2 + $0xb50] sm:$0xff] %v766_v42  ;;  %v894_v42 = vld [vmem:[%s9546_s3 + $0xd50] sm:$0xff] }
 0x16d   :  { %769 = vst [vmem:[#allocation2 + $0xb58] sm:$0xff] %v768_v43  ;;  %v896_v43 = vld [vmem:[%s9546_s3 + $0xd58] sm:$0xff] }
 0x16e   :  { %771 = vst [vmem:[#allocation2 + $0xb60] sm:$0xff] %v770_v44  ;;  %v898_v44 = vld [vmem:[%s9546_s3 + $0xd60] sm:$0xff] }
 0x16f   :  { %773 = vst [vmem:[#allocation2 + $0xb68] sm:$0xff] %v772_v45  ;;  %v900_v45 = vld [vmem:[%s9546_s3 + $0xd68] sm:$0xff] }
 0x170   :  { %775 = vst [vmem:[#allocation2 + $0xb70] sm:$0xff] %v774_v46  ;;  %v902_v46 = vld [vmem:[%s9546_s3 + $0xd70] sm:$0xff] }
 0x171   :  { %777 = vst [vmem:[#allocation2 + $0xb78] sm:$0xff] %v776_v47  ;;  %v904_v47 = vld [vmem:[%s9546_s3 + $0xd78] sm:$0xff] }
 0x172   :  { %779 = vst [vmem:[#allocation2 + $0xb80] sm:$0xff] %v778_v48  ;;  %v906_v48 = vld [vmem:[%s9546_s3 + $0xd80] sm:$0xff] }
 0x173   :  { %781 = vst [vmem:[#allocation2 + $0xb88] sm:$0xff] %v780_v49  ;;  %v908_v49 = vld [vmem:[%s9546_s3 + $0xd88] sm:$0xff] }
 0x174   :  { %783 = vst [vmem:[#allocation2 + $0xb90] sm:$0xff] %v782_v50  ;;  %v910_v50 = vld [vmem:[%s9546_s3 + $0xd90] sm:$0xff] }
 0x175   :  { %785 = vst [vmem:[#allocation2 + $0xb98] sm:$0xff] %v784_v51  ;;  %v912_v51 = vld [vmem:[%s9546_s3 + $0xd98] sm:$0xff] }
 0x176   :  { %787 = vst [vmem:[#allocation2 + $0xba0] sm:$0xff] %v786_v52  ;;  %v914_v52 = vld [vmem:[%s9546_s3 + $0xda0] sm:$0xff] }
 0x177   :  { %789 = vst [vmem:[#allocation2 + $0xba8] sm:$0xff] %v788_v53  ;;  %v916_v53 = vld [vmem:[%s9546_s3 + $0xda8] sm:$0xff] }
 0x178   :  { %791 = vst [vmem:[#allocation2 + $0xbb0] sm:$0xff] %v790_v54  ;;  %v918_v54 = vld [vmem:[%s9546_s3 + $0xdb0] sm:$0xff] }
 0x179   :  { %793 = vst [vmem:[#allocation2 + $0xbb8] sm:$0xff] %v792_v55  ;;  %v920_v55 = vld [vmem:[%s9546_s3 + $0xdb8] sm:$0xff] }
 0x17a   :  { %795 = vst [vmem:[#allocation2 + $0xbc0] sm:$0xff] %v794_v56  ;;  %v922_v56 = vld [vmem:[%s9546_s3 + $0xdc0] sm:$0xff] }
 0x17b   :  { %797 = vst [vmem:[#allocation2 + $0xbc8] sm:$0xff] %v796_v57  ;;  %v924_v57 = vld [vmem:[%s9546_s3 + $0xdc8] sm:$0xff] }
 0x17c   :  { %799 = vst [vmem:[#allocation2 + $0xbd0] sm:$0xff] %v798_v58  ;;  %v926_v58 = vld [vmem:[%s9546_s3 + $0xdd0] sm:$0xff] }
 0x17d   :  { %801 = vst [vmem:[#allocation2 + $0xbd8] sm:$0xff] %v800_v59  ;;  %v928_v59 = vld [vmem:[%s9546_s3 + $0xdd8] sm:$0xff] }
 0x17e   :  { %803 = vst [vmem:[#allocation2 + $0xbe0] sm:$0xff] %v802_v60  ;;  %v930_v60 = vld [vmem:[%s9546_s3 + $0xde0] sm:$0xff] }
 0x17f   :  { %805 = vst [vmem:[#allocation2 + $0xbe8] sm:$0xff] %v804_v61  ;;  %v932_v61 = vld [vmem:[%s9546_s3 + $0xde8] sm:$0xff] }
 0x180   :  { %807 = vst [vmem:[#allocation2 + $0xbf0] sm:$0xff] %v806_v62  ;;  %v934_v62 = vld [vmem:[%s9546_s3 + $0xdf0] sm:$0xff] }
 0x181   :  { %809 = vst [vmem:[#allocation2 + $0xbf8] sm:$0xff] %v808_v63  ;;  %v936_v63 = vld [vmem:[%s9546_s3 + $0xdf8] sm:$0xff] }
 0x182   :  { %811 = vst [vmem:[#allocation2 + $0xc00] sm:$0xff] %v810_v0  ;;  %v938_v0 = vld [vmem:[%s9546_s3 + $0xe00] sm:$0xff] }
 0x183   :  { %813 = vst [vmem:[#allocation2 + $0xc08] sm:$0xff] %v812_v1  ;;  %v940_v1 = vld [vmem:[%s9546_s3 + $0xe08] sm:$0xff] }
 0x184   :  { %815 = vst [vmem:[#allocation2 + $0xc10] sm:$0xff] %v814_v2  ;;  %v942_v2 = vld [vmem:[%s9546_s3 + $0xe10] sm:$0xff] }
 0x185   :  { %817 = vst [vmem:[#allocation2 + $0xc18] sm:$0xff] %v816_v3  ;;  %v944_v3 = vld [vmem:[%s9546_s3 + $0xe18] sm:$0xff] }
 0x186   :  { %819 = vst [vmem:[#allocation2 + $0xc20] sm:$0xff] %v818_v4  ;;  %v946_v4 = vld [vmem:[%s9546_s3 + $0xe20] sm:$0xff] }
 0x187   :  { %821 = vst [vmem:[#allocation2 + $0xc28] sm:$0xff] %v820_v5  ;;  %v948_v5 = vld [vmem:[%s9546_s3 + $0xe28] sm:$0xff] }
 0x188   :  { %823 = vst [vmem:[#allocation2 + $0xc30] sm:$0xff] %v822_v6  ;;  %v950_v6 = vld [vmem:[%s9546_s3 + $0xe30] sm:$0xff] }
 0x189   :  { %825 = vst [vmem:[#allocation2 + $0xc38] sm:$0xff] %v824_v7  ;;  %v952_v7 = vld [vmem:[%s9546_s3 + $0xe38] sm:$0xff] }
 0x18a   :  { %827 = vst [vmem:[#allocation2 + $0xc40] sm:$0xff] %v826_v8  ;;  %v954_v8 = vld [vmem:[%s9546_s3 + $0xe40] sm:$0xff] }
 0x18b   :  { %829 = vst [vmem:[#allocation2 + $0xc48] sm:$0xff] %v828_v9  ;;  %v956_v9 = vld [vmem:[%s9546_s3 + $0xe48] sm:$0xff] }
 0x18c   :  { %831 = vst [vmem:[#allocation2 + $0xc50] sm:$0xff] %v830_v10  ;;  %v958_v10 = vld [vmem:[%s9546_s3 + $0xe50] sm:$0xff] }
 0x18d   :  { %833 = vst [vmem:[#allocation2 + $0xc58] sm:$0xff] %v832_v11  ;;  %v960_v11 = vld [vmem:[%s9546_s3 + $0xe58] sm:$0xff] }
 0x18e   :  { %835 = vst [vmem:[#allocation2 + $0xc60] sm:$0xff] %v834_v12  ;;  %v962_v12 = vld [vmem:[%s9546_s3 + $0xe60] sm:$0xff] }
 0x18f   :  { %837 = vst [vmem:[#allocation2 + $0xc68] sm:$0xff] %v836_v13  ;;  %v964_v13 = vld [vmem:[%s9546_s3 + $0xe68] sm:$0xff] }
 0x190   :  { %839 = vst [vmem:[#allocation2 + $0xc70] sm:$0xff] %v838_v14  ;;  %v966_v14 = vld [vmem:[%s9546_s3 + $0xe70] sm:$0xff] }
 0x191   :  { %841 = vst [vmem:[#allocation2 + $0xc78] sm:$0xff] %v840_v15  ;;  %v968_v15 = vld [vmem:[%s9546_s3 + $0xe78] sm:$0xff] }
 0x192   :  { %843 = vst [vmem:[#allocation2 + $0xc80] sm:$0xff] %v842_v16  ;;  %v970_v16 = vld [vmem:[%s9546_s3 + $0xe80] sm:$0xff] }
 0x193   :  { %845 = vst [vmem:[#allocation2 + $0xc88] sm:$0xff] %v844_v17  ;;  %v972_v17 = vld [vmem:[%s9546_s3 + $0xe88] sm:$0xff] }
 0x194   :  { %847 = vst [vmem:[#allocation2 + $0xc90] sm:$0xff] %v846_v18  ;;  %v974_v18 = vld [vmem:[%s9546_s3 + $0xe90] sm:$0xff] }
 0x195   :  { %849 = vst [vmem:[#allocation2 + $0xc98] sm:$0xff] %v848_v19  ;;  %v976_v19 = vld [vmem:[%s9546_s3 + $0xe98] sm:$0xff] }
 0x196   :  { %851 = vst [vmem:[#allocation2 + $0xca0] sm:$0xff] %v850_v20  ;;  %v978_v20 = vld [vmem:[%s9546_s3 + $0xea0] sm:$0xff] }
 0x197   :  { %853 = vst [vmem:[#allocation2 + $0xca8] sm:$0xff] %v852_v21  ;;  %v980_v21 = vld [vmem:[%s9546_s3 + $0xea8] sm:$0xff] }
 0x198   :  { %855 = vst [vmem:[#allocation2 + $0xcb0] sm:$0xff] %v854_v22  ;;  %v982_v22 = vld [vmem:[%s9546_s3 + $0xeb0] sm:$0xff] }
 0x199   :  { %857 = vst [vmem:[#allocation2 + $0xcb8] sm:$0xff] %v856_v23  ;;  %v984_v23 = vld [vmem:[%s9546_s3 + $0xeb8] sm:$0xff] }
 0x19a   :  { %859 = vst [vmem:[#allocation2 + $0xcc0] sm:$0xff] %v858_v24  ;;  %v986_v24 = vld [vmem:[%s9546_s3 + $0xec0] sm:$0xff] }
 0x19b   :  { %861 = vst [vmem:[#allocation2 + $0xcc8] sm:$0xff] %v860_v25  ;;  %v988_v25 = vld [vmem:[%s9546_s3 + $0xec8] sm:$0xff] }
 0x19c   :  { %863 = vst [vmem:[#allocation2 + $0xcd0] sm:$0xff] %v862_v26  ;;  %v990_v26 = vld [vmem:[%s9546_s3 + $0xed0] sm:$0xff] }
 0x19d   :  { %865 = vst [vmem:[#allocation2 + $0xcd8] sm:$0xff] %v864_v27  ;;  %v992_v27 = vld [vmem:[%s9546_s3 + $0xed8] sm:$0xff] }
 0x19e   :  { %867 = vst [vmem:[#allocation2 + $0xce0] sm:$0xff] %v866_v28  ;;  %v994_v28 = vld [vmem:[%s9546_s3 + $0xee0] sm:$0xff] }
 0x19f   :  { %869 = vst [vmem:[#allocation2 + $0xce8] sm:$0xff] %v868_v29  ;;  %v996_v29 = vld [vmem:[%s9546_s3 + $0xee8] sm:$0xff] }
 0x1a0   :  { %871 = vst [vmem:[#allocation2 + $0xcf0] sm:$0xff] %v870_v30  ;;  %v998_v30 = vld [vmem:[%s9546_s3 + $0xef0] sm:$0xff] }
 0x1a1   :  { %873 = vst [vmem:[#allocation2 + $0xcf8] sm:$0xff] %v872_v31  ;;  %v1000_v31 = vld [vmem:[%s9546_s3 + $0xef8] sm:$0xff] }
 0x1a2   :  { %875 = vst [vmem:[#allocation2 + $0xd00] sm:$0xff] %v874_v32 }
 0x1a3   :  { %877 = vst [vmem:[#allocation2 + $0xd08] sm:$0xff] %v876_v33 }
 0x1a4   :  { %879 = vst [vmem:[#allocation2 + $0xd10] sm:$0xff] %v878_v34 }
 0x1a5   :  { %881 = vst [vmem:[#allocation2 + $0xd18] sm:$0xff] %v880_v35 }
 0x1a6   :  { %883 = vst [vmem:[#allocation2 + $0xd20] sm:$0xff] %v882_v36 }
 0x1a7   :  { %885 = vst [vmem:[#allocation2 + $0xd28] sm:$0xff] %v884_v37 }
 0x1a8   :  { %887 = vst [vmem:[#allocation2 + $0xd30] sm:$0xff] %v886_v38 }
 0x1a9   :  { %889 = vst [vmem:[#allocation2 + $0xd38] sm:$0xff] %v888_v39 }
 0x1aa   :  { %891 = vst [vmem:[#allocation2 + $0xd40] sm:$0xff] %v890_v40 }
 0x1ab   :  { %893 = vst [vmem:[#allocation2 + $0xd48] sm:$0xff] %v892_v41 }
 0x1ac   :  { %895 = vst [vmem:[#allocation2 + $0xd50] sm:$0xff] %v894_v42 }
 0x1ad   :  { %897 = vst [vmem:[#allocation2 + $0xd58] sm:$0xff] %v896_v43 }
 0x1ae   :  { %899 = vst [vmem:[#allocation2 + $0xd60] sm:$0xff] %v898_v44 }
 0x1af   :  { %901 = vst [vmem:[#allocation2 + $0xd68] sm:$0xff] %v900_v45 }
 0x1b0   :  { %903 = vst [vmem:[#allocation2 + $0xd70] sm:$0xff] %v902_v46 }
 0x1b1   :  { %905 = vst [vmem:[#allocation2 + $0xd78] sm:$0xff] %v904_v47 }
 0x1b2   :  { %907 = vst [vmem:[#allocation2 + $0xd80] sm:$0xff] %v906_v48 }
 0x1b3   :  { %909 = vst [vmem:[#allocation2 + $0xd88] sm:$0xff] %v908_v49 }
 0x1b4   :  { %911 = vst [vmem:[#allocation2 + $0xd90] sm:$0xff] %v910_v50 }
 0x1b5   :  { %913 = vst [vmem:[#allocation2 + $0xd98] sm:$0xff] %v912_v51 }
 0x1b6   :  { %915 = vst [vmem:[#allocation2 + $0xda0] sm:$0xff] %v914_v52 }
 0x1b7   :  { %917 = vst [vmem:[#allocation2 + $0xda8] sm:$0xff] %v916_v53 }
 0x1b8   :  { %919 = vst [vmem:[#allocation2 + $0xdb0] sm:$0xff] %v918_v54 }
 0x1b9   :  { %921 = vst [vmem:[#allocation2 + $0xdb8] sm:$0xff] %v920_v55 }
 0x1ba   :  { %923 = vst [vmem:[#allocation2 + $0xdc0] sm:$0xff] %v922_v56 }
 0x1bb   :  { %925 = vst [vmem:[#allocation2 + $0xdc8] sm:$0xff] %v924_v57 }
 0x1bc   :  { %927 = vst [vmem:[#allocation2 + $0xdd0] sm:$0xff] %v926_v58 }
 0x1bd   :  { %929 = vst [vmem:[#allocation2 + $0xdd8] sm:$0xff] %v928_v59 }
 0x1be   :  { %931 = vst [vmem:[#allocation2 + $0xde0] sm:$0xff] %v930_v60 }
 0x1bf   :  { %933 = vst [vmem:[#allocation2 + $0xde8] sm:$0xff] %v932_v61 }
 0x1c0   :  { %935 = vst [vmem:[#allocation2 + $0xdf0] sm:$0xff] %v934_v62 }
 0x1c1   :  { %937 = vst [vmem:[#allocation2 + $0xdf8] sm:$0xff] %v936_v63 }
 0x1c2   :  { %939 = vst [vmem:[#allocation2 + $0xe00] sm:$0xff] %v938_v0 }
 0x1c3   :  { %941 = vst [vmem:[#allocation2 + $0xe08] sm:$0xff] %v940_v1 }
 0x1c4   :  { %943 = vst [vmem:[#allocation2 + $0xe10] sm:$0xff] %v942_v2 }
 0x1c5   :  { %945 = vst [vmem:[#allocation2 + $0xe18] sm:$0xff] %v944_v3 }
 0x1c6   :  { %947 = vst [vmem:[#allocation2 + $0xe20] sm:$0xff] %v946_v4 }
 0x1c7   :  { %949 = vst [vmem:[#allocation2 + $0xe28] sm:$0xff] %v948_v5 }
 0x1c8   :  { %951 = vst [vmem:[#allocation2 + $0xe30] sm:$0xff] %v950_v6 }
 0x1c9   :  { %953 = vst [vmem:[#allocation2 + $0xe38] sm:$0xff] %v952_v7 }
 0x1ca   :  { %955 = vst [vmem:[#allocation2 + $0xe40] sm:$0xff] %v954_v8 }
 0x1cb   :  { %957 = vst [vmem:[#allocation2 + $0xe48] sm:$0xff] %v956_v9 }
 0x1cc   :  { %959 = vst [vmem:[#allocation2 + $0xe50] sm:$0xff] %v958_v10 }
 0x1cd   :  { %961 = vst [vmem:[#allocation2 + $0xe58] sm:$0xff] %v960_v11 }
 0x1ce   :  { %963 = vst [vmem:[#allocation2 + $0xe60] sm:$0xff] %v962_v12 }
 0x1cf   :  { %965 = vst [vmem:[#allocation2 + $0xe68] sm:$0xff] %v964_v13 }
 0x1d0   :  { %967 = vst [vmem:[#allocation2 + $0xe70] sm:$0xff] %v966_v14 }
 0x1d1   :  { %969 = vst [vmem:[#allocation2 + $0xe78] sm:$0xff] %v968_v15 }
 0x1d2   :  { %971 = vst [vmem:[#allocation2 + $0xe80] sm:$0xff] %v970_v16 }
 0x1d3   :  { %973 = vst [vmem:[#allocation2 + $0xe88] sm:$0xff] %v972_v17 }
 0x1d4   :  { %975 = vst [vmem:[#allocation2 + $0xe90] sm:$0xff] %v974_v18 }
 0x1d5   :  { %977 = vst [vmem:[#allocation2 + $0xe98] sm:$0xff] %v976_v19 }
 0x1d6   :  { %979 = vst [vmem:[#allocation2 + $0xea0] sm:$0xff] %v978_v20 }
 0x1d7   :  { %981 = vst [vmem:[#allocation2 + $0xea8] sm:$0xff] %v980_v21 }
 0x1d8   :  { %983 = vst [vmem:[#allocation2 + $0xeb0] sm:$0xff] %v982_v22 }
 0x1d9   :  { %985 = vst [vmem:[#allocation2 + $0xeb8] sm:$0xff] %v984_v23 }
 0x1da   :  { %987 = vst [vmem:[#allocation2 + $0xec0] sm:$0xff] %v986_v24 }
 0x1db   :  { %989 = vst [vmem:[#allocation2 + $0xec8] sm:$0xff] %v988_v25 }
 0x1dc   :  { %991 = vst [vmem:[#allocation2 + $0xed0] sm:$0xff] %v990_v26 }
 0x1dd   :  { %993 = vst [vmem:[#allocation2 + $0xed8] sm:$0xff] %v992_v27 }
 0x1de   :  { %995 = vst [vmem:[#allocation2 + $0xee0] sm:$0xff] %v994_v28 }
 0x1df   :  { %997 = vst [vmem:[#allocation2 + $0xee8] sm:$0xff] %v996_v29 }
 0x1e0   :  { %999 = vst [vmem:[#allocation2 + $0xef0] sm:$0xff] %v998_v30 }
 0x1e1   :  { %1001 = vst [vmem:[#allocation2 + $0xef8] sm:$0xff] %v1000_v31 }
 0x1e2   :  { %1007 = vsyncadd [#allocation3], 61440  ;;  %v1019_v32 = vld [vmem:[%s9543_s0 + $0x10] sm:$0x3f]  ;;  %vm1049_vm0 = vcmask 1045504   ;;  %v1017_v33 = vld [vmem:[%s9543_s0] sm:$0xff] }
 0x1e3   :  { %5230 = vmatpush.msk.msra.mxu0 %vm1049_vm0, %v1019_v32  ;;  %v1020_v34 = vld [vmem:[%s9543_s0 + $0x18] sm:$0x3f]  ;;  %v1018_v35 = vld [vmem:[%s9543_s0 + $0x8] sm:$0xff]  ;;  %v1008_v36 = vld [vmem:[%s9544_s1] sm:$0xff]  ;;  %vm1021_vm1 = vcmask 113664   ;;  %vm1179_vm2 = vcmask 1040384  }
 0x1e4   :  { %5240 = vmatpush.msk.msra.mxu1 %vm1049_vm0, %v1020_v34  ;;  %v1009_v37 = vld [vmem:[%s9544_s1 + $0x8] sm:$0xff]  ;;  %v1010_v38 = vld [vmem:[%s9544_s1 + $0x10] sm:$0xff]  ;;  %v1011_v39 = vld [vmem:[%s9544_s1 + $0x18] sm:$0xff]  ;;  %vm1166_vm3 = vcmask 531456  }
 0x1e5   :  { %1071 = vmatpush.msra.mxu0 %v1017_v33  ;;  %v1012_v40 = vld [vmem:[%s9544_s1 + $0x20] sm:$0xff]  ;;  %v1013_v41 = vld [vmem:[%s9544_s1 + $0x28] sm:$0xff]  ;;  %v1014_v42 = vld [vmem:[%s9544_s1 + $0x30] sm:$0xff] }
 0x1e6   :  { %1115 = vmatpush.msra.mxu1 %v1018_v35  ;;  %5231 = vmatmul.msk.f32.vlgmr.msra.gmra.mxu0 %vm1021_vm1, %v1008_v36  ;;  %v1015_v43 = vld [vmem:[%s9544_s1 + $0x38] sm:$0xff]  ;;  %v1016_v44 = vld [vmem:[%s9544_s1 + $0x40] sm:$0x1]  ;;  %v1163_v18 = vld [vmem:[%s9545_s2 + $0x8] sm:$0xff] }
 0x1e7   :  { %5241 = vmatmul.msk.f32.vlgmr.msra.gmra.mxu1 %vm1021_vm1, %v1008_v36  ;;  %v1162_v16 = vld [vmem:[%s9545_s2] sm:$0xff]  ;;  %v1164_v19 = vld [vmem:[%s9545_s2 + $0x10] sm:$0xff]  ;;  %v1165_v20 = vld [vmem:[%s9545_s2 + $0x18] sm:$0xff] }
 0x1ee   :  { %5232 = vmatmul.msk.f32.gmra.mxu0 %vm1021_vm1, %v1009_v37 }
 0x1ef   :  { %5242 = vmatmul.msk.f32.gmra.mxu1 %vm1021_vm1, %v1009_v37 }
 0x1f6   :  { %5233 = vmatmul.msk.f32.gmra.mxu0 %vm1021_vm1, %v1010_v38 }
 0x1f7   :  { %5243 = vmatmul.msk.f32.gmra.mxu1 %vm1021_vm1, %v1010_v38 }
 0x1fe   :  { %5234 = vmatmul.msk.f32.gmra.mxu0 %vm1021_vm1, %v1011_v39 }
 0x1ff   :  { %5244 = vmatmul.msk.f32.gmra.mxu1 %vm1021_vm1, %v1011_v39 }
 0x206   :  { %5235 = vmatmul.msk.f32.gmra.mxu0 %vm1021_vm1, %v1012_v40 }
 0x207   :  { %5245 = vmatmul.msk.f32.gmra.mxu1 %vm1021_vm1, %v1012_v40 }
 0x20e   :  { %5236 = vmatmul.msk.f32.gmra.mxu0 %vm1021_vm1, %v1013_v41 }
 0x20f   :  { %5246 = vmatmul.msk.f32.gmra.mxu1 %vm1021_vm1, %v1013_v41 }
 0x216   :  { %5237 = vmatmul.msk.f32.gmra.mxu0 %vm1021_vm1, %v1014_v42 }
 0x217   :  { %5247 = vmatmul.msk.f32.gmra.mxu1 %vm1021_vm1, %v1014_v42 }
 0x21e   :  { %5238 = vmatmul.msk.f32.gmra.mxu0 %vm1021_vm1, %v1015_v43 }
 0x21f   :  { %5248 = vmatmul.msk.f32.gmra.mxu1 %vm1021_vm1, %v1015_v43 }
 0x226   :  { %5239 = vmatmul.msk.f32.gmra.mxu0 %vm1021_vm1, %v1016_v44 }
 0x227   :  { %5249 = vmatmul.msk.f32.gmra.mxu1 %vm1021_vm1, %v1016_v44 }
 0x263   :  { %v1073_v45 = vpop.f32.mrf.mxu0 }
 0x264   :  { %v1117_v46 = vpop.f32.mrf.mxu1  ;;  %v1144_v15 = vmax.f32 %v1073_v45, 0.0 }
 0x265   :  { %v1145_v17 = vmax.f32 %v1117_v46, 0.0 }
 0x26b   :  { %v1076_v47 = vpop.f32.mrf.mxu0 }
 0x26c   :  { %v1120_v48 = vpop.f32.mrf.mxu1  ;;  %v1146_v13 = vmax.f32 %v1076_v47, 0.0 }
 0x26d   :  { %v1147_v14 = vmax.f32 %v1120_v48, 0.0 }
 0x273   :  { %v1079_v49 = vpop.f32.mrf.mxu0 }
 0x274   :  { %v1123_v50 = vpop.f32.mrf.mxu1  ;;  %v1148_v11 = vmax.f32 %v1079_v49, 0.0 }
 0x275   :  { %v1149_v12 = vmax.f32 %v1123_v50, 0.0 }
 0x27b   :  { %v1082_v51 = vpop.f32.mrf.mxu0 }
 0x27c   :  { %v1126_v52 = vpop.f32.mrf.mxu1  ;;  %v1150_v9 = vmax.f32 %v1082_v51, 0.0 }
 0x27d   :  { %v1151_v10 = vmax.f32 %v1126_v52, 0.0 }
 0x283   :  { %v1085_v53 = vpop.f32.mrf.mxu0 }
 0x284   :  { %v1129_v54 = vpop.f32.mrf.mxu1  ;;  %v1152_v7 = vmax.f32 %v1085_v53, 0.0 }
 0x285   :  { %v1153_v8 = vmax.f32 %v1129_v54, 0.0 }
 0x28b   :  { %v1088_v55 = vpop.f32.mrf.mxu0 }
 0x28c   :  { %v1132_v56 = vpop.f32.mrf.mxu1  ;;  %v1154_v5 = vmax.f32 %v1088_v55, 0.0 }
 0x28d   :  { %v1155_v6 = vmax.f32 %v1132_v56, 0.0 }
 0x293   :  { %v1091_v57 = vpop.f32.mrf.mxu0 }
 0x294   :  { %v1135_v58 = vpop.f32.mrf.mxu1  ;;  %v1156_v3 = vmax.f32 %v1091_v57, 0.0 }
 0x295   :  { %v1157_v4 = vmax.f32 %v1135_v58, 0.0 }
 0x29b   :  { %v1094_v59 = vpop.f32.mrf.mxu0 }
 0x29c   :  { %v1138_v60 = vpop.f32.mrf.mxu1  ;;  %v1158_v1 = vmax.f32 %v1094_v59, 0.0 }
 0x29d   :  { %v1159_v2 = vmax.f32 %v1138_v60, 0.0 }
 0x2a3   :  { %v1097_v61 = vpop.f32.mrf.mxu0 }
 0x2a4   :  { %v1160_v62 = vmax.f32 %v1097_v61, 0.0  ;;  %v1141_v63 = vpop.f32.mrf.mxu1 }
 0x2a5   :  { %v1161_v0 = vmax.f32 %v1141_v63, 0.0 }
 0x2a6   :  { %5250 = vmatpush.msk.msra.mxu2 %vm1179_vm2, %v1160_v62 }
 0x2a7   :  { %5255 = vmatpush.msk.msra.mxu3 %vm1179_vm2, %v1161_v0 }
 0x2a8   :  { %1194 = vmatpush.msra.mxu2 %v1158_v1 }
 0x2a9   :  { %1223 = vmatpush.msra.mxu3 %v1159_v2 }
 0x2aa   :  { %1195 = vmatpush.msra.mxu2 %v1156_v3 }
 0x2ab   :  { %1224 = vmatpush.msra.mxu3 %v1157_v4 }
 0x2ac   :  { %1196 = vmatpush.msra.mxu2 %v1154_v5 }
 0x2ad   :  { %1225 = vmatpush.msra.mxu3 %v1155_v6 }
 0x2ae   :  { %1197 = vmatpush.msra.mxu2 %v1152_v7 }
 0x2af   :  { %1226 = vmatpush.msra.mxu3 %v1153_v8 }
 0x2b0   :  { %1198 = vmatpush.msra.mxu2 %v1150_v9 }
 0x2b1   :  { %1227 = vmatpush.msra.mxu3 %v1151_v10 }
 0x2b2   :  { %1199 = vmatpush.msra.mxu2 %v1148_v11 }
 0x2b3   :  { %1228 = vmatpush.msra.mxu3 %v1149_v12 }
 0x2b4   :  { %1200 = vmatpush.msra.mxu2 %v1146_v13 }
 0x2b5   :  { %1229 = vmatpush.msra.mxu3 %v1147_v14 }
 0x2b6   :  { %1201 = vmatpush.msra.mxu2 %v1144_v15 }
 0x2b7   :  { %1230 = vmatpush.msra.mxu3 %v1145_v17  ;;  %5251 = vmatmul.msk.f32.vlgmr.msra.gmra.mxu2 %vm1166_vm3, %v1162_v16 }
 0x2b8   :  { %5256 = vmatmul.msk.f32.vlgmr.msra.gmra.mxu3 %vm1166_vm3, %v1162_v16 }
 0x2bf   :  { %5252 = vmatmul.msk.f32.gmra.mxu2 %vm1166_vm3, %v1163_v18 }
 0x2c0   :  { %5257 = vmatmul.msk.f32.gmra.mxu3 %vm1166_vm3, %v1163_v18 }
 0x2c7   :  { %5253 = vmatmul.msk.f32.gmra.mxu2 %vm1166_vm3, %v1164_v19 }
 0x2c8   :  { %5258 = vmatmul.msk.f32.gmra.mxu3 %vm1166_vm3, %v1164_v19 }
 0x2cf   :  { %5254 = vmatmul.msk.f32.gmra.mxu2 %vm1166_vm3, %v1165_v20 }
 0x2d0   :  { %5259 = vmatmul.msk.f32.gmra.mxu3 %vm1166_vm3, %v1165_v20 }
 0x33a   :  { %v1203_v21 = vpop.f32.mrf.mxu2 }
 0x33b   :  { %v1244_v22 = vmax.f32 %v1203_v21, 0.0  ;;  %v1232_v23 = vpop.f32.mrf.mxu3 }
 0x33c   :  { %v1245_v24 = vmax.f32 %v1232_v23, 0.0 }
 0x33e   :  { %v9283_v25 = vpack.c.bf16 %v1245_v24, %v1244_v22 }
 0x342   :  { %v1206_v26 = vpop.f32.mrf.mxu2 }
 0x343   :  { %v1246_v27 = vmax.f32 %v1206_v26, 0.0  ;;  %v1235_v28 = vpop.f32.mrf.mxu3 }
 0x344   :  { %v1247_v29 = vmax.f32 %v1235_v28, 0.0 }
 0x346   :  { %v9285_v30 = vpack.c.bf16 %v1247_v29, %v1246_v27 }
 0x34a   :  { %v1209_v31 = vpop.f32.mrf.mxu2 }
 0x34b   :  { %v1248_v32 = vmax.f32 %v1209_v31, 0.0  ;;  %v1238_v33 = vpop.f32.mrf.mxu3 }
 0x34c   :  { %v1249_v34 = vmax.f32 %v1238_v33, 0.0 }
 0x34e   :  { %v9287_v35 = vpack.c.bf16 %v1249_v34, %v1248_v32 }
 0x352   :  { %v1212_v36 = vpop.f32.mrf.mxu2 }
 0x353   :  { %v1250_v37 = vmax.f32 %v1212_v36, 0.0  ;;  %v1241_v38 = vpop.f32.mrf.mxu3 }
 0x354   :  { %v1251_v39 = vmax.f32 %v1241_v38, 0.0 }
 0x356   :  { %v9289_v40 = vpack.c.bf16 %v1251_v39, %v1250_v37 }
 0x357   :  { %7719 = dma.done.wait [#allocation3], 61440 }
 0x358   :  { %7720 = vsyncadd [#allocation3], 4294905856  ;;  %v5486_v41 = vld [vmem:[#allocation2 + $0x1c0] sm:$0xf]  ;;  %v7270_v46 = vld [vmem:[#allocation2 + $0x1c4] sm:$0xf] }
 0x359   :  { %v7274_v42 = vld [vmem:[#allocation2 + $0x1dc] sm:$0xf0]  ;;  %v5488_v47 = vld [vmem:[#allocation2 + $0x1e0] sm:$0xf0]  ;;  %vm1988_vm4 = vcmask 916480   ;;  %vm5178_vm5 = vcmask 523264  }
 0x35a   :  { %v5710_v43 = vld [vmem:[#allocation2 + $0x380] sm:$0xf]  ;;  %v5487_v44 = vor.u32 %v7274_v42, %v5486_v41  ;;  %v5491_v49 = vor.u32 %v7270_v46, %v5488_v47  ;;  %v7262_v55 = vld [vmem:[#allocation2 + $0x184] sm:$0xf]  ;;  %s7723_s12 = smov [#allocation4]   ;;  %vm5202_vm6 = vcmask 483328  }
 0x35b   :  { %v7330_v45 = vld [vmem:[#allocation2 + $0x39c] sm:$0xf0]  ;;  %v5456_v56 = vld [vmem:[#allocation2 + $0x1a0] sm:$0xf0] }
 0x35c   :  { %v5711_v48 = vor.u32 %v7330_v45, %v5710_v43  ;;  %v5454_v50 = vld [vmem:[#allocation2 + $0x180] sm:$0xf]  ;;  %1992 = vmatpush.bf16.msrb.mxu2 %v5487_v44  ;;  %2018 = vmatpush.bf16.msrb.mxu0 %v5491_v49  ;;  %v5459_v58 = vor.u32 %v7262_v55, %v5456_v56  ;;  %v7254_v63 = vld [vmem:[#allocation2 + $0x144] sm:$0xf]  ;;  %v5718_v56 = vld [vmem:[#allocation2 + $0x388] sm:$0xf] }
 0x35d   :  { %v7266_v51 = vld [vmem:[#allocation2 + $0x19c] sm:$0xf0]  ;;  %v5424_v0 = vld [vmem:[#allocation2 + $0x160] sm:$0xf0] }
 0x35e   :  { %v5678_v52 = vld [vmem:[#allocation2 + $0x340] sm:$0xf]  ;;  %v5455_v53 = vor.u32 %v7266_v51, %v5454_v50  ;;  %2006 = vmatpush.bf16.msrb.mxu3 %v5711_v48  ;;  %v7326_v1 = vld [vmem:[#allocation2 + $0x384] sm:$0xf]  ;;  %v5427_v8 = vor.u32 %v7254_v63, %v5424_v0 }
 0x35f   :  { %v7322_v54 = vld [vmem:[#allocation2 + $0x35c] sm:$0xf0]  ;;  %v5712_v2 = vld [vmem:[#allocation2 + $0x3a0] sm:$0xf0] }
 0x360   :  { %v5679_v57 = vor.u32 %v7322_v54, %v5678_v52  ;;  %v5422_v59 = vld [vmem:[#allocation2 + $0x140] sm:$0xf]  ;;  %1993 = vmatpush.bf16.msrb.mxu2 %v5455_v53  ;;  %v5715_v4 = vor.u32 %v7326_v1, %v5712_v2  ;;  %2019 = vmatpush.bf16.msrb.mxu0 %v5459_v58  ;;  %v7318_v11 = vld [vmem:[#allocation2 + $0x344] sm:$0xf] }
 0x361   :  { %v7258_v60 = vld [vmem:[#allocation2 + $0x15c] sm:$0xf0]  ;;  %v7246_v12 = vld [vmem:[#allocation2 + $0x104] sm:$0xf] }
 0x362   :  { %v5646_v61 = vld [vmem:[#allocation2 + $0x300] sm:$0xf]  ;;  %v5423_v3 = vor.u32 %v7258_v60, %v5422_v59  ;;  %2007 = vmatpush.bf16.msrb.mxu3 %v5679_v57  ;;  %2032 = vmatpush.bf16.msrb.mxu1 %v5715_v4  ;;  %v5392_v13 = vld [vmem:[#allocation2 + $0x120] sm:$0xf0]  ;;  %v7331_v57 = vld [vmem:[#allocation2 + $0x3a4] sm:$0xf0] }
 0x363   :  { %v7314_v62 = vld [vmem:[#allocation2 + $0x31c] sm:$0xf0]  ;;  %v5680_v14 = vld [vmem:[#allocation2 + $0x360] sm:$0xf0]  ;;  %v5395_v20 = vor.u32 %v7246_v12, %v5392_v13  ;;  %v5719_v4 = vor.u32 %v7331_v57, %v5718_v56  ;;  %v1383_v12 = vunpack.c.l.b16 %v9283_v25  ;;  %v7247_v56 = vld [vmem:[#allocation2 + $0x10c] sm:$0xf] }
 0x364   :  { %v5390_v5 = vld [vmem:[#allocation2 + $0x100] sm:$0xf]  ;;  %v5647_v7 = vor.u32 %v7314_v62, %v5646_v61  ;;  %v5683_v15 = vor.u32 %v7318_v11, %v5680_v14  ;;  %1994 = vmatpush.bf16.msrb.mxu2 %v5423_v3  ;;  %v7310_v17 = vld [vmem:[#allocation2 + $0x304] sm:$0xf]  ;;  %2020 = vmatpush.bf16.msrb.mxu0 %v5427_v8  ;;  %v1384_v62 = vunpack.c.h.b16 %v9283_v25  ;;  %v5686_v8 = vld [vmem:[#allocation2 + $0x348] sm:$0xf] }
 0x365   :  { %v7250_v6 = vld [vmem:[#allocation2 + $0x11c] sm:$0xf0]  ;;  %v5648_v18 = vld [vmem:[#allocation2 + $0x320] sm:$0xf0]  ;;  %v5496_v11 = vld [vmem:[#allocation2 + $0x1e8] sm:$0xf0] }
 0x366   :  { %v5614_v9 = vld [vmem:[#allocation2 + $0x2c0] sm:$0xf]  ;;  %v5391_v16 = vor.u32 %v7250_v6, %v5390_v5  ;;  %2008 = vmatpush.bf16.msrb.mxu3 %v5647_v7  ;;  %2033 = vmatpush.bf16.msrb.mxu1 %v5683_v15  ;;  %v7238_v26 = vld [vmem:[#allocation2 + $0xc4] sm:$0xf]  ;;  %v5651_v28 = vor.u32 %v7310_v17, %v5648_v18  ;;  %v5494_v6 = vld [vmem:[#allocation2 + $0x1c8] sm:$0xf] }
 0x367   :  { %v7306_v10 = vld [vmem:[#allocation2 + $0x2dc] sm:$0xf0]  ;;  %v5360_v27 = vld [vmem:[#allocation2 + $0xe0] sm:$0xf0]  ;;  %v7275_v7 = vld [vmem:[#allocation2 + $0x1e4] sm:$0xf0] }
 0x368   :  { %v5615_v19 = vor.u32 %v7306_v10, %v5614_v9  ;;  %v5358_v21 = vld [vmem:[#allocation2 + $0xc0] sm:$0xf]  ;;  %v7302_v29 = vld [vmem:[#allocation2 + $0x2c4] sm:$0xf]  ;;  %1995 = vmatpush.bf16.msrb.mxu2 %v5391_v16  ;;  %2021 = vmatpush.bf16.msrb.mxu0 %v5395_v20  ;;  %v5363_v34 = vor.u32 %v7238_v26, %v5360_v27  ;;  %v7323_v9 = vld [vmem:[#allocation2 + $0x364] sm:$0xf0]  ;;  %v9293_v16 = vpack.c.b16 %v1384_v62, %v1384_v62 }
 0x369   :  { %v7242_v22 = vld [vmem:[#allocation2 + $0xdc] sm:$0xf0]  ;;  %v5616_v31 = vld [vmem:[#allocation2 + $0x2e0] sm:$0xf0]  ;;  %v7271_v10 = vld [vmem:[#allocation2 + $0x1cc] sm:$0xf]  ;;  %v5495_v18 = vor.u32 %v7275_v7, %v5494_v6 }
 0x36a   :  { %v5582_v23 = vld [vmem:[#allocation2 + $0x280] sm:$0xf]  ;;  %v5359_v32 = vor.u32 %v7242_v22, %v5358_v21  ;;  %2009 = vmatpush.bf16.msrb.mxu3 %v5615_v19  ;;  %2034 = vmatpush.bf16.msrb.mxu1 %v5651_v28  ;;  %v7230_v41 = vld [vmem:[#allocation2 + $0x84] sm:$0xf]  ;;  %v5619_v43 = vor.u32 %v7302_v29, %v5616_v31  ;;  %v5462_v19 = vld [vmem:[#allocation2 + $0x188] sm:$0xf]  ;;  %v5687_v22 = vor.u32 %v7323_v9, %v5686_v8 }
 0x36b   :  { %v7298_v24 = vld [vmem:[#allocation2 + $0x29c] sm:$0xf0]  ;;  %v5328_v42 = vld [vmem:[#allocation2 + $0xa0] sm:$0xf0]  ;;  %v7327_v20 = vld [vmem:[#allocation2 + $0x38c] sm:$0xf]  ;;  %v9295_v31 = vpack.c.b16 %v1383_v12, %v1383_v12 }
 0x36c   :  { %v5583_v33 = vor.u32 %v7298_v24, %v5582_v23  ;;  %v5326_v36 = vld [vmem:[#allocation2 + $0x80] sm:$0xf]  ;;  %v7294_v44 = vld [vmem:[#allocation2 + $0x284] sm:$0xf]  ;;  %1996 = vmatpush.bf16.msrb.mxu2 %v5359_v32  ;;  %2022 = vmatpush.bf16.msrb.mxu0 %v5363_v34  ;;  %v5331_v49 = vor.u32 %v7230_v41, %v5328_v42  ;;  %v5720_v21 = vld [vmem:[#allocation2 + $0x3a8] sm:$0xf0]  ;;  %v5499_v23 = vor.u32 %v7271_v10, %v5496_v11 }
 0x36d   :  { %v7234_v37 = vld [vmem:[#allocation2 + $0x9c] sm:$0xf0]  ;;  %v5584_v45 = vld [vmem:[#allocation2 + $0x2a0] sm:$0xf0]  ;;  %v7267_v24 = vld [vmem:[#allocation2 + $0x1a4] sm:$0xf0]  ;;  %v5723_v32 = vor.u32 %v7327_v20, %v5720_v21 }
 0x36e   :  { %v5550_v38 = vld [vmem:[#allocation2 + $0x240] sm:$0xf]  ;;  %v5327_v46 = vor.u32 %v7234_v37, %v5326_v36  ;;  %2010 = vmatpush.bf16.msrb.mxu3 %v5583_v33  ;;  %2035 = vmatpush.bf16.msrb.mxu1 %v5619_v43  ;;  %v7222_v53 = vld [vmem:[#allocation2 + $0x44] sm:$0xf]  ;;  %v5587_v55 = vor.u32 %v7294_v44, %v5584_v45  ;;  %v5654_v26 = vld [vmem:[#allocation2 + $0x308] sm:$0xf]  ;;  %v5463_v33 = vor.u32 %v7267_v24, %v5462_v19 }
 0x36f   :  { %v7290_v39 = vld [vmem:[#allocation2 + $0x25c] sm:$0xf0]  ;;  %v5296_v54 = vld [vmem:[#allocation2 + $0x60] sm:$0xf0]  ;;  %v7315_v25 = vld [vmem:[#allocation2 + $0x324] sm:$0xf0] }
 0x370   :  { %v5294_v47 = vld [vmem:[#allocation2 + $0x40] sm:$0xf]  ;;  %v5551_v48 = vor.u32 %v7290_v39, %v5550_v38  ;;  %v7286_v58 = vld [vmem:[#allocation2 + $0x244] sm:$0xf]  ;;  %1997 = vmatpush.bf16.msrb.mxu2 %v5327_v46  ;;  %2023 = vmatpush.bf16.msrb.mxu0 %v5331_v49  ;;  %v5299_v0 = vor.u32 %v7222_v53, %v5296_v54  ;;  %v7263_v28 = vld [vmem:[#allocation2 + $0x18c] sm:$0xf]  ;;  %v5655_v37 = vor.u32 %v7315_v25, %v5654_v26 }
 0x371   :  { %v7226_v50 = vld [vmem:[#allocation2 + $0x5c] sm:$0xf0]  ;;  %v5552_v59 = vld [vmem:[#allocation2 + $0x260] sm:$0xf0]  ;;  %v5464_v29 = vld [vmem:[#allocation2 + $0x1a8] sm:$0xf0] }
 0x372   :  { %v5518_v51 = vld [vmem:[#allocation2 + $0x200] sm:$0xf]  ;;  %v5295_v60 = vor.u32 %v7226_v50, %v5294_v47  ;;  %2011 = vmatpush.bf16.msrb.mxu3 %v5551_v48  ;;  %v7214_v2 = vld [vmem:[#allocation2 + $0x4] sm:$0xf]  ;;  %2036 = vmatpush.bf16.msrb.mxu1 %v5587_v55  ;;  %v5555_v5 = vor.u32 %v7286_v58, %v5552_v59  ;;  %v7319_v34 = vld [vmem:[#allocation2 + $0x34c] sm:$0xf]  ;;  %v5467_v38 = vor.u32 %v7263_v28, %v5464_v29 }
 0x373   :  { %v7282_v52 = vld [vmem:[#allocation2 + $0x21c] sm:$0xf0]  ;;  %v5264_v3 = vld [vmem:[#allocation2 + $0x20] sm:$0xf0]  ;;  %v5688_v36 = vld [vmem:[#allocation2 + $0x368] sm:$0xf0] }
 0x374   :  { %v5262_v61 = vld [vmem:[#allocation2] sm:$0xf]  ;;  %v5519_v63 = vor.u32 %v7282_v52, %v5518_v51  ;;  %1998 = vmatpush.bf16.msrb.mxu2 %v5295_v60  ;;  %v7278_v14 = vld [vmem:[#allocation2 + $0x204] sm:$0xf]  ;;  %2024 = vmatpush.bf16.msrb.mxu0 %v5299_v0  ;;  %v5267_v17 = vor.u32 %v7214_v2, %v5264_v3  ;;  %v5430_v39 = vld [vmem:[#allocation2 + $0x148] sm:$0xf]  ;;  %v5691_v46 = vor.u32 %v7319_v34, %v5688_v36 }
 0x375   :  { %v7218_v1 = vld [vmem:[#allocation2 + $0x1c] sm:$0xf0]  ;;  %v5520_v15 = vld [vmem:[#allocation2 + $0x220] sm:$0xf0]  ;;  %v7259_v41 = vld [vmem:[#allocation2 + $0x164] sm:$0xf0] }
 0x376   :  { %v5263_v13 = vor.u32 %v7218_v1, %v5262_v61  ;;  %2012 = vmatpush.bf16.msrb.mxu3 %v5519_v63  ;;  %2037 = vmatpush.bf16.msrb.mxu1 %v5555_v5  ;;  %v5523_v27 = vor.u32 %v7278_v14, %v5520_v15  ;;  %v5622_v42 = vld [vmem:[#allocation2 + $0x2c8] sm:$0xf]  ;;  %v7255_v44 = vld [vmem:[#allocation2 + $0x14c] sm:$0xf]  ;;  %v5431_v47 = vor.u32 %v7259_v41, %v5430_v39  ;;  %v5502_v20 = vld [vmem:[#allocation2 + $0x1d0] sm:$0xf] }
 0x377   :  { %v7307_v43 = vld [vmem:[#allocation2 + $0x2e4] sm:$0xf0]  ;;  %v5432_v45 = vld [vmem:[#allocation2 + $0x168] sm:$0xf0]  ;;  %v7276_v21 = vld [vmem:[#allocation2 + $0x1ec] sm:$0xf0] }
 0x378   :  { %1999 = vmatpush.bf16.msrb.mxu2 %v5263_v13  ;;  %2025 = vmatpush.bf16.msrb.mxu0 %v5267_v17  ;;  %v7311_v48 = vld [vmem:[#allocation2 + $0x30c] sm:$0xf]  ;;  %v5623_v50 = vor.u32 %v7307_v43, %v5622_v42  ;;  %v5435_v51 = vor.u32 %v7255_v44, %v5432_v45  ;;  %v5398_v52 = vld [vmem:[#allocation2 + $0x108] sm:$0xf]  ;;  %v5503_v29 = vor.u32 %v7276_v21, %v5502_v20  ;;  %v5470_v34 = vld [vmem:[#allocation2 + $0x190] sm:$0xf] }
 0x379   :  { %5740 = vmatmul.msk.bf16.vlgmr.msrb.gmra.mxu3 %vm1988_vm4, %v9293_v16  ;;  %v5656_v49 = vld [vmem:[#allocation2 + $0x328] sm:$0xf0]  ;;  %v7251_v53 = vld [vmem:[#allocation2 + $0x124] sm:$0xf0] }
 0x37a   :  { %2058 = vmatpush.bf16.msra.mxu3 %v5719_v4  ;;  %2038 = vmatpush.bf16.msrb.mxu1 %v5523_v27  ;;  %v5590_v54 = vld [vmem:[#allocation2 + $0x288] sm:$0xf]  ;;  %v5400_v57 = vld [vmem:[#allocation2 + $0x128] sm:$0xf0]  ;;  %v5659_v58 = vor.u32 %v7311_v48, %v5656_v49  ;;  %v5399_v59 = vor.u32 %v7251_v53, %v5398_v52  ;;  %v5504_v48 = vld [vmem:[#allocation2 + $0x1f0] sm:$0xf0] }
 0x37b   :  { %2000 = vmatmul.bf16.vlgmr.msrb.gmra.mxu2 %v9295_v31  ;;  %2026 = vmatmul.bf16.vlgmr.msrb.gmra.mxu0 %v9295_v31  ;;  %v7299_v55 = vld [vmem:[#allocation2 + $0x2a4] sm:$0xf0]  ;;  %v7303_v60 = vld [vmem:[#allocation2 + $0x2cc] sm:$0xf]  ;;  %v5403_v63 = vor.u32 %v7247_v56, %v5400_v57  ;;  %v7332_v52 = vld [vmem:[#allocation2 + $0x3ac] sm:$0xf0] }
 0x37c   :  { %2044 = vmatpush.bf16.msra.mxu2 %v5495_v18  ;;  %2070 = vmatpush.bf16.msra.mxu0 %v5499_v23  ;;  %v5624_v61 = vld [vmem:[#allocation2 + $0x2e8] sm:$0xf0]  ;;  %v5591_v62 = vor.u32 %v7299_v55, %v5590_v54  ;;  %v5366_v0 = vld [vmem:[#allocation2 + $0xc8] sm:$0xf]  ;;  %v7260_v54 = vld [vmem:[#allocation2 + $0x16c] sm:$0xf0] }
 0x37d   :  { %5741 = vmatmul.msk.bf16.vlgmr.msrb.gmra.mxu1 %vm1988_vm4, %v9293_v16  ;;  %v7243_v1 = vld [vmem:[#allocation2 + $0xe4] sm:$0xf0]  ;;  %v7239_v4 = vld [vmem:[#allocation2 + $0xcc] sm:$0xf]  ;;  %v5627_v6 = vor.u32 %v7303_v60, %v5624_v61  ;;  %v7328_v55 = vld [vmem:[#allocation2 + $0x394] sm:$0xf] }
 0x37e   :  { %2059 = vmatpush.bf16.msra.mxu3 %v5687_v22  ;;  %2084 = vmatpush.bf16.msra.mxu1 %v5723_v32  ;;  %v5558_v2 = vld [vmem:[#allocation2 + $0x248] sm:$0xf]  ;;  %v5368_v5 = vld [vmem:[#allocation2 + $0xe8] sm:$0xf0]  ;;  %v5367_v7 = vor.u32 %v7243_v1, %v5366_v0  ;;  %v5728_v56 = vld [vmem:[#allocation2 + $0x3b0] sm:$0xf0] }
 0x37f   :  { %v7291_v3 = vld [vmem:[#allocation2 + $0x264] sm:$0xf0]  ;;  %v7295_v8 = vld [vmem:[#allocation2 + $0x28c] sm:$0xf]  ;;  %v5371_v11 = vor.u32 %v7239_v4, %v5368_v5  ;;  %v7264_v61 = vld [vmem:[#allocation2 + $0x194] sm:$0xf]  ;;  %v5731_v0 = vor.u32 %v7328_v55, %v5728_v56 }
 0x380   :  { %2045 = vmatpush.bf16.msra.mxu2 %v5463_v33  ;;  %2071 = vmatpush.bf16.msra.mxu0 %v5467_v38  ;;  %v5592_v9 = vld [vmem:[#allocation2 + $0x2a8] sm:$0xf0]  ;;  %v5559_v10 = vor.u32 %v7291_v3, %v5558_v2  ;;  %v5334_v12 = vld [vmem:[#allocation2 + $0x88] sm:$0xf]  ;;  %v5406_v1 = vld [vmem:[#allocation2 + $0x110] sm:$0xf] }
 0x381   :  { %v7235_v13 = vld [vmem:[#allocation2 + $0xa4] sm:$0xf0]  ;;  %v7231_v17 = vld [vmem:[#allocation2 + $0x8c] sm:$0xf]  ;;  %v5595_v19 = vor.u32 %v7295_v8, %v5592_v9  ;;  %v5694_v2 = vld [vmem:[#allocation2 + $0x350] sm:$0xf] }
 0x382   :  { %2060 = vmatpush.bf16.msra.mxu3 %v5655_v37  ;;  %2085 = vmatpush.bf16.msra.mxu1 %v5691_v46  ;;  %v5526_v14 = vld [vmem:[#allocation2 + $0x208] sm:$0xf]  ;;  %v5336_v18 = vld [vmem:[#allocation2 + $0xa8] sm:$0xf0]  ;;  %v5335_v22 = vor.u32 %v7235_v13, %v5334_v12  ;;  %v7268_v37 = vld [vmem:[#allocation2 + $0x1ac] sm:$0xf0] }
 0x383   :  { %v7283_v15 = vld [vmem:[#allocation2 + $0x224] sm:$0xf0]  ;;  %v7287_v23 = vld [vmem:[#allocation2 + $0x24c] sm:$0xf]  ;;  %v5339_v25 = vor.u32 %v7231_v17, %v5336_v18  ;;  %v5471_v49 = vor.u32 %v7268_v37, %v5470_v34  ;;  %v7324_v3 = vld [vmem:[#allocation2 + $0x36c] sm:$0xf0] }
 0x384   :  { %2046 = vmatpush.bf16.msra.mxu2 %v5431_v47  ;;  %2072 = vmatpush.bf16.msra.mxu0 %v5435_v51  ;;  %v5560_v24 = vld [vmem:[#allocation2 + $0x268] sm:$0xf0]  ;;  %v5527_v26 = vor.u32 %v7283_v15, %v5526_v14  ;;  %v5302_v27 = vld [vmem:[#allocation2 + $0x48] sm:$0xf]  ;;  %v7272_v47 = vld [vmem:[#allocation2 + $0x1d4] sm:$0xf]  ;;  %v5695_v8 = vor.u32 %v7324_v3, %v5694_v2 }
 0x385   :  { %v7227_v28 = vld [vmem:[#allocation2 + $0x64] sm:$0xf0]  ;;  %v7223_v32 = vld [vmem:[#allocation2 + $0x4c] sm:$0xf]  ;;  %v5563_v36 = vor.u32 %v7287_v23, %v5560_v24  ;;  %v5726_v51 = vld [vmem:[#allocation2 + $0x390] sm:$0xf] }
 0x386   :  { %2061 = vmatpush.bf16.msra.mxu3 %v5623_v50  ;;  %2086 = vmatpush.bf16.msra.mxu1 %v5659_v58  ;;  %v5304_v33 = vld [vmem:[#allocation2 + $0x68] sm:$0xf0]  ;;  %v5270_v38 = vld [vmem:[#allocation2 + $0x8] sm:$0xf]  ;;  %v5303_v41 = vor.u32 %v7227_v28, %v5302_v27  ;;  %v5438_v50 = vld [vmem:[#allocation2 + $0x150] sm:$0xf]  ;;  %v5507_v58 = vor.u32 %v7272_v47, %v5504_v48  ;;  %v5727_v60 = vor.u32 %v7332_v52, %v5726_v51 }
 0x387   :  { %v7219_v39 = vld [vmem:[#allocation2 + $0x24] sm:$0xf0]  ;;  %v7215_v42 = vld [vmem:[#allocation2 + $0xc] sm:$0xf]  ;;  %v5307_v45 = vor.u32 %v7223_v32, %v5304_v33  ;;  %v7252_v4 = vld [vmem:[#allocation2 + $0x12c] sm:$0xf0] }
 0x388   :  { %2047 = vmatpush.bf16.msra.mxu2 %v5399_v59  ;;  %2073 = vmatpush.bf16.msra.mxu0 %v5403_v63  ;;  %v7279_v43 = vld [vmem:[#allocation2 + $0x20c] sm:$0xf]  ;;  %v5271_v57 = vor.u32 %v7219_v39, %v5270_v38  ;;  %v5439_v63 = vor.u32 %v7260_v54, %v5438_v50  ;;  %v7320_v5 = vld [vmem:[#allocation2 + $0x354] sm:$0xf]  ;;  %v5374_v13 = vld [vmem:[#allocation2 + $0xd0] sm:$0xf] }
 0x389   :  { %v5528_v44 = vld [vmem:[#allocation2 + $0x228] sm:$0xf0]  ;;  %v7256_v9 = vld [vmem:[#allocation2 + $0x154] sm:$0xf]  ;;  %v5662_v14 = vld [vmem:[#allocation2 + $0x310] sm:$0xf] }
 0x38a   :  { %2062 = vmatpush.bf16.msra.mxu3 %v5591_v62  ;;  %2087 = vmatpush.bf16.msra.mxu1 %v5627_v6  ;;  %v5272_v46 = vld [vmem:[#allocation2 + $0x28] sm:$0xf0]  ;;  %v5531_v53 = vor.u32 %v7279_v43, %v5528_v44  ;;  %v5472_v62 = vld [vmem:[#allocation2 + $0x1b0] sm:$0xf0]  ;;  %v7316_v15 = vld [vmem:[#allocation2 + $0x32c] sm:$0xf0] }
 0x38b   :  { %v5275_v59 = vor.u32 %v7215_v42, %v5272_v46  ;;  %v5696_v6 = vld [vmem:[#allocation2 + $0x370] sm:$0xf0]  ;;  %v7244_v17 = vld [vmem:[#allocation2 + $0xec] sm:$0xf0]  ;;  %v5663_v21 = vor.u32 %v7316_v15, %v5662_v14  ;;  %v7273_v14 = vld [vmem:[#allocation2 + $0x1dc] sm:$0xf] }
 0x38c   :  { %2048 = vmatpush.bf16.msra.mxu2 %v5367_v7  ;;  %2074 = vmatpush.bf16.msra.mxu0 %v5371_v11  ;;  %v5475_v7 = vor.u32 %v7264_v61, %v5472_v62  ;;  %v5407_v11 = vor.u32 %v7252_v4, %v5406_v1  ;;  %v5699_v12 = vor.u32 %v7320_v5, %v5696_v6  ;;  %v7312_v18 = vld [vmem:[#allocation2 + $0x314] sm:$0xf]  ;;  %v5630_v27 = vld [vmem:[#allocation2 + $0x2d0] sm:$0xf]  ;;  %v5734_v61 = vld [vmem:[#allocation2 + $0x398] sm:$0xf] }
 0x38d   :  { %v5408_v23 = vld [vmem:[#allocation2 + $0x130] sm:$0xf0]  ;;  %v5375_v24 = vor.u32 %v7244_v17, %v5374_v13  ;;  %v7308_v28 = vld [vmem:[#allocation2 + $0x2ec] sm:$0xf0]  ;;  %v7333_v62 = vld [vmem:[#allocation2 + $0x3b4] sm:$0xf0] }
 0x38e   :  { %2063 = vmatpush.bf16.msra.mxu3 %v5559_v10  ;;  %2088 = vmatpush.bf16.msra.mxu1 %v5595_v19  ;;  %v5440_v10 = vld [vmem:[#allocation2 + $0x170] sm:$0xf0]  ;;  %v5310_v42 = vld [vmem:[#allocation2 + $0x50] sm:$0xf]  ;;  %v7325_v13 = vld [vmem:[#allocation2 + $0x374] sm:$0xf0] }
 0x38f   :  { %v5664_v19 = vld [vmem:[#allocation2 + $0x330] sm:$0xf0]  ;;  %v5443_v20 = vor.u32 %v7256_v9, %v5440_v10  ;;  %v5598_v43 = vld [vmem:[#allocation2 + $0x290] sm:$0xf]  ;;  %v5510_v9 = vld [vmem:[#allocation2 + $0x1d8] sm:$0xf] }
 0x390   :  { %2049 = vmatpush.bf16.msra.mxu2 %v5335_v22  ;;  %2075 = vmatpush.bf16.msra.mxu0 %v5339_v25  ;;  %v7248_v22 = vld [vmem:[#allocation2 + $0x114] sm:$0xf]  ;;  %v5342_v25 = vld [vmem:[#allocation2 + $0x90] sm:$0xf]  ;;  %v7277_v10 = vld [vmem:[#allocation2 + $0x1f4] sm:$0xf0] }
 0x391   :  { %v7304_v32 = vld [vmem:[#allocation2 + $0x2d4] sm:$0xf]  ;;  %v5411_v34 = vor.u32 %v7248_v22, %v5408_v23  ;;  %v7300_v44 = vld [vmem:[#allocation2 + $0x2ac] sm:$0xf0]  ;;  %v5512_v15 = vld [vmem:[#allocation2 + $0x1f8] sm:$0xf0] }
 0x392   :  { %2064 = vmatpush.bf16.msra.mxu3 %v5527_v26  ;;  %2089 = vmatpush.bf16.msra.mxu1 %v5563_v36  ;;  %v5667_v26 = vor.u32 %v7312_v18, %v5664_v19  ;;  %v5632_v33 = vld [vmem:[#allocation2 + $0x2f0] sm:$0xf0]  ;;  %v5631_v36 = vor.u32 %v7308_v28, %v5630_v27  ;;  %v5278_v54 = vld [vmem:[#allocation2 + $0x10] sm:$0xf]  ;;  %v7329_v22 = vld [vmem:[#allocation2 + $0x39c] sm:$0xf] }
 0x393   :  { %v7240_v37 = vld [vmem:[#allocation2 + $0xd4] sm:$0xf]  ;;  %v5566_v55 = vld [vmem:[#allocation2 + $0x250] sm:$0xf]  ;;  %v5736_v23 = vld [vmem:[#allocation2 + $0x3b8] sm:$0xf0] }
 0x394   :  { %2050 = vmatpush.bf16.msra.mxu2 %v5303_v41  ;;  %2076 = vmatpush.bf16.msra.mxu0 %v5307_v45  ;;  %v5376_v38 = vld [vmem:[#allocation2 + $0xf0] sm:$0xf0]  ;;  %v5635_v41 = vor.u32 %v7304_v32, %v5632_v33  ;;  %v7228_v45 = vld [vmem:[#allocation2 + $0x6c] sm:$0xf0]  ;;  %v7269_v27 = vld [vmem:[#allocation2 + $0x1b4] sm:$0xf0] }
 0x395   :  { %5742 = vmatmul.msk.bf16.vlgmr.msra.gmra.mxu3 %vm1988_vm4, %v9293_v16  ;;  %v7296_v46 = vld [vmem:[#allocation2 + $0x294] sm:$0xf]  ;;  %v5379_v48 = vor.u32 %v7240_v37, %v5376_v38  ;;  %v5311_v52 = vor.u32 %v7228_v45, %v5310_v42  ;;  %v7292_v56 = vld [vmem:[#allocation2 + $0x26c] sm:$0xf0]  ;;  %v5670_v28 = vld [vmem:[#allocation2 + $0x318] sm:$0xf] }
 0x396   :  { %2096 = vmatpush.bf16.msrb.mxu3 %v5503_v29  ;;  %2090 = vmatpush.bf16.msra.mxu1 %v5531_v53  ;;  %v7236_v29 = vld [vmem:[#allocation2 + $0xac] sm:$0xf0]  ;;  %v5600_v47 = vld [vmem:[#allocation2 + $0x2b0] sm:$0xf0]  ;;  %v7317_v32 = vld [vmem:[#allocation2 + $0x334] sm:$0xf0] }
 0x397   :  { %v5343_v39 = vor.u32 %v7236_v29, %v5342_v25  ;;  %v7232_v50 = vld [vmem:[#allocation2 + $0x94] sm:$0xf]  ;;  %v5603_v53 = vor.u32 %v7296_v46, %v5600_v47  ;;  %v7284_v5 = vld [vmem:[#allocation2 + $0x22c] sm:$0xf0]  ;;  %v5478_v25 = vld [vmem:[#allocation2 + $0x198] sm:$0xf] }
 0x398   :  { %2051 = vmatpush.bf16.msra.mxu2 %v5271_v57  ;;  %2077 = vmatpush.bf16.msra.mxu0 %v5275_v59  ;;  %v5344_v51 = vld [vmem:[#allocation2 + $0xb0] sm:$0xf0]  ;;  %v7220_v57 = vld [vmem:[#allocation2 + $0x2c] sm:$0xf0]  ;;  %v7265_v33 = vld [vmem:[#allocation2 + $0x19c] sm:$0xf]  ;;  %v5479_v37 = vor.u32 %v7269_v27, %v5478_v25 }
 0x399   :  { %5743 = vmatmul.msk.bf16.vlgmr.msra.gmra.mxu1 %vm1988_vm4, %v9293_v16  ;;  %v5568_v59 = vld [vmem:[#allocation2 + $0x270] sm:$0xf0]  ;;  %v5279_v3 = vor.u32 %v7220_v57, %v5278_v54  ;;  %v7321_v38 = vld [vmem:[#allocation2 + $0x35c] sm:$0xf]  ;;  %v5638_v45 = vld [vmem:[#allocation2 + $0x2d8] sm:$0xf] }
 0x39a   :  { %2097 = vmatpush.bf16.msrb.mxu3 %v5471_v49  ;;  %2122 = vmatpush.bf16.msrb.mxu1 %v5507_v58  ;;  %v5599_v49 = vor.u32 %v7300_v44, %v5598_v43  ;;  %v7288_v58 = vld [vmem:[#allocation2 + $0x254] sm:$0xf]  ;;  %v5446_v43 = vld [vmem:[#allocation2 + $0x158] sm:$0xf]  ;;  %v7257_v47 = vld [vmem:[#allocation2 + $0x15c] sm:$0xf] }
 0x39b   :  { %2052 = vmatmul.bf16.vlgmr.msra.gmra.mxu2 %v9295_v31  ;;  %2078 = vmatmul.bf16.vlgmr.msra.gmra.mxu0 %v9295_v31  ;;  %v7224_v1 = vld [vmem:[#allocation2 + $0x54] sm:$0xf]  ;;  %v5571_v4 = vor.u32 %v7288_v58, %v5568_v59  ;;  %v7261_v44 = vld [vmem:[#allocation2 + $0x174] sm:$0xf0]  ;;  %v7249_v59 = vld [vmem:[#allocation2 + $0x11c] sm:$0xf] }
 0x39c   :  { %2110 = vmatpush.bf16.msrb.mxu2 %v5727_v60  ;;  %2136 = vmatpush.bf16.msrb.mxu0 %v5731_v0  ;;  %v5347_v60 = vor.u32 %v7232_v50, %v5344_v51  ;;  %v5534_v0 = vld [vmem:[#allocation2 + $0x210] sm:$0xf]  ;;  %v5312_v2 = vld [vmem:[#allocation2 + $0x70] sm:$0xf0]  ;;  %v7309_v46 = vld [vmem:[#allocation2 + $0x2f4] sm:$0xf0]  ;;  %v5447_v50 = vor.u32 %v7261_v44, %v5446_v43 }
 0x39d   :  { %v7280_v6 = vld [vmem:[#allocation2 + $0x214] sm:$0xf]  ;;  %v5535_v17 = vor.u32 %v7284_v5, %v5534_v0  ;;  %v7313_v51 = vld [vmem:[#allocation2 + $0x31c] sm:$0xf]  ;;  %v5606_v57 = vld [vmem:[#allocation2 + $0x298] sm:$0xf] }
 0x39e   :  { %2098 = vmatpush.bf16.msrb.mxu3 %v5439_v63  ;;  %2123 = vmatpush.bf16.msrb.mxu1 %v5475_v7  ;;  %v5567_v63 = vor.u32 %v7292_v56, %v5566_v55  ;;  %v5536_v7 = vld [vmem:[#allocation2 + $0x230] sm:$0xf0]  ;;  %v5414_v55 = vld [vmem:[#allocation2 + $0x118] sm:$0xf]  ;;  %v5640_v0 = vld [vmem:[#allocation2 + $0x2f8] sm:$0xf0] }
 0x39f   :  { %v7216_v18 = vld [vmem:[#allocation2 + $0x14] sm:$0xf]  ;;  %v7253_v56 = vld [vmem:[#allocation2 + $0x134] sm:$0xf0]  ;;  %v7289_v25 = vld [vmem:[#allocation2 + $0x25c] sm:$0xf] }
 0x3a0   :  { %2111 = vmatpush.bf16.msrb.mxu2 %v5695_v8  ;;  %2137 = vmatpush.bf16.msrb.mxu0 %v5699_v12  ;;  %v5735_v8 = vor.u32 %v7333_v62, %v5734_v61  ;;  %v5315_v12 = vor.u32 %v7224_v1, %v5312_v2  ;;  %v5280_v19 = vld [vmem:[#allocation2 + $0x30] sm:$0xf0]  ;;  %v7301_v58 = vld [vmem:[#allocation2 + $0x2b4] sm:$0xf0]  ;;  %v5415_v62 = vor.u32 %v7253_v56, %v5414_v55  ;;  %v5576_v27 = vld [vmem:[#allocation2 + $0x278] sm:$0xf0] }
 0x3a1   :  { %v5283_v29 = vor.u32 %v7216_v18, %v5280_v19  ;;  %v5607_v1 = vor.u32 %v7301_v58, %v5606_v57  ;;  %v5574_v5 = vld [vmem:[#allocation2 + $0x258] sm:$0xf]  ;;  %v7450_v55 = vld [vmem:[#allocation2 + $0x75c] sm:$0xf0]  ;;  %v7446_v58 = vld [vmem:[#allocation2 + $0x744] sm:$0xf] }
 0x3a2   :  { %2099 = vmatpush.bf16.msrb.mxu3 %v5407_v11  ;;  %2124 = vmatpush.bf16.msrb.mxu1 %v5443_v20  ;;  %v5702_v11 = vld [vmem:[#allocation2 + $0x358] sm:$0xf]  ;;  %v5539_v20 = vor.u32 %v7280_v6, %v5536_v7  ;;  %v7241_v7 = vld [vmem:[#allocation2 + $0xdc] sm:$0xf]  ;;  %v7378_v57 = vld [vmem:[#allocation2 + $0x51c] sm:$0xf0] }
 0x3a3   :  { %v7293_v6 = vld [vmem:[#allocation2 + $0x274] sm:$0xf0] }
 0x3a4   :  { %2112 = vmatpush.bf16.msrb.mxu2 %v5663_v21  ;;  %2138 = vmatpush.bf16.msrb.mxu0 %v5667_v26  ;;  %v5511_v21 = vor.u32 %v7277_v10, %v5510_v9  ;;  %v5515_v26 = vor.u32 %v7273_v14, %v5512_v15  ;;  %v5350_v15 = vld [vmem:[#allocation2 + $0x98] sm:$0xf] }
 0x3a5   :  { %v5542_v18 = vld [vmem:[#allocation2 + $0x218] sm:$0xf] }
 0x3a6   :  { %2100 = vmatpush.bf16.msrb.mxu3 %v5375_v24  ;;  %2125 = vmatpush.bf16.msrb.mxu1 %v5411_v34  ;;  %v5703_v24 = vor.u32 %v7325_v13, %v5702_v11  ;;  %v5480_v34 = vld [vmem:[#allocation2 + $0x1b8] sm:$0xf0]  ;;  %v5575_v13 = vor.u32 %v7293_v6, %v5574_v5  ;;  %v7285_v19 = vld [vmem:[#allocation2 + $0x234] sm:$0xf0]  ;;  %v6166_v5 = vld [vmem:[#allocation2 + $0x700] sm:$0xf] }
 0x3a7   :  { %v5483_v42 = vor.u32 %v7265_v33, %v5480_v34  ;;  %v7297_v11 = vld [vmem:[#allocation2 + $0x29c] sm:$0xf]  ;;  %v7229_v33 = vld [vmem:[#allocation2 + $0x74] sm:$0xf0]  ;;  %v7442_v6 = vld [vmem:[#allocation2 + $0x71c] sm:$0xf0] }
 0x3a8   :  { %2113 = vmatpush.bf16.msrb.mxu2 %v5631_v36  ;;  %2139 = vmatpush.bf16.msrb.mxu0 %v5635_v41  ;;  %v5739_v36 = vor.u32 %v7329_v22, %v5736_v23  ;;  %v5671_v41 = vor.u32 %v7317_v32, %v5670_v28  ;;  %v5974_v23 = vld [vmem:[#allocation2 + $0x580] sm:$0xf]  ;;  %v5543_v28 = vor.u32 %v7285_v19, %v5542_v18  ;;  %v5318_v32 = vld [vmem:[#allocation2 + $0x58] sm:$0xf] }
 0x3a9   :  { %v7221_v43 = vld [vmem:[#allocation2 + $0x34] sm:$0xf0]  ;;  %v5319_v44 = vor.u32 %v7229_v33, %v5318_v32  ;;  %v6134_v18 = vld [vmem:[#allocation2 + $0x6c0] sm:$0xf] }
 0x3aa   :  { %2101 = vmatpush.bf16.msrb.mxu3 %v5343_v39  ;;  %2126 = vmatpush.bf16.msrb.mxu1 %v5379_v48  ;;  %v5704_v39 = vld [vmem:[#allocation2 + $0x378] sm:$0xf0]  ;;  %v7434_v19 = vld [vmem:[#allocation2 + $0x6dc] sm:$0xf0] }
 0x3ab   :  { %v5448_v48 = vld [vmem:[#allocation2 + $0x178] sm:$0xf0]  ;;  %v6102_v32 = vld [vmem:[#allocation2 + $0x680] sm:$0xf] }
 0x3ac   :  { %2114 = vmatpush.bf16.msrb.mxu2 %v5599_v49  ;;  %2140 = vmatpush.bf16.msrb.mxu0 %v5603_v53  ;;  %v5707_v49 = vor.u32 %v7321_v38, %v5704_v39  ;;  %v5639_v53 = vor.u32 %v7309_v46, %v5638_v45  ;;  %v5451_v54 = vor.u32 %v7257_v47, %v5448_v48  ;;  %v5942_v38 = vld [vmem:[#allocation2 + $0x540] sm:$0xf]  ;;  %v7217_v45 = vld [vmem:[#allocation2 + $0x1c] sm:$0xf] }
 0x3ad   :  { %v5579_v39 = vor.u32 %v7289_v25, %v5576_v27  ;;  %v7281_v46 = vld [vmem:[#allocation2 + $0x21c] sm:$0xf]  ;;  %v5880_v25 = vld [vmem:[#allocation2 + $0x4e0] sm:$0xf0]  ;;  %v7426_v33 = vld [vmem:[#allocation2 + $0x69c] sm:$0xf0] }
 0x3ae   :  { %2102 = vmatpush.bf16.msrb.mxu3 %v5311_v52  ;;  %2127 = vmatpush.bf16.msrb.mxu1 %v5347_v60  ;;  %v5672_v52 = vld [vmem:[#allocation2 + $0x338] sm:$0xf0] }
 0x3af   :  { %v5416_v60 = vld [vmem:[#allocation2 + $0x138] sm:$0xf0]  ;;  %v5675_v61 = vor.u32 %v7313_v51, %v5672_v52  ;;  %v5976_v51 = vld [vmem:[#allocation2 + $0x5a0] sm:$0xf0] }
 0x3b0   :  { %2115 = vmatpush.bf16.msrb.mxu2 %v5567_v63  ;;  %2141 = vmatpush.bf16.msrb.mxu0 %v5571_v4  ;;  %v7305_v63 = vld [vmem:[#allocation2 + $0x2dc] sm:$0xf]  ;;  %v5419_v2 = vor.u32 %v7249_v59, %v5416_v60  ;;  %v7245_v4 = vld [vmem:[#allocation2 + $0xf4] sm:$0xf0]  ;;  %v6200_v59 = vld [vmem:[#allocation2 + $0x760] sm:$0xf0] }
 0x3b1   :  { %v5643_v9 = vor.u32 %v7305_v63, %v5640_v0  ;;  %v5544_v47 = vld [vmem:[#allocation2 + $0x238] sm:$0xf0]  ;;  %v7382_v0 = vld [vmem:[#allocation2 + $0x544] sm:$0xf] }
 0x3b2   :  { %2103 = vmatpush.bf16.msrb.mxu3 %v5279_v3  ;;  %2128 = vmatpush.bf16.msrb.mxu1 %v5315_v12  ;;  %v5382_v3 = vld [vmem:[#allocation2 + $0xd8] sm:$0xf]  ;;  %v5608_v12 = vld [vmem:[#allocation2 + $0x2b8] sm:$0xf0]  ;;  %v5547_v56 = vor.u32 %v7281_v46, %v5544_v47  ;;  %v7346_v46 = vld [vmem:[#allocation2 + $0x41c] sm:$0xf0] }
 0x3b3   :  { %v5383_v10 = vor.u32 %v7245_v4, %v5382_v3  ;;  %v5611_v22 = vor.u32 %v7297_v11, %v5608_v12  ;;  %v6203_v3 = vor.u32 %v7446_v58, %v6200_v59  ;;  %v5878_v4 = vld [vmem:[#allocation2 + $0x4c0] sm:$0xf]  ;;  %v6167_v11 = vor.u32 %v7442_v6, %v6166_v5  ;;  %v7374_v12 = vld [vmem:[#allocation2 + $0x504] sm:$0xf] }
 0x3b4   :  { %2116 = vmatpush.bf16.msrb.mxu2 %v5535_v17  ;;  %2142 = vmatpush.bf16.msrb.mxu0 %v5539_v20  ;;  %v7237_v17 = vld [vmem:[#allocation2 + $0xb4] sm:$0xf0]  ;;  %v7233_v20 = vld [vmem:[#allocation2 + $0x9c] sm:$0xf]  ;;  %v7414_v47 = vld [vmem:[#allocation2 + $0x644] sm:$0xf] }
 0x3b5   :  { %2104 = vmatmul.bf16.vlgmr.msrb.gmra.mxu3 %v9295_v31  ;;  %v7338_v58 = vld [vmem:[#allocation2 + $0x3dc] sm:$0xf0]  ;;  %v7406_v59 = vld [vmem:[#allocation2 + $0x604] sm:$0xf] }
 0x3b6   :  { %2162 = vmatpush.bf16.msra.mxu3 %v5735_v8  ;;  %2129 = vmatpush.bf16.msrb.mxu1 %v5283_v29  ;;  %v5384_v8 = vld [vmem:[#allocation2 + $0xf8] sm:$0xf0] }
 0x3b7   :  { %5744 = vmatmul.msk.bf16.vlgmr.msrb.gmra.mxu2 %vm1988_vm4, %v9293_v16  ;;  %5745 = vmatmul.msk.bf16.vlgmr.msrb.gmra.mxu0 %vm1988_vm4, %v9293_v16  ;;  %v5387_v14 = vor.u32 %v7241_v7, %v5384_v8  ;;  %v7370_v7 = vld [vmem:[#allocation2 + $0x4dc] sm:$0xf0]  ;;  %v7438_v8 = vld [vmem:[#allocation2 + $0x704] sm:$0xf] }
 0x3b8   :  { %2148 = vmatpush.bf16.msra.mxu2 %v5511_v21  ;;  %2174 = vmatpush.bf16.msra.mxu0 %v5515_v26  ;;  %v5352_v21 = vld [vmem:[#allocation2 + $0xb8] sm:$0xf0]  ;;  %v5351_v26 = vor.u32 %v7237_v17, %v5350_v15  ;;  %v5846_v17 = vld [vmem:[#allocation2 + $0x480] sm:$0xf] }
 0x3b9   :  { %2130 = vmatmul.bf16.vlgmr.msrb.gmra.mxu1 %v9295_v31  ;;  %v5355_v29 = vor.u32 %v7233_v20, %v5352_v21  ;;  %v7362_v20 = vld [vmem:[#allocation2 + $0x49c] sm:$0xf0]  ;;  %v7430_v21 = vld [vmem:[#allocation2 + $0x6c4] sm:$0xf] }
 0x3ba   :  { %2163 = vmatpush.bf16.msra.mxu3 %v5703_v24  ;;  %2188 = vmatpush.bf16.msra.mxu1 %v5739_v36  ;;  %v7394_v24 = vld [vmem:[#allocation2 + $0x59c] sm:$0xf0]  ;;  %v7225_v36 = vld [vmem:[#allocation2 + $0x5c] sm:$0xf]  ;;  %v5847_v27 = vor.u32 %v7362_v20, %v5846_v17  ;;  %v7391_v17 = vld [vmem:[#allocation2 + $0x58c] sm:$0xf] }
 0x3bb   :  { %v5975_v34 = vor.u32 %v7394_v24, %v5974_v23  ;;  %v6135_v24 = vor.u32 %v7434_v19, %v6134_v18  ;;  %v5984_v18 = vld [vmem:[#allocation2 + $0x5a8] sm:$0xf0]  ;;  %v2352_v19 = vunpack.c.h.b16 %v9285_v30 }
 0x3bc   :  { %2149 = vmatpush.bf16.msra.mxu2 %v5479_v37  ;;  %2175 = vmatpush.bf16.msra.mxu0 %v5483_v42  ;;  %v5320_v37 = vld [vmem:[#allocation2 + $0x78] sm:$0xf0]  ;;  %v5286_v42 = vld [vmem:[#allocation2 + $0x18] sm:$0xf] }
 0x3bd   :  { %v5323_v48 = vor.u32 %v7225_v36, %v5320_v37  ;;  %v5287_v60 = vor.u32 %v7221_v43, %v5286_v42  ;;  %v7422_v36 = vld [vmem:[#allocation2 + $0x684] sm:$0xf]  ;;  %v5782_v43 = vld [vmem:[#allocation2 + $0x400] sm:$0xf] }
 0x3be   :  { %2164 = vmatpush.bf16.msra.mxu3 %v5671_v41  ;;  %2189 = vmatpush.bf16.msra.mxu1 %v5707_v49  ;;  %v7386_v41 = vld [vmem:[#allocation2 + $0x55c] sm:$0xf0]  ;;  %v5288_v49 = vld [vmem:[#allocation2 + $0x38] sm:$0xf0]  ;;  %v6104_v37 = vld [vmem:[#allocation2 + $0x6a0] sm:$0xf0] }
 0x3bf   :  { %v5943_v52 = vor.u32 %v7386_v41, %v5942_v38  ;;  %v6103_v38 = vor.u32 %v7426_v33, %v6102_v32  ;;  %v6107_v42 = vor.u32 %v7422_v36, %v6104_v37  ;;  %v5950_v32 = vld [vmem:[#allocation2 + $0x548] sm:$0xf]  ;;  %v7383_v37 = vld [vmem:[#allocation2 + $0x54c] sm:$0xf] }
 0x3c0   :  { %2150 = vmatpush.bf16.msra.mxu2 %v5447_v50  ;;  %2176 = vmatpush.bf16.msra.mxu0 %v5451_v54  ;;  %v7390_v50 = vld [vmem:[#allocation2 + $0x584] sm:$0xf]  ;;  %v6198_v54 = vld [vmem:[#allocation2 + $0x740] sm:$0xf]  ;;  %v7387_v33 = vld [vmem:[#allocation2 + $0x564] sm:$0xf0] }
 0x3c1   :  { %v6199_v63 = vor.u32 %v7450_v55, %v6198_v54  ;;  %v5750_v55 = vld [vmem:[#allocation2 + $0x3c0] sm:$0xf]  ;;  %v7435_v36 = vld [vmem:[#allocation2 + $0x6e4] sm:$0xf0] }
 0x3c2   :  { %2165 = vmatpush.bf16.msra.mxu3 %v5639_v53  ;;  %2190 = vmatpush.bf16.msra.mxu1 %v5675_v61  ;;  %v5910_v53 = vld [vmem:[#allocation2 + $0x500] sm:$0xf]  ;;  %v5979_v61 = vor.u32 %v7390_v50, %v5976_v51  ;;  %v7350_v51 = vld [vmem:[#allocation2 + $0x444] sm:$0xf]  ;;  %v5751_v5 = vor.u32 %v7338_v58, %v5750_v55  ;;  %v7371_v58 = vld [vmem:[#allocation2 + $0x4e4] sm:$0xf0] }
 0x3c4   :  { %2151 = vmatpush.bf16.msra.mxu2 %v5415_v62  ;;  %2177 = vmatpush.bf16.msra.mxu0 %v5419_v2  ;;  %v5291_v62 = vor.u32 %v7217_v45, %v5288_v49  ;;  %v5911_v2 = vor.u32 %v7378_v57, %v5910_v53  ;;  %v7418_v45 = vld [vmem:[#allocation2 + $0x65c] sm:$0xf0]  ;;  %v5783_v53 = vor.u32 %v7346_v46, %v5782_v43  ;;  %v7379_v46 = vld [vmem:[#allocation2 + $0x524] sm:$0xf0] }
 0x3c5   :  { %v7410_v57 = vld [vmem:[#allocation2 + $0x61c] sm:$0xf0] }
 0x3c6   :  { %2166 = vmatpush.bf16.msra.mxu3 %v5607_v1  ;;  %2191 = vmatpush.bf16.msra.mxu1 %v5643_v9  ;;  %v5944_v1 = vld [vmem:[#allocation2 + $0x560] sm:$0xf0] }
 0x3c7   :  { %v6168_v9 = vld [vmem:[#allocation2 + $0x720] sm:$0xf0] }
 0x3c8   :  { %2152 = vmatpush.bf16.msra.mxu2 %v5383_v10  ;;  %2178 = vmatpush.bf16.msra.mxu0 %v5387_v14  ;;  %v5947_v10 = vor.u32 %v7382_v0, %v5944_v1  ;;  %v5879_v14 = vor.u32 %v7370_v7, %v5878_v4  ;;  %v6171_v15 = vor.u32 %v7438_v8, %v6168_v9  ;;  %v6006_v1 = vld [vmem:[#allocation2 + $0x5c0] sm:$0xf]  ;;  %v2351_v4 = vunpack.c.l.b16 %v9285_v30  ;;  %v7398_v8 = vld [vmem:[#allocation2 + $0x5c4] sm:$0xf] }
 0x3c9   :  { %v7402_v7 = vld [vmem:[#allocation2 + $0x5dc] sm:$0xf0]  ;;  %v6008_v9 = vld [vmem:[#allocation2 + $0x5e0] sm:$0xf0] }
 0x3ca   :  { %2167 = vmatpush.bf16.msra.mxu3 %v5575_v13  ;;  %2192 = vmatpush.bf16.msra.mxu1 %v5611_v22  ;;  %v5912_v13 = vld [vmem:[#allocation2 + $0x520] sm:$0xf0]  ;;  %v6007_v20 = vor.u32 %v7402_v7, %v6006_v1  ;;  %v7423_v1 = vld [vmem:[#allocation2 + $0x68c] sm:$0xf]  ;;  %v6046_v7 = vld [vmem:[#allocation2 + $0x608] sm:$0xf] }
 0x3cb   :  { %v6136_v22 = vld [vmem:[#allocation2 + $0x6e0] sm:$0xf0]  ;;  %v5915_v23 = vor.u32 %v7374_v12, %v5912_v13  ;;  %v7395_v12 = vld [vmem:[#allocation2 + $0x5a4] sm:$0xf0] }
 0x3cc   :  { %2153 = vmatpush.bf16.msra.mxu2 %v5351_v26  ;;  %2179 = vmatpush.bf16.msra.mxu0 %v5355_v29  ;;  %v7366_v26 = vld [vmem:[#allocation2 + $0x4c4] sm:$0xf]  ;;  %v5814_v29 = vld [vmem:[#allocation2 + $0x440] sm:$0xf]  ;;  %v6174_v13 = vld [vmem:[#allocation2 + $0x708] sm:$0xf] }
 0x3ce   :  { %2168 = vmatpush.bf16.msra.mxu3 %v5543_v28  ;;  %2193 = vmatpush.bf16.msra.mxu1 %v5579_v39  ;;  %v6139_v28 = vor.u32 %v7430_v21, %v6136_v22  ;;  %v7358_v39 = vld [vmem:[#allocation2 + $0x484] sm:$0xf] }
 0x3cf   :  { %v7334_v21 = vld [vmem:[#allocation2 + $0x3c4] sm:$0xf] }
 0x3d0   :  { %2154 = vmatpush.bf16.msra.mxu2 %v5319_v44  ;;  %2180 = vmatpush.bf16.msra.mxu0 %v5323_v48  ;;  %v6070_v44 = vld [vmem:[#allocation2 + $0x640] sm:$0xf]  ;;  %v6072_v48 = vld [vmem:[#allocation2 + $0x660] sm:$0xf0] }
 0x3d1   :  { %5746 = vmatmul.msk.bf16.vlgmr.msra.gmra.mxu3 %vm1988_vm4, %v9293_v16  ;;  %v6071_v50 = vor.u32 %v7418_v45, %v6070_v44  ;;  %v6075_v54 = vor.u32 %v7414_v47, %v6072_v48  ;;  %v5752_v22 = vld [vmem:[#allocation2 + $0x3e0] sm:$0xf0]  ;;  %v5918_v45 = vld [vmem:[#allocation2 + $0x508] sm:$0xf] }
 0x3d2   :  { %2959 = vmatpush.bf16.msrb.mxu3 %v5975_v34  ;;  %2194 = vmatpush.bf16.msra.mxu1 %v5547_v56  ;;  %v7354_v34 = vld [vmem:[#allocation2 + $0x45c] sm:$0xf0]  ;;  %v5755_v30 = vor.u32 %v7334_v21, %v5752_v22  ;;  %v6110_v47 = vld [vmem:[#allocation2 + $0x688] sm:$0xf]  ;;  %v7351_v22 = vld [vmem:[#allocation2 + $0x44c] sm:$0xf] }
 0x3d3   :  { %v5815_v41 = vor.u32 %v7354_v34, %v5814_v29  ;;  %v6038_v56 = vld [vmem:[#allocation2 + $0x600] sm:$0xf]  ;;  %v5987_v29 = vor.u32 %v7391_v17, %v5984_v18  ;;  %v6142_v34 = vld [vmem:[#allocation2 + $0x6c8] sm:$0xf] }
 0x3d4   :  { %2155 = vmatpush.bf16.msra.mxu2 %v5287_v60  ;;  %2181 = vmatpush.bf16.msra.mxu0 %v5291_v62  ;;  %v6040_v60 = vld [vmem:[#allocation2 + $0x620] sm:$0xf0]  ;;  %v6206_v62 = vld [vmem:[#allocation2 + $0x748] sm:$0xf]  ;;  %v6039_v0 = vor.u32 %v7410_v57, %v6038_v56  ;;  %v6143_v43 = vor.u32 %v7435_v36, %v6142_v34 }
 0x3d5   :  { %5747 = vmatmul.msk.bf16.vlgmr.msra.gmra.mxu1 %vm1988_vm4, %v9293_v16  ;;  %v5883_v16 = vor.u32 %v7366_v26, %v5880_v25  ;;  %v6043_v6 = vor.u32 %v7406_v59, %v6040_v60  ;;  %v7447_v25 = vld [vmem:[#allocation2 + $0x74c] sm:$0xf]  ;;  %v7427_v48 = vld [vmem:[#allocation2 + $0x6a4] sm:$0xf0] }
 0x3d6   :  { %2960 = vmatpush.bf16.msrb.mxu3 %v5943_v52  ;;  %2985 = vmatpush.bf16.msrb.mxu1 %v5979_v61  ;;  %v5816_v52 = vld [vmem:[#allocation2 + $0x460] sm:$0xf0]  ;;  %v6111_v55 = vor.u32 %v7427_v48, %v6110_v47  ;;  %v5886_v57 = vld [vmem:[#allocation2 + $0x4c8] sm:$0xf]  ;;  %v7399_v47 = vld [vmem:[#allocation2 + $0x5cc] sm:$0xf] }
 0x3d7   :  { %2156 = vmatmul.bf16.vlgmr.msra.gmra.mxu2 %v9295_v31  ;;  %2182 = vmatmul.bf16.vlgmr.msra.gmra.mxu0 %v9295_v31  ;;  %v5848_v31 = vld [vmem:[#allocation2 + $0x4a0] sm:$0xf0]  ;;  %v5819_v61 = vor.u32 %v7350_v51, %v5816_v52  ;;  %v5919_v52 = vor.u32 %v7379_v46, %v5918_v45  ;;  %v6078_v59 = vld [vmem:[#allocation2 + $0x648] sm:$0xf]  ;;  %v7335_v46 = vld [vmem:[#allocation2 + $0x3cc] sm:$0xf] }
 0x3d8   :  { %2973 = vmatpush.bf16.msrb.mxu2 %v6199_v63  ;;  %2999 = vmatpush.bf16.msrb.mxu0 %v6203_v3  ;;  %v5851_v49 = vor.u32 %v7358_v39, %v5848_v31  ;;  %v7451_v63 = vld [vmem:[#allocation2 + $0x764] sm:$0xf0]  ;;  %v5784_v3 = vld [vmem:[#allocation2 + $0x420] sm:$0xf0]  ;;  %v5951_v31 = vor.u32 %v7387_v33, %v5950_v32  ;;  %v6048_v32 = vld [vmem:[#allocation2 + $0x628] sm:$0xf0] }
 0x3d9   :  { %v7419_v60 = vld [vmem:[#allocation2 + $0x664] sm:$0xf0]  ;;  %v6016_v48 = vld [vmem:[#allocation2 + $0x5e8] sm:$0xf0] }
 0x3da   :  { %2961 = vmatpush.bf16.msrb.mxu3 %v5911_v2  ;;  %2986 = vmatpush.bf16.msrb.mxu1 %v5947_v10  ;;  %v7342_v2 = vld [vmem:[#allocation2 + $0x404] sm:$0xf]  ;;  %v6207_v10 = vor.u32 %v7451_v63, %v6206_v62  ;;  %v5888_v62 = vld [vmem:[#allocation2 + $0x4e8] sm:$0xf0]  ;;  %v5822_v18 = vld [vmem:[#allocation2 + $0x448] sm:$0xf] }
 0x3db   :  { %v7403_v21 = vld [vmem:[#allocation2 + $0x5e4] sm:$0xf0] }
 0x3dc   :  { %2974 = vmatpush.bf16.msrb.mxu2 %v6167_v11  ;;  %3000 = vmatpush.bf16.msrb.mxu0 %v6171_v15  ;;  %v5982_v11 = vld [vmem:[#allocation2 + $0x588] sm:$0xf] }
 0x3dd   :  { %v7443_v15 = vld [vmem:[#allocation2 + $0x724] sm:$0xf0]  ;;  %v5983_v26 = vor.u32 %v7395_v12, %v5982_v11 }
 0x3de   :  { %2962 = vmatpush.bf16.msrb.mxu3 %v5879_v14  ;;  %2987 = vmatpush.bf16.msrb.mxu1 %v5915_v23  ;;  %v5787_v14 = vor.u32 %v7342_v2, %v5784_v3  ;;  %v9323_v23 = vpack.c.b16 %v2351_v4, %v2351_v4  ;;  %v6112_v2 = vld [vmem:[#allocation2 + $0x6a8] sm:$0xf0]  ;;  %v6079_v3 = vor.u32 %v7419_v60, %v6078_v59  ;;  %v7347_v36 = vld [vmem:[#allocation2 + $0x424] sm:$0xf0]  ;;  %v7380_v60 = vld [vmem:[#allocation2 + $0x52c] sm:$0xf0] }
 0x3df   :  { %v6115_v11 = vor.u32 %v7423_v1, %v6112_v2  ;;  %v6019_v59 = vor.u32 %v7399_v47, %v6016_v48  ;;  %v7428_v47 = vld [vmem:[#allocation2 + $0x6ac] sm:$0xf0] }
 0x3e0   :  { %2975 = vmatpush.bf16.msrb.mxu2 %v6135_v24  ;;  %3001 = vmatpush.bf16.msrb.mxu0 %v6139_v28  ;;  %v6011_v24 = vor.u32 %v7398_v8, %v6008_v9  ;;  %v6175_v28 = vor.u32 %v7443_v15, %v6174_v13  ;;  %v7411_v8 = vld [vmem:[#allocation2 + $0x624] sm:$0xf0]  ;;  %v7359_v9 = vld [vmem:[#allocation2 + $0x48c] sm:$0xf]  ;;  %v7356_v48 = vld [vmem:[#allocation2 + $0x46c] sm:$0xf0] }
 0x3e1   :  { %v7415_v13 = vld [vmem:[#allocation2 + $0x64c] sm:$0xf]  ;;  %v6047_v15 = vor.u32 %v7411_v8, %v6046_v7  ;;  %v5960_v7 = vld [vmem:[#allocation2 + $0x570] sm:$0xf0] }
 0x3e2   :  { %2963 = vmatpush.bf16.msrb.mxu3 %v5847_v27  ;;  %2988 = vmatpush.bf16.msrb.mxu1 %v5883_v16  ;;  %v6208_v27 = vld [vmem:[#allocation2 + $0x768] sm:$0xf0] }
 0x3e3   :  { %v5952_v16 = vld [vmem:[#allocation2 + $0x568] sm:$0xf0]  ;;  %v6211_v39 = vor.u32 %v7447_v25, %v6208_v27  ;;  %v5990_v25 = vld [vmem:[#allocation2 + $0x590] sm:$0xf] }
 0x3e4   :  { %2976 = vmatpush.bf16.msrb.mxu2 %v6103_v38  ;;  %3002 = vmatpush.bf16.msrb.mxu0 %v6107_v42  ;;  %v9325_v38 = vpack.c.b16 %v2352_v19, %v2352_v19  ;;  %v6176_v42 = vld [vmem:[#allocation2 + $0x728] sm:$0xf0]  ;;  %v5955_v44 = vor.u32 %v7383_v37, %v5952_v16  ;;  %v7355_v19 = vld [vmem:[#allocation2 + $0x464] sm:$0xf0]  ;;  %v7396_v27 = vld [vmem:[#allocation2 + $0x5ac] sm:$0xf0] }
 0x3e5   :  { %v5991_v37 = vor.u32 %v7396_v27, %v5990_v25  ;;  %v7343_v16 = vld [vmem:[#allocation2 + $0x40c] sm:$0xf] }
 0x3e6   :  { %2964 = vmatpush.bf16.msrb.mxu3 %v5815_v41  ;;  %2989 = vmatpush.bf16.msrb.mxu1 %v5851_v49  ;;  %v7439_v41 = vld [vmem:[#allocation2 + $0x70c] sm:$0xf] }
 0x3e7   :  { %v7375_v49 = vld [vmem:[#allocation2 + $0x50c] sm:$0xf]  ;;  %v6179_v51 = vor.u32 %v7439_v41, %v6176_v42  ;;  %v7388_v42 = vld [vmem:[#allocation2 + $0x56c] sm:$0xf0] }
 0x3e8   :  { %2977 = vmatpush.bf16.msrb.mxu2 %v6071_v50  ;;  %3003 = vmatpush.bf16.msrb.mxu0 %v6075_v54  ;;  %v5920_v50 = vld [vmem:[#allocation2 + $0x528] sm:$0xf0] }
 0x3e9   :  { %v6144_v54 = vld [vmem:[#allocation2 + $0x6e8] sm:$0xf0]  ;;  %v5923_v56 = vor.u32 %v7375_v49, %v5920_v50 }
 0x3ea   :  { %2965 = vmatpush.bf16.msrb.mxu3 %v5783_v53  ;;  %2990 = vmatpush.bf16.msrb.mxu1 %v5819_v61  ;;  %v7431_v53 = vld [vmem:[#allocation2 + $0x6cc] sm:$0xf] }
 0x3eb   :  { %v7367_v61 = vld [vmem:[#allocation2 + $0x4cc] sm:$0xf]  ;;  %v6147_v63 = vor.u32 %v7431_v53, %v6144_v54  ;;  %v5992_v53 = vld [vmem:[#allocation2 + $0x5b0] sm:$0xf0] }
 0x3ec   :  { %2978 = vmatpush.bf16.msrb.mxu2 %v6039_v0  ;;  %3004 = vmatpush.bf16.msrb.mxu0 %v6043_v6  ;;  %v5887_v0 = vor.u32 %v7371_v58, %v5886_v57  ;;  %v5891_v4 = vor.u32 %v7367_v61, %v5888_v62  ;;  %v7363_v6 = vld [vmem:[#allocation2 + $0x4a4] sm:$0xf0]  ;;  %v7452_v57 = vld [vmem:[#allocation2 + $0x76c] sm:$0xf0]  ;;  %v7448_v61 = vld [vmem:[#allocation2 + $0x754] sm:$0xf] }
 0x3ed   :  { %v6216_v62 = vld [vmem:[#allocation2 + $0x770] sm:$0xf0] }
 0x3ee   :  { %2966 = vmatpush.bf16.msrb.mxu3 %v5751_v5  ;;  %2991 = vmatpush.bf16.msrb.mxu1 %v5787_v14  ;;  %v5854_v5 = vld [vmem:[#allocation2 + $0x488] sm:$0xf]  ;;  %v6080_v14 = vld [vmem:[#allocation2 + $0x668] sm:$0xf0] }
 0x3ef   :  { %v5855_v12 = vor.u32 %v7363_v6, %v5854_v5  ;;  %v5894_v5 = vld [vmem:[#allocation2 + $0x4d0] sm:$0xf]  ;;  %v7384_v6 = vld [vmem:[#allocation2 + $0x554] sm:$0xf] }
 0x3f0   :  { %2979 = vmatpush.bf16.msrb.mxu2 %v6007_v20  ;;  %3005 = vmatpush.bf16.msrb.mxu0 %v6011_v24  ;;  %v6014_v20 = vld [vmem:[#allocation2 + $0x5c8] sm:$0xf]  ;;  %v5824_v24 = vld [vmem:[#allocation2 + $0x468] sm:$0xf0] }
 0x3f1   :  { %2967 = vmatmul.bf16.vlgmr.msrb.gmra.mxu3 %v9323_v23  ;;  %v6015_v33 = vor.u32 %v7403_v21, %v6014_v20  ;;  %v5827_v34 = vor.u32 %v7351_v22, %v5824_v24  ;;  %v7376_v24 = vld [vmem:[#allocation2 + $0x514] sm:$0xf] }
 0x3f2   :  { %3025 = vmatpush.bf16.msra.mxu3 %v6207_v10  ;;  %2992 = vmatpush.bf16.msrb.mxu1 %v5755_v30  ;;  %v5856_v10 = vld [vmem:[#allocation2 + $0x4a8] sm:$0xf0]  ;;  %v5790_v30 = vld [vmem:[#allocation2 + $0x408] sm:$0xf] }
 0x3f3   :  { %6228 = vmatmul.msk.bf16.vlgmr.msrb.gmra.mxu2 %vm1988_vm4, %v9325_v38  ;;  %6229 = vmatmul.msk.bf16.vlgmr.msrb.gmra.mxu0 %vm1988_vm4, %v9325_v38  ;;  %v5859_v17 = vor.u32 %v7359_v9, %v5856_v10  ;;  %v5791_v45 = vor.u32 %v7347_v36, %v5790_v30  ;;  %v6219_v10 = vor.u32 %v7448_v61, %v6216_v62  ;;  %v7432_v30 = vld [vmem:[#allocation2 + $0x6d4] sm:$0xf] }
 0x3f4   :  { %3011 = vmatpush.bf16.msra.mxu2 %v5983_v26  ;;  %3037 = vmatpush.bf16.msra.mxu0 %v5987_v29  ;;  %v6083_v26 = vor.u32 %v7415_v13, %v6080_v14  ;;  %v7407_v29 = vld [vmem:[#allocation2 + $0x60c] sm:$0xf]  ;;  %v6152_v36 = vld [vmem:[#allocation2 + $0x6f0] sm:$0xf0] }
 0x3f5   :  { %2993 = vmatmul.bf16.vlgmr.msrb.gmra.mxu1 %v9323_v23  ;;  %v6051_v41 = vor.u32 %v7407_v29, %v6048_v32  ;;  %v6150_v29 = vld [vmem:[#allocation2 + $0x6d0] sm:$0xf]  ;;  %v7416_v61 = vld [vmem:[#allocation2 + $0x654] sm:$0xf] }
 0x3f6   :  { %3026 = vmatpush.bf16.msra.mxu3 %v6175_v28  ;;  %3051 = vmatpush.bf16.msra.mxu1 %v6211_v39  ;;  %v5823_v28 = vor.u32 %v7355_v19, %v5822_v18  ;;  %v5792_v39 = vld [vmem:[#allocation2 + $0x428] sm:$0xf0]  ;;  %v6184_v18 = vld [vmem:[#allocation2 + $0x730] sm:$0xf0]  ;;  %v5963_v19 = vor.u32 %v7384_v6, %v5960_v7  ;;  %v7436_v32 = vld [vmem:[#allocation2 + $0x6ec] sm:$0xf0] }
 0x3f7   :  { %v5795_v50 = vor.u32 %v7343_v16, %v5792_v39  ;;  %v6151_v39 = vor.u32 %v7436_v32, %v6150_v29  ;;  %v6088_v62 = vld [vmem:[#allocation2 + $0x670] sm:$0xf0]  ;;  %v6054_v6 = vld [vmem:[#allocation2 + $0x610] sm:$0xf]  ;;  %v7397_v29 = vld [vmem:[#allocation2 + $0x5b4] sm:$0xf0] }
 0x3f8   :  { %3012 = vmatpush.bf16.msra.mxu2 %v5951_v31  ;;  %3038 = vmatpush.bf16.msra.mxu0 %v5955_v44  ;;  %v5958_v31 = vld [vmem:[#allocation2 + $0x550] sm:$0xf]  ;;  %v7339_v44 = vld [vmem:[#allocation2 + $0x3e4] sm:$0xf0]  ;;  %v2027_v49 = vpop.f32.mrf.mxu0  ;;  %v6190_v32 = vld [vmem:[#allocation2 + $0x718] sm:$0xf] }
 0x3f9   :  { %v5959_v54 = vor.u32 %v7388_v42, %v5958_v31  ;;  %v7368_v31 = vld [vmem:[#allocation2 + $0x4d4] sm:$0xf]  ;;  %v7412_v7 = vld [vmem:[#allocation2 + $0x62c] sm:$0xf0] }
 0x3fa   :  { %3027 = vmatpush.bf16.msra.mxu3 %v6143_v43  ;;  %3052 = vmatpush.bf16.msra.mxu1 %v6179_v51  ;;  %v5758_v43 = vld [vmem:[#allocation2 + $0x3c8] sm:$0xf]  ;;  %v5760_v51 = vld [vmem:[#allocation2 + $0x3e8] sm:$0xf0] }
 0x3fc   :  { %3013 = vmatpush.bf16.msra.mxu2 %v5919_v52  ;;  %3039 = vmatpush.bf16.msra.mxu0 %v5923_v56  ;;  %v7392_v52 = vld [vmem:[#allocation2 + $0x594] sm:$0xf]  ;;  %v6214_v56 = vld [vmem:[#allocation2 + $0x750] sm:$0xf]  ;;  %v2014_v58 = vpop.f32.mrf.mxu3 }
 0x3fd   :  { %v5995_v1 = vor.u32 %v7392_v52, %v5992_v53  ;;  %v7360_v53 = vld [vmem:[#allocation2 + $0x494] sm:$0xf] }
 0x3fe   :  { %3028 = vmatpush.bf16.msra.mxu3 %v6111_v55  ;;  %3053 = vmatpush.bf16.msra.mxu1 %v6147_v63  ;;  %v5926_v55 = vld [vmem:[#allocation2 + $0x510] sm:$0xf]  ;;  %v2040_v63 = vpop.f32.mrf.mxu1  ;;  %v2001_v8 = vpop.f32.mrf.mxu2 }
 0x3ff   :  { %v2041_v2 = vadd.f32 %v2040_v63, %v2027_v49  ;;  %v5927_v9 = vor.u32 %v7380_v60, %v5926_v55  ;;  %v2015_v13 = vadd.f32 %v2014_v58, %v2001_v8  ;;  %v7424_v49 = vld [vmem:[#allocation2 + $0x694] sm:$0xf]  ;;  %v6086_v58 = vld [vmem:[#allocation2 + $0x650] sm:$0xf] }
 0x400   :  { %3014 = vmatpush.bf16.msra.mxu2 %v5887_v0  ;;  %3040 = vmatpush.bf16.msra.mxu0 %v5891_v4  ;;  %v5759_v0 = vor.u32 %v7339_v44, %v5758_v43  ;;  %v6215_v4 = vor.u32 %v7452_v57, %v6214_v56  ;;  %v2029_v21 = vpop.f32.mrf.mxu0  ;;  %v6155_v44 = vor.u32 %v7432_v30, %v6152_v36  ;;  %v5798_v57 = vld [vmem:[#allocation2 + $0x410] sm:$0xf]  ;;  %v7393_v30 = vld [vmem:[#allocation2 + $0x59c] sm:$0xf] }
 0x401   :  { %v2201_v14 = vrot.slane %v2041_v2, 1  ;;  %v7348_v60 = vld [vmem:[#allocation2 + $0x42c] sm:$0xf0]  ;;  %v5832_v2 = vld [vmem:[#allocation2 + $0x470] sm:$0xf0] }
 0x402   :  { %3029 = vmatpush.bf16.msra.mxu3 %v6079_v3  ;;  %3054 = vmatpush.bf16.msra.mxu1 %v6115_v11  ;;  %v5763_v3 = vor.u32 %v7335_v46, %v5760_v51  ;;  %v6182_v11 = vld [vmem:[#allocation2 + $0x710] sm:$0xf]  ;;  %v6000_v36 = vld [vmem:[#allocation2 + $0x5b8] sm:$0xf0] }
 0x403   :  { %v9335_v20 = vadd.f32 %v2201_v14, %v2015_v13  ;;  %v6118_v46 = vld [vmem:[#allocation2 + $0x690] sm:$0xf]  ;;  %v7453_v13 = vld [vmem:[#allocation2 + $0x774] sm:$0xf0]  ;;  %v6055_v14 = vor.u32 %v7412_v7, %v6054_v6  ;;  %v5936_v6 = vld [vmem:[#allocation2 + $0x538] sm:$0xf0] }
 0x404   :  { %3015 = vmatpush.bf16.msra.mxu2 %v5855_v12  ;;  %3041 = vmatpush.bf16.msra.mxu0 %v5859_v17  ;;  %v7444_v12 = vld [vmem:[#allocation2 + $0x72c] sm:$0xf0]  ;;  %v7440_v17 = vld [vmem:[#allocation2 + $0x714] sm:$0xf]  ;;  %v6119_v52 = vor.u32 %v7428_v47, %v6118_v46  ;;  %v6224_v46 = vld [vmem:[#allocation2 + $0x778] sm:$0xf0] }
 0x405   :  { %v6183_v22 = vor.u32 %v7444_v12, %v6182_v11  ;;  %v6187_v27 = vor.u32 %v7440_v17, %v6184_v18  ;;  %v7340_v8 = vld [vmem:[#allocation2 + $0x3ec] sm:$0xf0]  ;;  %v6222_v12 = vld [vmem:[#allocation2 + $0x758] sm:$0xf]  ;;  %v7344_v17 = vld [vmem:[#allocation2 + $0x414] sm:$0xf] }
 0x406   :  { %3030 = vmatpush.bf16.msra.mxu3 %v6047_v15  ;;  %3055 = vmatpush.bf16.msra.mxu1 %v6083_v26  ;;  %v7372_v15 = vld [vmem:[#allocation2 + $0x4ec] sm:$0xf0]  ;;  %v5928_v26 = vld [vmem:[#allocation2 + $0x530] sm:$0xf0]  ;;  %v2003_v42 = vpop.f32.mrf.mxu2 }
 0x407   :  { %v5895_v25 = vor.u32 %v7372_v15, %v5894_v5  ;;  %v5931_v16 = vor.u32 %v7376_v24, %v5928_v26  ;;  %v5766_v5 = vld [vmem:[#allocation2 + $0x3d0] sm:$0xf]  ;;  %v5800_v18 = vld [vmem:[#allocation2 + $0x430] sm:$0xf0] }
 0x408   :  { %3016 = vmatpush.bf16.msra.mxu2 %v5823_v28  ;;  %3042 = vmatpush.bf16.msra.mxu0 %v5827_v34  ;;  %v5862_v28 = vld [vmem:[#allocation2 + $0x490] sm:$0xf]  ;;  %v7400_v24 = vld [vmem:[#allocation2 + $0x5d4] sm:$0xf] }
 0x409   :  { %v7364_v34 = vld [vmem:[#allocation2 + $0x4ac] sm:$0xf0]  ;;  %v6024_v26 = vld [vmem:[#allocation2 + $0x5f0] sm:$0xf0] }
 0x40a   :  { %3031 = vmatpush.bf16.msra.mxu3 %v6015_v33  ;;  %3056 = vmatpush.bf16.msra.mxu1 %v6051_v41  ;;  %v2016_v33 = vpop.f32.mrf.mxu3  ;;  %v5896_v41 = vld [vmem:[#allocation2 + $0x4f0] sm:$0xf0]  ;;  %v5863_v43 = vor.u32 %v7364_v34, %v5862_v28  ;;  %v6022_v15 = vld [vmem:[#allocation2 + $0x5d0] sm:$0xf]  ;;  %v5998_v28 = vld [vmem:[#allocation2 + $0x598] sm:$0xf]  ;;  %v6027_v42 = vor.u32 %v7400_v24, %v6024_v26 }
 0x40b   :  { %v5899_v51 = vor.u32 %v7368_v31, %v5896_v41  ;;  %v5803_v33 = vor.u32 %v7344_v17, %v5800_v18  ;;  %v7445_v34 = vld [vmem:[#allocation2 + $0x734] sm:$0xf0]  ;;  %v7336_v31 = vld [vmem:[#allocation2 + $0x3d4] sm:$0xf]  ;;  %v7369_v26 = vld [vmem:[#allocation2 + $0x4dc] sm:$0xf] }
 0x40c   :  { %3017 = vmatpush.bf16.msra.mxu2 %v5791_v45  ;;  %3043 = vmatpush.bf16.msra.mxu0 %v5795_v50  ;;  %v5830_v45 = vld [vmem:[#allocation2 + $0x450] sm:$0xf]  ;;  %v6120_v50 = vld [vmem:[#allocation2 + $0x6b0] sm:$0xf0]  ;;  %v6191_v47 = vor.u32 %v7445_v34, %v6190_v32  ;;  %v7421_v24 = vld [vmem:[#allocation2 + $0x674] sm:$0xf0] }
 0x40d   :  { %6230 = vmatmul.msk.bf16.vlgmr.msra.gmra.mxu3 %vm1988_vm4, %v9325_v38  ;;  %v5831_v55 = vor.u32 %v7356_v48, %v5830_v45  ;;  %v6123_v56 = vor.u32 %v7424_v49, %v6120_v50  ;;  %v5768_v41 = vld [vmem:[#allocation2 + $0x3f0] sm:$0xf0]  ;;  %v7449_v45 = vld [vmem:[#allocation2 + $0x75c] sm:$0xf]  ;;  %v6003_v48 = vor.u32 %v7393_v30, %v6000_v36  ;;  %v5966_v49 = vld [vmem:[#allocation2 + $0x558] sm:$0xf] }
 0x40e   :  { %3063 = vmatpush.bf16.msrb.mxu3 %v5991_v37  ;;  %3057 = vmatpush.bf16.msra.mxu1 %v6019_v59  ;;  %v2042_v37 = vpop.f32.mrf.mxu1  ;;  %v7420_v59 = vld [vmem:[#allocation2 + $0x66c] sm:$0xf0]  ;;  %v7389_v50 = vld [vmem:[#allocation2 + $0x574] sm:$0xf0]  ;;  %v7425_v32 = vld [vmem:[#allocation2 + $0x69c] sm:$0xf] }
 0x40f   :  { %v5870_v36 = vld [vmem:[#allocation2 + $0x498] sm:$0xf] }
 0x410   :  { %3018 = vmatpush.bf16.msra.mxu2 %v5759_v0  ;;  %3044 = vmatpush.bf16.msra.mxu0 %v5763_v3  ;;  %v6087_v0 = vor.u32 %v7420_v59, %v6086_v58  ;;  %v5799_v3 = vor.u32 %v7348_v60, %v5798_v57  ;;  %v5967_v58 = vor.u32 %v7389_v50, %v5966_v49  ;;  %v7441_v59 = vld [vmem:[#allocation2 + $0x71c] sm:$0xf]  ;;  %v7357_v49 = vld [vmem:[#allocation2 + $0x474] sm:$0xf0] }
 0x411   :  { %6231 = vmatmul.msk.bf16.vlgmr.msra.gmra.mxu1 %vm1988_vm4, %v9325_v38  ;;  %v6192_v60 = vld [vmem:[#allocation2 + $0x738] sm:$0xf0]  ;;  %v6030_v50 = vld [vmem:[#allocation2 + $0x5d8] sm:$0xf] }
 0x412   :  { %3064 = vmatpush.bf16.msrb.mxu3 %v5959_v54  ;;  %3089 = vmatpush.bf16.msrb.mxu1 %v5995_v1  ;;  %v5864_v54 = vld [vmem:[#allocation2 + $0x4b0] sm:$0xf0] }
 0x413   :  { %3019 = vmatmul.bf16.vlgmr.msra.gmra.mxu2 %v9323_v23  ;;  %3045 = vmatmul.bf16.vlgmr.msra.gmra.mxu0 %v9323_v23  ;;  %v5867_v63 = vor.u32 %v7360_v53, %v5864_v54  ;;  %v7352_v1 = vld [vmem:[#allocation2 + $0x454] sm:$0xf]  ;;  %v7437_v53 = vld [vmem:[#allocation2 + $0x6f4] sm:$0xf0]  ;;  %v7385_v54 = vld [vmem:[#allocation2 + $0x55c] sm:$0xf] }
 0x414   :  { %3077 = vmatpush.bf16.msrb.mxu2 %v6215_v4  ;;  %3103 = vmatpush.bf16.msrb.mxu0 %v6219_v10  ;;  %v6091_v4 = vor.u32 %v7416_v61, %v6088_v62  ;;  %v6056_v10 = vld [vmem:[#allocation2 + $0x630] sm:$0xf0]  ;;  %v5835_v11 = vor.u32 %v7352_v1, %v5832_v2  ;;  %v7381_v1 = vld [vmem:[#allocation2 + $0x534] sm:$0xf0] }
 0x415   :  { %v6126_v2 = vld [vmem:[#allocation2 + $0x698] sm:$0xf] }
 0x416   :  { %3065 = vmatpush.bf16.msrb.mxu3 %v5927_v9  ;;  %3090 = vmatpush.bf16.msrb.mxu1 %v5963_v19  ;;  %v7408_v9 = vld [vmem:[#allocation2 + $0x614] sm:$0xf]  ;;  %v5767_v19 = vor.u32 %v7340_v8, %v5766_v5  ;;  %v2092_v37 = vpop.f32.mrf.mxu1  ;;  %v7377_v5 = vld [vmem:[#allocation2 + $0x51c] sm:$0xf] }
 0x417   :  { %v6059_v21 = vor.u32 %v7408_v9, %v6056_v10  ;;  %v6195_v10 = vor.u32 %v7441_v59, %v6192_v60  ;;  %v5939_v18 = vor.u32 %v7377_v5, %v5936_v6  ;;  %v6064_v59 = vld [vmem:[#allocation2 + $0x638] sm:$0xf0]  ;;  %v7506_v5 = vld [vmem:[#allocation2 + $0x91c] sm:$0xf0]  ;;  %v5774_v6 = vld [vmem:[#allocation2 + $0x3d8] sm:$0xf] }
 0x418   :  { %3078 = vmatpush.bf16.msrb.mxu2 %v6183_v22  ;;  %3104 = vmatpush.bf16.msrb.mxu0 %v6187_v27  ;;  %v7404_v22 = vld [vmem:[#allocation2 + $0x5ec] sm:$0xf0]  ;;  %v2066_v27 = vpop.f32.mrf.mxu3 }
 0x41a   :  { %3066 = vmatpush.bf16.msrb.mxu3 %v5895_v25  ;;  %3091 = vmatpush.bf16.msrb.mxu1 %v5931_v16  ;;  %v6223_v25 = vor.u32 %v7453_v13, %v6222_v12  ;;  %v6023_v16 = vor.u32 %v7404_v22, %v6022_v15  ;;  %v7433_v13 = vld [vmem:[#allocation2 + $0x6dc] sm:$0xf]  ;;  %v6094_v22 = vld [vmem:[#allocation2 + $0x658] sm:$0xf] }
 0x41b   :  { %v6095_v34 = vor.u32 %v7421_v24, %v6094_v22  ;;  %v6686_v22 = vld [vmem:[#allocation2 + $0xb00] sm:$0xf] }
 0x41c   :  { %3079 = vmatpush.bf16.msrb.mxu2 %v6151_v39  ;;  %3105 = vmatpush.bf16.msrb.mxu0 %v6155_v44  ;;  %v2079_v39 = vpop.f32.mrf.mxu0  ;;  %v7570_v24 = vld [vmem:[#allocation2 + $0xb1c] sm:$0xf0] }
 0x41d   :  { %v2093_v44 = vadd.f32 %v2092_v37, %v2079_v39  ;;  %v7365_v37 = vld [vmem:[#allocation2 + $0x4b4] sm:$0xf0] }
 0x41e   :  { %3067 = vmatpush.bf16.msrb.mxu3 %v5863_v43  ;;  %3092 = vmatpush.bf16.msrb.mxu1 %v5899_v51  ;;  %v5999_v43 = vor.u32 %v7397_v29, %v5998_v28  ;;  %v6158_v51 = vld [vmem:[#allocation2 + $0x6d8] sm:$0xf]  ;;  %v2053_v57 = vpop.f32.mrf.mxu2  ;;  %v2094_v7 = vpop.f32.mrf.mxu1 }
 0x41f   :  { %v2067_v61 = vadd.f32 %v2066_v27, %v2053_v57  ;;  %v6159_v62 = vor.u32 %v7437_v53, %v6158_v51  ;;  %v2209_v9 = vrot.slane %v2093_v44, 3  ;;  %v7413_v39 = vld [vmem:[#allocation2 + $0x634] sm:$0xf0]  ;;  %v7417_v44 = vld [vmem:[#allocation2 + $0x65c] sm:$0xf] }
 0x420   :  { %3080 = vmatpush.bf16.msrb.mxu2 %v6119_v52  ;;  %3106 = vmatpush.bf16.msrb.mxu0 %v6123_v56  ;;  %v5771_v52 = vor.u32 %v7336_v31, %v5768_v41  ;;  %v6227_v56 = vor.u32 %v7449_v45, %v6224_v46  ;;  %v7361_v31 = vld [vmem:[#allocation2 + $0x49c] sm:$0xf]  ;;  %v7405_v51 = vld [vmem:[#allocation2 + $0x5f4] sm:$0xf0] }
 0x421   :  { %v2205_v8 = vrot.slane %v2067_v61, 2  ;;  %v5872_v41 = vld [vmem:[#allocation2 + $0x4b8] sm:$0xf0]  ;;  %v6031_v60 = vor.u32 %v7405_v51, %v6030_v50  ;;  %v7341_v7 = vld [vmem:[#allocation2 + $0x3f4] sm:$0xf0] }
 0x422   :  { %3068 = vmatpush.bf16.msrb.mxu3 %v5831_v55  ;;  %3093 = vmatpush.bf16.msrb.mxu1 %v5867_v63  ;;  %v5968_v55 = vld [vmem:[#allocation2 + $0x578] sm:$0xf0] }
 0x423   :  { %v5971_v63 = vor.u32 %v7385_v54, %v5968_v55  ;;  %v2207_v15 = vadd.f32 %v2205_v8, %v9335_v20  ;;  %v6128_v20 = vld [vmem:[#allocation2 + $0x6b8] sm:$0xf0]  ;;  %v6462_v55 = vld [vmem:[#allocation2 + $0x940] sm:$0xf] }
 0x424   :  { %3081 = vmatpush.bf16.msrb.mxu2 %v6087_v0  ;;  %3107 = vmatpush.bf16.msrb.mxu0 %v6091_v4  ;;  %v5934_v0 = vld [vmem:[#allocation2 + $0x518] sm:$0xf]  ;;  %v6096_v45 = vld [vmem:[#allocation2 + $0x678] sm:$0xf0] }
 0x425   :  { %v7429_v4 = vld [vmem:[#allocation2 + $0x6b4] sm:$0xf0]  ;;  %v5935_v12 = vor.u32 %v7381_v1, %v5934_v0  ;;  %v9348_v27 = vadd.f32 %v2209_v9, %v2207_v15  ;;  %v5840_v53 = vld [vmem:[#allocation2 + $0x478] sm:$0xf0]  ;;  %v6099_v54 = vor.u32 %v7417_v44, %v6096_v45  ;;  %v7510_v15 = vld [vmem:[#allocation2 + $0x944] sm:$0xf] }
 0x426   :  { %3069 = vmatpush.bf16.msrb.mxu3 %v5799_v3  ;;  %3094 = vmatpush.bf16.msrb.mxu1 %v5835_v11  ;;  %v2068_v3 = vpop.f32.mrf.mxu3  ;;  %v2081_v11 = vpop.f32.mrf.mxu0  ;;  %v6127_v17 = vor.u32 %v7429_v4, %v6126_v2  ;;  %v7345_v1 = vld [vmem:[#allocation2 + $0x41c] sm:$0xf]  ;;  %v6654_v44 = vld [vmem:[#allocation2 + $0xac0] sm:$0xf] }
 0x427   :  { %v5808_v2 = vld [vmem:[#allocation2 + $0x438] sm:$0xf0]  ;;  %v6430_v3 = vld [vmem:[#allocation2 + $0x900] sm:$0xf] }
 0x428   :  { %3082 = vmatpush.bf16.msrb.mxu2 %v6055_v14  ;;  %3108 = vmatpush.bf16.msrb.mxu0 %v6059_v21  ;;  %v6160_v14 = vld [vmem:[#allocation2 + $0x6f8] sm:$0xf0]  ;;  %v7373_v21 = vld [vmem:[#allocation2 + $0x4f4] sm:$0xf0]  ;;  %v7562_v45 = vld [vmem:[#allocation2 + $0xadc] sm:$0xf0] }
 0x429   :  { %v6163_v28 = vor.u32 %v7433_v13, %v6160_v14  ;;  %v7401_v11 = vld [vmem:[#allocation2 + $0x5dc] sm:$0xf]  ;;  %v5811_v13 = vor.u32 %v7345_v1, %v5808_v2  ;;  %v6624_v1 = vld [vmem:[#allocation2 + $0xaa0] sm:$0xf0] }
 0x42a   :  { %3070 = vmatpush.bf16.msrb.mxu3 %v5767_v19  ;;  %3095 = vmatpush.bf16.msrb.mxu1 %v5803_v33  ;;  %v5902_v19 = vld [vmem:[#allocation2 + $0x4d8] sm:$0xf]  ;;  %v2055_v33 = vpop.f32.mrf.mxu2  ;;  %v5776_v14 = vld [vmem:[#allocation2 + $0x3f8] sm:$0xf0] }
 0x42b   :  { %v5903_v29 = vor.u32 %v7373_v21, %v5902_v19  ;;  %v6431_v19 = vor.u32 %v7506_v5, %v6430_v3  ;;  %v6398_v21 = vld [vmem:[#allocation2 + $0x8c0] sm:$0xf]  ;;  %v5775_v33 = vor.u32 %v7341_v7, %v5774_v6  ;;  %v7486_v5 = vld [vmem:[#allocation2 + $0x884] sm:$0xf] }
 0x42c   :  { %3083 = vmatpush.bf16.msrb.mxu2 %v6023_v16  ;;  %3109 = vmatpush.bf16.msrb.mxu0 %v6027_v42  ;;  %v6062_v16 = vld [vmem:[#allocation2 + $0x618] sm:$0xf]  ;;  %v6131_v42 = vor.u32 %v7425_v32, %v6128_v20  ;;  %v6688_v32 = vld [vmem:[#allocation2 + $0xb20] sm:$0xf0] }
 0x42d   :  { %3071 = vmatmul.bf16.vlgmr.msrb.gmra.mxu3 %v9323_v23  ;;  %v6063_v46 = vor.u32 %v7413_v39, %v6062_v16  ;;  %v7502_v16 = vld [vmem:[#allocation2 + $0x904] sm:$0xf] }
 0x42e   :  { %3129 = vmatpush.bf16.msra.mxu3 %v6223_v25  ;;  %3096 = vmatpush.bf16.msrb.mxu1 %v5771_v52  ;;  %v5904_v25 = vld [vmem:[#allocation2 + $0x4f8] sm:$0xf0]  ;;  %v6432_v39 = vld [vmem:[#allocation2 + $0x920] sm:$0xf0] }
 0x42f   :  { %6232 = vmatmul.msk.bf16.vlgmr.msrb.gmra.mxu2 %vm1988_vm4, %v9325_v38  ;;  %6233 = vmatmul.msk.bf16.vlgmr.msrb.gmra.mxu0 %vm1988_vm4, %v9325_v38  ;;  %v5907_v30 = vor.u32 %v7369_v26, %v5904_v25  ;;  %v7353_v52 = vld [vmem:[#allocation2 + $0x45c] sm:$0xf]  ;;  %v6435_v51 = vor.u32 %v7502_v16, %v6432_v39  ;;  %v6368_v6 = vld [vmem:[#allocation2 + $0x8a0] sm:$0xf0]  ;;  %v6526_v16 = vld [vmem:[#allocation2 + $0x9c0] sm:$0xf] }
 0x430   :  { %3115 = vmatpush.bf16.msra.mxu2 %v5999_v43  ;;  %3141 = vmatpush.bf16.msra.mxu0 %v6003_v48  ;;  %v5871_v43 = vor.u32 %v7365_v37, %v5870_v36  ;;  %v5838_v48 = vld [vmem:[#allocation2 + $0x458] sm:$0xf]  ;;  %v5843_v61 = vor.u32 %v7353_v52, %v5840_v53  ;;  %v6687_v37 = vor.u32 %v7570_v24, %v6686_v22  ;;  %v6270_v22 = vld [vmem:[#allocation2 + $0x7c0] sm:$0xf] }
 0x431   :  { %3097 = vmatmul.bf16.vlgmr.msrb.gmra.mxu1 %v9323_v23  ;;  %v5839_v57 = vor.u32 %v7357_v49, %v5838_v48  ;;  %v6656_v48 = vld [vmem:[#allocation2 + $0xae0] sm:$0xf0]  ;;  %v6655_v53 = vor.u32 %v7562_v45, %v6654_v44  ;;  %v6558_v24 = vld [vmem:[#allocation2 + $0xa00] sm:$0xf]  ;;  %v6694_v44 = vld [vmem:[#allocation2 + $0xb08] sm:$0xf] }
 0x432   :  { %3130 = vmatpush.bf16.msra.mxu3 %v6191_v47  ;;  %3155 = vmatpush.bf16.msra.mxu1 %v6227_v56  ;;  %v5875_v47 = vor.u32 %v7361_v31, %v5872_v41  ;;  %v7514_v56 = vld [vmem:[#allocation2 + $0x95c] sm:$0xf0]  ;;  %v7571_v45 = vld [vmem:[#allocation2 + $0xb24] sm:$0xf0] }
 0x433   :  { %v6463_v0 = vor.u32 %v7514_v56, %v6462_v55  ;;  %v6400_v55 = vld [vmem:[#allocation2 + $0x8e0] sm:$0xf0]  ;;  %v7530_v39 = vld [vmem:[#allocation2 + $0x9dc] sm:$0xf0] }
 0x434   :  { %3116 = vmatpush.bf16.msra.mxu2 %v5967_v58  ;;  %3142 = vmatpush.bf16.msra.mxu0 %v5971_v63  ;;  %v7409_v58 = vld [vmem:[#allocation2 + $0x61c] sm:$0xf]  ;;  %v7349_v63 = vld [vmem:[#allocation2 + $0x434] sm:$0xf0]  ;;  %v2144_v9 = vpop.f32.mrf.mxu0 }
 0x435   :  { %v6067_v4 = vor.u32 %v7409_v58, %v6064_v59  ;;  %v6334_v59 = vld [vmem:[#allocation2 + $0x840] sm:$0xf] }
 0x436   :  { %3131 = vmatpush.bf16.msra.mxu3 %v6159_v62  ;;  %3156 = vmatpush.bf16.msra.mxu1 %v6195_v10  ;;  %v5806_v62 = vld [vmem:[#allocation2 + $0x418] sm:$0xf]  ;;  %v7337_v10 = vld [vmem:[#allocation2 + $0x3dc] sm:$0xf]  ;;  %v2131_v26 = vpop.f32.mrf.mxu1 }
 0x437   :  { %v5807_v8 = vor.u32 %v7349_v63, %v5806_v62  ;;  %v2145_v20 = vadd.f32 %v2144_v9, %v2131_v26  ;;  %v5779_v36 = vor.u32 %v7337_v10, %v5776_v14  ;;  %v7482_v63 = vld [vmem:[#allocation2 + $0x85c] sm:$0xf0]  ;;  %v6592_v14 = vld [vmem:[#allocation2 + $0xa60] sm:$0xf0] }
 0x438   :  { %3117 = vmatpush.bf16.msra.mxu2 %v5935_v12  ;;  %3143 = vmatpush.bf16.msra.mxu0 %v5939_v18  ;;  %v6032_v12 = vld [vmem:[#allocation2 + $0x5f8] sm:$0xf0]  ;;  %v2105_v18 = vpop.f32.mrf.mxu3  ;;  %v6302_v10 = vld [vmem:[#allocation2 + $0x800] sm:$0xf] }
 0x439   :  { %v6035_v25 = vor.u32 %v7401_v11, %v6032_v12  ;;  %v2217_v50 = vrot.slane %v2145_v20, 5  ;;  %v6590_v11 = vld [vmem:[#allocation2 + $0xa40] sm:$0xf] }
 0x43a   :  { %3132 = vmatpush.bf16.msra.mxu3 %v6127_v17  ;;  %3157 = vmatpush.bf16.msra.mxu1 %v6163_v28  ;;  %v6464_v17 = vld [vmem:[#allocation2 + $0x960] sm:$0xf0]  ;;  %v7498_v28 = vld [vmem:[#allocation2 + $0x8dc] sm:$0xf0] }
 0x43b   :  { %v6399_v41 = vor.u32 %v7498_v28, %v6398_v21  ;;  %v7546_v12 = vld [vmem:[#allocation2 + $0xa5c] sm:$0xf0]  ;;  %v7534_v28 = vld [vmem:[#allocation2 + $0xa04] sm:$0xf] }
 0x43c   :  { %3118 = vmatpush.bf16.msra.mxu2 %v5903_v29  ;;  %3144 = vmatpush.bf16.msra.mxu0 %v5907_v30  ;;  %v7566_v29 = vld [vmem:[#allocation2 + $0xb04] sm:$0xf]  ;;  %v2118_v30 = vpop.f32.mrf.mxu2  ;;  %v2146_v52 = vpop.f32.mrf.mxu0  ;;  %v7538_v26 = vld [vmem:[#allocation2 + $0xa1c] sm:$0xf0] }
 0x43d   :  { %v2119_v31 = vadd.f32 %v2118_v30, %v2105_v18  ;;  %v6336_v18 = vld [vmem:[#allocation2 + $0x860] sm:$0xf0]  ;;  %v6559_v20 = vor.u32 %v7538_v26, %v6558_v24 }
 0x43e   :  { %3133 = vmatpush.bf16.msra.mxu3 %v6095_v34  ;;  %3158 = vmatpush.bf16.msra.mxu1 %v6131_v42  ;;  %v6467_v34 = vor.u32 %v7510_v15, %v6464_v17  ;;  %v6691_v42 = vor.u32 %v7566_v29, %v6688_v32  ;;  %v2133_v2 = vpop.f32.mrf.mxu1  ;;  %v6371_v15 = vor.u32 %v7486_v5, %v6368_v6  ;;  %v6560_v29 = vld [vmem:[#allocation2 + $0xa20] sm:$0xf0] }
 0x43f   :  { %v2213_v49 = vrot.slane %v2119_v31, 4  ;;  %v6591_v17 = vor.u32 %v7546_v12, %v6590_v11  ;;  %v7458_v31 = vld [vmem:[#allocation2 + $0x79c] sm:$0xf0]  ;;  %v3319_v2 = vunpack.c.h.b16 %v9287_v35  ;;  %v7454_v5 = vld [vmem:[#allocation2 + $0x784] sm:$0xf] }
 0x440   :  { %3119 = vmatpush.bf16.msra.mxu2 %v5871_v43  ;;  %3145 = vmatpush.bf16.msra.mxu0 %v5875_v47  ;;  %v6366_v43 = vld [vmem:[#allocation2 + $0x880] sm:$0xf]  ;;  %v7558_v47 = vld [vmem:[#allocation2 + $0xac4] sm:$0xf]  ;;  %v2107_v62 = vpop.f32.mrf.mxu3  ;;  %v7567_v11 = vld [vmem:[#allocation2 + $0xb0c] sm:$0xf] }
 0x441   :  { %v2215_v56 = vadd.f32 %v2213_v49, %v9348_v27  ;;  %v6659_v58 = vor.u32 %v7558_v47, %v6656_v48  ;;  %v6494_v47 = vld [vmem:[#allocation2 + $0x980] sm:$0xf]  ;;  %v7462_v48 = vld [vmem:[#allocation2 + $0x7c4] sm:$0xf]  ;;  %v7563_v62 = vld [vmem:[#allocation2 + $0xae4] sm:$0xf0] }
 0x442   :  { %3134 = vmatpush.bf16.msra.mxu3 %v6063_v46  ;;  %3159 = vmatpush.bf16.msra.mxu1 %v6099_v54  ;;  %v7490_v46 = vld [vmem:[#allocation2 + $0x89c] sm:$0xf0]  ;;  %v7494_v54 = vld [vmem:[#allocation2 + $0x8c4] sm:$0xf]  ;;  %v6696_v12 = vld [vmem:[#allocation2 + $0xb28] sm:$0xf0] }
 0x443   :  { %v9356_v3 = vadd.f32 %v2217_v50, %v2215_v56  ;;  %v6403_v27 = vor.u32 %v7494_v54, %v6400_v55  ;;  %v6272_v49 = vld [vmem:[#allocation2 + $0x7e0] sm:$0xf0]  ;;  %v3318_v50 = vunpack.c.l.b16 %v9287_v35  ;;  %v6695_v56 = vor.u32 %v7571_v45, %v6694_v44  ;;  %v6630_v35 = vld [vmem:[#allocation2 + $0xa88] sm:$0xf] }
 0x444   :  { %3120 = vmatpush.bf16.msra.mxu2 %v5839_v57  ;;  %3146 = vmatpush.bf16.msra.mxu0 %v5843_v61  ;;  %v6367_v57 = vor.u32 %v7490_v46, %v6366_v43  ;;  %v7554_v61 = vld [vmem:[#allocation2 + $0xa9c] sm:$0xf0]  ;;  %v2120_v7 = vpop.f32.mrf.mxu2  ;;  %v6527_v46 = vor.u32 %v7530_v39, %v6526_v16  ;;  %v7518_v54 = vld [vmem:[#allocation2 + $0x984] sm:$0xf]  ;;  %v7495_v16 = vld [vmem:[#allocation2 + $0x8cc] sm:$0xf] }
 0x445   :  { %v6496_v55 = vld [vmem:[#allocation2 + $0x9a0] sm:$0xf0]  ;;  %v9361_v7 = vpack.c.b16 %v3318_v50, %v3318_v50  ;;  %v6408_v39 = vld [vmem:[#allocation2 + $0x8e8] sm:$0xf0] }
 0x446   :  { %3135 = vmatpush.bf16.msra.mxu3 %v6031_v60  ;;  %3160 = vmatpush.bf16.msra.mxu1 %v6067_v4  ;;  %v6622_v60 = vld [vmem:[#allocation2 + $0xa80] sm:$0xf]  ;;  %v6240_v6 = vld [vmem:[#allocation2 + $0x7a0] sm:$0xf0]  ;;  %v6411_v50 = vor.u32 %v7495_v16, %v6408_v39  ;;  %v6246_v16 = vld [vmem:[#allocation2 + $0x788] sm:$0xf] }
 0x447   :  { %v6623_v4 = vor.u32 %v7554_v61, %v6622_v60  ;;  %v6662_v60 = vld [vmem:[#allocation2 + $0xac8] sm:$0xf]  ;;  %v6275_v61 = vor.u32 %v7462_v48, %v6272_v49 }
 0x448   :  { %3121 = vmatpush.bf16.msra.mxu2 %v5807_v8  ;;  %3147 = vmatpush.bf16.msra.mxu0 %v5811_v13  ;;  %v6335_v8 = vor.u32 %v7482_v63, %v6334_v59  ;;  %v7542_v13 = vld [vmem:[#allocation2 + $0xa44] sm:$0xf]  ;;  %v7515_v59 = vld [vmem:[#allocation2 + $0x964] sm:$0xf0]  ;;  %v7511_v63 = vld [vmem:[#allocation2 + $0x94c] sm:$0xf] }
 0x449   :  { %6234 = vmatmul.msk.bf16.vlgmr.msra.gmra.mxu3 %vm1988_vm4, %v9325_v38  ;;  %v6595_v21 = vor.u32 %v7542_v13, %v6592_v14  ;;  %v6438_v14 = vld [vmem:[#allocation2 + $0x908] sm:$0xf] }
 0x44a   :  { %3926 = vmatpush.bf16.msrb.mxu3 %v6463_v0  ;;  %3161 = vmatpush.bf16.msra.mxu1 %v6035_v25  ;;  %v7550_v0 = vld [vmem:[#allocation2 + $0xa84] sm:$0xf]  ;;  %v7466_v25 = vld [vmem:[#allocation2 + $0x7dc] sm:$0xf0]  ;;  %v7459_v39 = vld [vmem:[#allocation2 + $0x7a4] sm:$0xf0] }
 0x44b   :  { %v6627_v9 = vor.u32 %v7550_v0, %v6624_v1  ;;  %v6271_v30 = vor.u32 %v7466_v25, %v6270_v22  ;;  %v6472_v0 = vld [vmem:[#allocation2 + $0x968] sm:$0xf0]  ;;  %v6699_v22 = vor.u32 %v7567_v11, %v6696_v12 }
 0x44c   :  { %3122 = vmatpush.bf16.msra.mxu2 %v5775_v33  ;;  %3148 = vmatpush.bf16.msra.mxu0 %v5779_v36  ;;  %v7470_v33 = vld [vmem:[#allocation2 + $0x804] sm:$0xf]  ;;  %v6563_v36 = vor.u32 %v7534_v28, %v6560_v29  ;;  %v6475_v13 = vor.u32 %v7511_v63, %v6472_v0  ;;  %v7559_v25 = vld [vmem:[#allocation2 + $0xacc] sm:$0xf]  ;;  %v6342_v0 = vld [vmem:[#allocation2 + $0x848] sm:$0xf] }
 0x44d   :  { %6235 = vmatmul.msk.bf16.vlgmr.msra.gmra.mxu1 %vm1988_vm4, %v9325_v38  ;;  %v7474_v38 = vld [vmem:[#allocation2 + $0x81c] sm:$0xf0]  ;;  %v6664_v28 = vld [vmem:[#allocation2 + $0xae8] sm:$0xf0] }
 0x44e   :  { %3927 = vmatpush.bf16.msrb.mxu3 %v6431_v19  ;;  %3952 = vmatpush.bf16.msrb.mxu1 %v6467_v34  ;;  %v6303_v19 = vor.u32 %v7474_v38, %v6302_v10  ;;  %v6304_v34 = vld [vmem:[#allocation2 + $0x820] sm:$0xf0]  ;;  %v6663_v38 = vor.u32 %v7563_v62, %v6662_v60  ;;  %v7543_v60 = vld [vmem:[#allocation2 + $0xa4c] sm:$0xf] }
 0x44f   :  { %3123 = vmatmul.bf16.vlgmr.msra.gmra.mxu2 %v9323_v23  ;;  %3149 = vmatmul.bf16.vlgmr.msra.gmra.mxu0 %v9323_v23  ;;  %v7478_v23 = vld [vmem:[#allocation2 + $0x844] sm:$0xf]  ;;  %v6307_v43 = vor.u32 %v7470_v33, %v6304_v34  ;;  %v6406_v33 = vld [vmem:[#allocation2 + $0x8c8] sm:$0xf] }
 0x450   :  { %3940 = vmatpush.bf16.msrb.mxu2 %v6687_v37  ;;  %3966 = vmatpush.bf16.msrb.mxu0 %v6691_v42  ;;  %v6339_v32 = vor.u32 %v7478_v23, %v6336_v18  ;;  %v6238_v37 = vld [vmem:[#allocation2 + $0x780] sm:$0xf]  ;;  %v6528_v42 = vld [vmem:[#allocation2 + $0x9e0] sm:$0xf0]  ;;  %v7555_v23 = vld [vmem:[#allocation2 + $0xaa4] sm:$0xf0] }
 0x451   :  { %v7503_v18 = vld [vmem:[#allocation2 + $0x90c] sm:$0xf]  ;;  %v7499_v34 = vld [vmem:[#allocation2 + $0x8e4] sm:$0xf0] }
 0x452   :  { %3928 = vmatpush.bf16.msrb.mxu3 %v6399_v41  ;;  %3953 = vmatpush.bf16.msrb.mxu1 %v6435_v51  ;;  %v7526_v41 = vld [vmem:[#allocation2 + $0x9c4] sm:$0xf]  ;;  %v6239_v51 = vor.u32 %v7458_v31, %v6238_v37  ;;  %v2196_v1 = vpop.f32.mrf.mxu1  ;;  %v7547_v37 = vld [vmem:[#allocation2 + $0xa64] sm:$0xf0]  ;;  %v6407_v45 = vor.u32 %v7499_v34, %v6406_v33  ;;  %v7463_v33 = vld [vmem:[#allocation2 + $0x7cc] sm:$0xf] }
 0x453   :  { %v6531_v52 = vor.u32 %v7526_v41, %v6528_v42  ;;  %v6280_v34 = vld [vmem:[#allocation2 + $0x7e8] sm:$0xf0] }
 0x454   :  { %3941 = vmatpush.bf16.msrb.mxu2 %v6655_v53  ;;  %3967 = vmatpush.bf16.msrb.mxu0 %v6659_v58  ;;  %v7522_v53 = vld [vmem:[#allocation2 + $0x99c] sm:$0xf0]  ;;  %v6470_v58 = vld [vmem:[#allocation2 + $0x948] sm:$0xf] }
 0x456   :  { %3929 = vmatpush.bf16.msrb.mxu3 %v6367_v57  ;;  %3954 = vmatpush.bf16.msrb.mxu1 %v6403_v27  ;;  %v2170_v57 = vpop.f32.mrf.mxu3  ;;  %v6495_v27 = vor.u32 %v7522_v53, %v6494_v47  ;;  %v6632_v47 = vld [vmem:[#allocation2 + $0xaa8] sm:$0xf0]  ;;  %v6566_v53 = vld [vmem:[#allocation2 + $0xa08] sm:$0xf] }
 0x458   :  { %3942 = vmatpush.bf16.msrb.mxu2 %v6623_v4  ;;  %3968 = vmatpush.bf16.msrb.mxu0 %v6627_v9  ;;  %v2183_v4 = vpop.f32.mrf.mxu0  ;;  %v6471_v9 = vor.u32 %v7515_v59, %v6470_v58 }
 0x459   :  { %v2197_v10 = vadd.f32 %v2196_v1, %v2183_v4  ;;  %v7483_v1 = vld [vmem:[#allocation2 + $0x864] sm:$0xf0]  ;;  %v7479_v4 = vld [vmem:[#allocation2 + $0x84c] sm:$0xf] }
 0x45a   :  { %3930 = vmatpush.bf16.msrb.mxu3 %v6335_v8  ;;  %3955 = vmatpush.bf16.msrb.mxu1 %v6371_v15  ;;  %v6499_v8 = vor.u32 %v7518_v54, %v6496_v55  ;;  %v7507_v15 = vld [vmem:[#allocation2 + $0x924] sm:$0xf0]  ;;  %v2157_v24 = vpop.f32.mrf.mxu2  ;;  %v2198_v31 = vpop.f32.mrf.mxu1  ;;  %v7487_v55 = vld [vmem:[#allocation2 + $0x88c] sm:$0xf] }
 0x45b   :  { %v6439_v26 = vor.u32 %v7507_v15, %v6438_v14  ;;  %v2171_v29 = vadd.f32 %v2170_v57, %v2157_v24  ;;  %v2225_v42 = vrot.slane %v2197_v10, 7  ;;  %v7539_v54 = vld [vmem:[#allocation2 + $0xa24] sm:$0xf0]  ;;  %v6568_v10 = vld [vmem:[#allocation2 + $0xa28] sm:$0xf0] }
 0x45c   :  { %3943 = vmatpush.bf16.msrb.mxu2 %v6591_v17  ;;  %3969 = vmatpush.bf16.msrb.mxu0 %v6595_v21  ;;  %v6243_v17 = vor.u32 %v7454_v5, %v6240_v6  ;;  %v9363_v21 = vpack.c.b16 %v3319_v2, %v3319_v2  ;;  %v6567_v62 = vor.u32 %v7539_v54, %v6566_v53  ;;  %v6534_v2 = vld [vmem:[#allocation2 + $0x9c8] sm:$0xf]  ;;  %v6344_v5 = vld [vmem:[#allocation2 + $0x868] sm:$0xf0] }
 0x45d   :  { %v2221_v41 = vrot.slane %v2171_v29, 6  ;;  %v6347_v12 = vor.u32 %v7479_v4, %v6344_v5  ;;  %v6502_v14 = vld [vmem:[#allocation2 + $0x988] sm:$0xf]  ;;  %v7527_v24 = vld [vmem:[#allocation2 + $0x9cc] sm:$0xf] }
 0x45e   :  { %3931 = vmatpush.bf16.msrb.mxu3 %v6303_v19  ;;  %3956 = vmatpush.bf16.msrb.mxu1 %v6339_v32  ;;  %v6440_v19 = vld [vmem:[#allocation2 + $0x928] sm:$0xf0]  ;;  %v6631_v32 = vor.u32 %v7555_v23, %v6630_v35  ;;  %v7523_v15 = vld [vmem:[#allocation2 + $0x9a4] sm:$0xf0]  ;;  %v6382_v5 = vld [vmem:[#allocation2 + $0x890] sm:$0xf] }
 0x45f   :  { %v2223_v48 = vadd.f32 %v2221_v41, %v9356_v3  ;;  %v6600_v3 = vld [vmem:[#allocation2 + $0xa68] sm:$0xf0]  ;;  %v6278_v29 = vld [vmem:[#allocation2 + $0x7c8] sm:$0xf] }
 0x460   :  { %3944 = vmatpush.bf16.msrb.mxu2 %v6559_v20  ;;  %3970 = vmatpush.bf16.msrb.mxu0 %v6563_v36  ;;  %v6443_v20 = vor.u32 %v7503_v18, %v6440_v19  ;;  %v2172_v36 = vpop.f32.mrf.mxu3  ;;  %v2185_v44 = vpop.f32.mrf.mxu0  ;;  %v6603_v6 = vor.u32 %v7543_v60, %v6600_v3  ;;  %v7471_v35 = vld [vmem:[#allocation2 + $0x80c] sm:$0xf]  ;;  %v6478_v18 = vld [vmem:[#allocation2 + $0x950] sm:$0xf]  ;;  %v6247_v60 = vor.u32 %v7459_v39, %v6246_v16 }
 0x461   :  { %v9372_v57 = vadd.f32 %v2225_v42, %v2223_v48  ;;  %v7516_v19 = vld [vmem:[#allocation2 + $0x96c] sm:$0xf0]  ;;  %v7455_v41 = vld [vmem:[#allocation2 + $0x78c] sm:$0xf]  ;;  %v6480_v48 = vld [vmem:[#allocation2 + $0x970] sm:$0xf0] }
 0x462   :  { %3932 = vmatpush.bf16.msrb.mxu3 %v6271_v30  ;;  %3957 = vmatpush.bf16.msrb.mxu1 %v6307_v43  ;;  %v6598_v30 = vld [vmem:[#allocation2 + $0xa48] sm:$0xf]  ;;  %v6667_v43 = vor.u32 %v7559_v25, %v6664_v28  ;;  %v6503_v25 = vor.u32 %v7523_v15, %v6502_v14  ;;  %v7519_v42 = vld [vmem:[#allocation2 + $0x98c] sm:$0xf]  ;;  %v7496_v14 = vld [vmem:[#allocation2 + $0x8d4] sm:$0xf] }
 0x463   :  { %v6599_v49 = vor.u32 %v7547_v37, %v6598_v30  ;;  %v6446_v30 = vld [vmem:[#allocation2 + $0x910] sm:$0xf]  ;;  %v6416_v15 = vld [vmem:[#allocation2 + $0x8f0] sm:$0xf0] }
 0x464   :  { %3945 = vmatpush.bf16.msrb.mxu2 %v6527_v46  ;;  %3971 = vmatpush.bf16.msrb.mxu0 %v6531_v52  ;;  %v7551_v46 = vld [vmem:[#allocation2 + $0xa8c] sm:$0xf]  ;;  %v7491_v52 = vld [vmem:[#allocation2 + $0x8a4] sm:$0xf0]  ;;  %v7508_v37 = vld [vmem:[#allocation2 + $0x92c] sm:$0xf0] }
 0x465   :  { %v6635_v58 = vor.u32 %v7551_v46, %v6632_v47  ;;  %v6248_v46 = vld [vmem:[#allocation2 + $0x7a8] sm:$0xf0]  ;;  %v7512_v47 = vld [vmem:[#allocation2 + $0x954] sm:$0xf]  ;;  %v6606_v16 = vld [vmem:[#allocation2 + $0xa50] sm:$0xf] }
 0x466   :  { %3933 = vmatpush.bf16.msrb.mxu3 %v6239_v51  ;;  %3958 = vmatpush.bf16.msrb.mxu1 %v6275_v61  ;;  %v6374_v51 = vld [vmem:[#allocation2 + $0x888] sm:$0xf]  ;;  %v2159_v61 = vpop.f32.mrf.mxu2  ;;  %v6483_v3 = vor.u32 %v7512_v47, %v6480_v48  ;;  %v7548_v39 = vld [vmem:[#allocation2 + $0xa6c] sm:$0xf0] }
 0x467   :  { %v6375_v59 = vor.u32 %v7491_v52, %v6374_v51  ;;  %v6702_v51 = vld [vmem:[#allocation2 + $0xb10] sm:$0xf] }
 0x468   :  { %3946 = vmatpush.bf16.msrb.mxu2 %v6495_v27  ;;  %3972 = vmatpush.bf16.msrb.mxu0 %v6499_v8  ;;  %v7531_v27 = vld [vmem:[#allocation2 + $0x9e4] sm:$0xf0]  ;;  %v6343_v8 = vor.u32 %v7483_v1, %v6342_v0  ;;  %v7572_v52 = vld [vmem:[#allocation2 + $0xb2c] sm:$0xf0]  ;;  %v7504_v0 = vld [vmem:[#allocation2 + $0x914] sm:$0xf] }
 0x469   :  { %3934 = vmatmul.bf16.vlgmr.msrb.gmra.mxu3 %v9361_v7  ;;  %v6535_v11 = vor.u32 %v7531_v27, %v6534_v2  ;;  %v6448_v1 = vld [vmem:[#allocation2 + $0x930] sm:$0xf0] }
 0x46a   :  { %3992 = vmatpush.bf16.msra.mxu3 %v6695_v56  ;;  %3959 = vmatpush.bf16.msrb.mxu1 %v6243_v17  ;;  %v6376_v56 = vld [vmem:[#allocation2 + $0x8a8] sm:$0xf0] }
 0x46b   :  { %6716 = vmatmul.msk.bf16.vlgmr.msrb.gmra.mxu2 %vm1988_vm4, %v9363_v21  ;;  %6717 = vmatmul.msk.bf16.vlgmr.msrb.gmra.mxu0 %vm1988_vm4, %v9363_v21  ;;  %v6379_v63 = vor.u32 %v7487_v55, %v6376_v56  ;;  %v6312_v17 = vld [vmem:[#allocation2 + $0x828] sm:$0xf0]  ;;  %v7500_v55 = vld [vmem:[#allocation2 + $0x8ec] sm:$0xf0]  ;;  %v7568_v56 = vld [vmem:[#allocation2 + $0xb14] sm:$0xf] }
 0x46c   :  { %3978 = vmatpush.bf16.msra.mxu2 %v6471_v9  ;;  %4004 = vmatpush.bf16.msra.mxu0 %v6475_v13  ;;  %v7535_v9 = vld [vmem:[#allocation2 + $0xa0c] sm:$0xf]  ;;  %v7475_v13 = vld [vmem:[#allocation2 + $0x824] sm:$0xf0]  ;;  %v6315_v28 = vor.u32 %v7471_v35, %v6312_v17 }
 0x46d   :  { %3960 = vmatmul.bf16.vlgmr.msrb.gmra.mxu1 %v9361_v7  ;;  %v6571_v23 = vor.u32 %v7535_v9, %v6568_v10  ;;  %v7492_v9 = vld [vmem:[#allocation2 + $0x8ac] sm:$0xf0]  ;;  %v7560_v10 = vld [vmem:[#allocation2 + $0xad4] sm:$0xf] }
 0x46e   :  { %3993 = vmatpush.bf16.msra.mxu3 %v6663_v38  ;;  %4018 = vmatpush.bf16.msra.mxu1 %v6699_v22  ;;  %v6310_v38 = vld [vmem:[#allocation2 + $0x808] sm:$0xf]  ;;  %v6383_v35 = vor.u32 %v7492_v9, %v6382_v5  ;;  %v6544_v5 = vld [vmem:[#allocation2 + $0x9f0] sm:$0xf0]  ;;  %v7573_v9 = vld [vmem:[#allocation2 + $0xb34] sm:$0xf0] }
 0x46f   :  { %v6311_v22 = vor.u32 %v7475_v13, %v6310_v38 }
 0x470   :  { %3979 = vmatpush.bf16.msra.mxu2 %v6439_v26  ;;  %4005 = vmatpush.bf16.msra.mxu0 %v6443_v20  ;;  %v6536_v26 = vld [vmem:[#allocation2 + $0x9e8] sm:$0xf0]  ;;  %v6479_v20 = vor.u32 %v7516_v19, %v6478_v18  ;;  %v3007_v44 = vpop.f32.mrf.mxu0  ;;  %v6638_v18 = vld [vmem:[#allocation2 + $0xa90] sm:$0xf] }
 0x471   :  { %v6539_v36 = vor.u32 %v7527_v24, %v6536_v26  ;;  %v7556_v19 = vld [vmem:[#allocation2 + $0xaac] sm:$0xf0]  ;;  %v7552_v26 = vld [vmem:[#allocation2 + $0xa94] sm:$0xf] }
 0x472   :  { %3994 = vmatpush.bf16.msra.mxu3 %v6631_v32  ;;  %4019 = vmatpush.bf16.msra.mxu1 %v6667_v43  ;;  %v7467_v32 = vld [vmem:[#allocation2 + $0x7e4] sm:$0xf0]  ;;  %v6504_v43 = vld [vmem:[#allocation2 + $0x9a8] sm:$0xf0]  ;;  %v7484_v24 = vld [vmem:[#allocation2 + $0x86c] sm:$0xf0] }
 0x473   :  { %v6279_v31 = vor.u32 %v7467_v32, %v6278_v29  ;;  %v6507_v54 = vor.u32 %v7519_v42, %v6504_v43  ;;  %v6419_v29 = vor.u32 %v7496_v14, %v6416_v15  ;;  %v6639_v32 = vor.u32 %v7556_v19, %v6638_v18  ;;  %v6608_v42 = vld [vmem:[#allocation2 + $0xa70] sm:$0xf0]  ;;  %v7524_v15 = vld [vmem:[#allocation2 + $0x9ac] sm:$0xf0]  ;;  %v6486_v19 = vld [vmem:[#allocation2 + $0x958] sm:$0xf] }
 0x474   :  { %3980 = vmatpush.bf16.msra.mxu2 %v6407_v45  ;;  %4006 = vmatpush.bf16.msra.mxu0 %v6411_v50  ;;  %v6283_v45 = vor.u32 %v7463_v33, %v6280_v34  ;;  %v6414_v50 = vld [vmem:[#allocation2 + $0x8d0] sm:$0xf]  ;;  %v9374_v53 = vpop.f32.mrf.mxu3  ;;  %v6384_v33 = vld [vmem:[#allocation2 + $0x8b0] sm:$0xf0] }
 0x475   :  { %v6415_v27 = vor.u32 %v7500_v55, %v6414_v50  ;;  %v6574_v50 = vld [vmem:[#allocation2 + $0xa10] sm:$0xf]  ;;  %v6576_v55 = vld [vmem:[#allocation2 + $0xa30] sm:$0xf0] }
 0x476   :  { %3995 = vmatpush.bf16.msra.mxu3 %v6599_v49  ;;  %4020 = vmatpush.bf16.msra.mxu1 %v6635_v58  ;;  %v6447_v49 = vor.u32 %v7508_v37, %v6446_v30  ;;  %v6704_v58 = vld [vmem:[#allocation2 + $0xb30] sm:$0xf0]  ;;  %v9380_v2 = vpop.f32.mrf.mxu2  ;;  %v6318_v37 = vld [vmem:[#allocation2 + $0x810] sm:$0xf] }
 0x477   :  { %v6707_v4 = vor.u32 %v7568_v56, %v6704_v58 }
 0x478   :  { %3981 = vmatpush.bf16.msra.mxu2 %v6375_v59  ;;  %4007 = vmatpush.bf16.msra.mxu0 %v6379_v63  ;;  %v2994_v59 = vpop.f32.mrf.mxu1  ;;  %v6703_v63 = vor.u32 %v7572_v52, %v6702_v51  ;;  %v3009_v38 = vpop.f32.mrf.mxu0  ;;  %v7540_v51 = vld [vmem:[#allocation2 + $0xa2c] sm:$0xf0] }
 0x479   :  { %v9378_v61 = vadd.f32 %v3007_v44, %v2994_v59  ;;  %v6607_v44 = vor.u32 %v7548_v39, %v6606_v16  ;;  %v7468_v52 = vld [vmem:[#allocation2 + $0x7ec] sm:$0xf0]  ;;  %v6575_v58 = vor.u32 %v7540_v51, %v6574_v50  ;;  %v7472_v59 = vld [vmem:[#allocation2 + $0x814] sm:$0xf]  ;;  %v7569_v39 = vld [vmem:[#allocation2 + $0xb1c] sm:$0xf]  ;;  %v2982_v50 = vadd.f32 %v9380_v2, %v9374_v53 }
 0x47a   :  { %3996 = vmatpush.bf16.msra.mxu3 %v6567_v62  ;;  %4021 = vmatpush.bf16.msra.mxu1 %v6603_v6  ;;  %v6251_v62 = vor.u32 %v7455_v41, %v6248_v46  ;;  %v6670_v6 = vld [vmem:[#allocation2 + $0xad0] sm:$0xf]  ;;  %v7544_v41 = vld [vmem:[#allocation2 + $0xa54] sm:$0xf]  ;;  %v6614_v53 = vld [vmem:[#allocation2 + $0xa58] sm:$0xf] }
 0x47b   :  { %v6352_v46 = vld [vmem:[#allocation2 + $0x870] sm:$0xf0]  ;;  %v6611_v48 = vor.u32 %v7544_v41, %v6608_v42  ;;  %v3168_v51 = vrot.slane %v9378_v61, 1  ;;  %v7549_v61 = vld [vmem:[#allocation2 + $0xa74] sm:$0xf0] }
 0x47c   :  { %3982 = vmatpush.bf16.msra.mxu2 %v6343_v8  ;;  %4008 = vmatpush.bf16.msra.mxu0 %v6347_v12  ;;  %v7564_v8 = vld [vmem:[#allocation2 + $0xaec] sm:$0xf0]  ;;  %v6451_v12 = vor.u32 %v7504_v0, %v6448_v1  ;;  %v6288_v38 = vld [vmem:[#allocation2 + $0x7f0] sm:$0xf0] }
 0x47d   :  { %v6671_v13 = vor.u32 %v7564_v8, %v6670_v6  ;;  %v6542_v0 = vld [vmem:[#allocation2 + $0x9d0] sm:$0xf]  ;;  %v6710_v8 = vld [vmem:[#allocation2 + $0xb18] sm:$0xf] }
 0x47e   :  { %3997 = vmatpush.bf16.msra.mxu3 %v6535_v11  ;;  %4022 = vmatpush.bf16.msra.mxu1 %v6571_v23  ;;  %v6672_v11 = vld [vmem:[#allocation2 + $0xaf0] sm:$0xf0]  ;;  %v6350_v23 = vld [vmem:[#allocation2 + $0x850] sm:$0xf]  ;;  %v2983_v34 = vpop.f32.mrf.mxu2 }
 0x47f   :  { %v6675_v17 = vor.u32 %v7560_v10, %v6672_v11  ;;  %v6351_v30 = vor.u32 %v7484_v24, %v6350_v23  ;;  %v7532_v1 = vld [vmem:[#allocation2 + $0x9ec] sm:$0xf0]  ;;  %v6711_v23 = vor.u32 %v7573_v9, %v6710_v8  ;;  %v6678_v24 = vld [vmem:[#allocation2 + $0xad8] sm:$0xf]  ;;  %v7456_v34 = vld [vmem:[#allocation2 + $0x794] sm:$0xf] }
 0x480   :  { %3983 = vmatpush.bf16.msra.mxu2 %v6311_v22  ;;  %4009 = vmatpush.bf16.msra.mxu0 %v6315_v28  ;;  %v2970_v22 = vpop.f32.mrf.mxu3  ;;  %v2996_v28 = vpop.f32.mrf.mxu1  ;;  %v6543_v10 = vor.u32 %v7532_v1, %v6542_v0  ;;  %v6510_v11 = vld [vmem:[#allocation2 + $0x990] sm:$0xf]  ;;  %v7497_v0 = vld [vmem:[#allocation2 + $0x8dc] sm:$0xf] }
 0x481   :  { %v7517_v22 = vld [vmem:[#allocation2 + $0x974] sm:$0xf0]  ;;  %v7513_v28 = vld [vmem:[#allocation2 + $0x95c] sm:$0xf] }
 0x482   :  { %3998 = vmatpush.bf16.msra.mxu3 %v6503_v25  ;;  %4023 = vmatpush.bf16.msra.mxu1 %v6539_v36  ;;  %v6640_v25 = vld [vmem:[#allocation2 + $0xab0] sm:$0xf0]  ;;  %v6424_v1 = vld [vmem:[#allocation2 + $0x8f8] sm:$0xf0] }
 0x483   :  { %v6643_v36 = vor.u32 %v7552_v26, %v6640_v25  ;;  %v7565_v25 = vld [vmem:[#allocation2 + $0xaf4] sm:$0xf0] }
 0x484   :  { %3984 = vmatpush.bf16.msra.mxu2 %v6279_v31  ;;  %4010 = vmatpush.bf16.msra.mxu0 %v6283_v45  ;;  %v7476_v31 = vld [vmem:[#allocation2 + $0x82c] sm:$0xf0]  ;;  %v7480_v45 = vld [vmem:[#allocation2 + $0x854] sm:$0xf]  ;;  %v6679_v41 = vor.u32 %v7565_v25, %v6678_v24  ;;  %v7545_v25 = vld [vmem:[#allocation2 + $0xa5c] sm:$0xf] }
 0x485   :  { %6718 = vmatmul.msk.bf16.vlgmr.msra.gmra.mxu3 %vm1988_vm4, %v9363_v21  ;;  %v6319_v47 = vor.u32 %v7476_v31, %v6318_v37  ;;  %v6355_v56 = vor.u32 %v7480_v45, %v6352_v46  ;;  %v6487_v37 = vor.u32 %v7517_v22, %v6486_v19  ;;  %v6712_v31 = vld [vmem:[#allocation2 + $0xb38] sm:$0xf0]  ;;  %v6646_v45 = vld [vmem:[#allocation2 + $0xa98] sm:$0xf] }
 0x486   :  { %4030 = vmatpush.bf16.msrb.mxu3 %v6479_v20  ;;  %4024 = vmatpush.bf16.msra.mxu1 %v6507_v54  ;;  %v7488_v20 = vld [vmem:[#allocation2 + $0x894] sm:$0xf]  ;;  %v6392_v19 = vld [vmem:[#allocation2 + $0x8b8] sm:$0xf0] }
 0x487   :  { %v6387_v43 = vor.u32 %v7488_v20, %v6384_v33  ;;  %v7536_v54 = vld [vmem:[#allocation2 + $0xa14] sm:$0xf]  ;;  %v6511_v20 = vor.u32 %v7524_v15, %v6510_v11  ;;  %v7553_v11 = vld [vmem:[#allocation2 + $0xa9c] sm:$0xf]  ;;  %v6390_v15 = vld [vmem:[#allocation2 + $0x898] sm:$0xf] }
 0x488   :  { %3985 = vmatpush.bf16.msra.mxu2 %v6247_v60  ;;  %4011 = vmatpush.bf16.msra.mxu0 %v6251_v62  ;;  %v6320_v60 = vld [vmem:[#allocation2 + $0x830] sm:$0xf0]  ;;  %v6579_v62 = vor.u32 %v7536_v54, %v6576_v55 }
 0x489   :  { %6719 = vmatmul.msk.bf16.vlgmr.msra.gmra.mxu1 %vm1988_vm4, %v9363_v21  ;;  %v6323_v6 = vor.u32 %v7472_v59, %v6320_v60 }
 0x48a   :  { %4031 = vmatpush.bf16.msrb.mxu3 %v6447_v49  ;;  %4056 = vmatpush.bf16.msrb.mxu1 %v6483_v3  ;;  %v6286_v49 = vld [vmem:[#allocation2 + $0x7d0] sm:$0xf] }
 0x48b   :  { %3986 = vmatmul.bf16.vlgmr.msra.gmra.mxu2 %v9361_v7  ;;  %4012 = vmatmul.bf16.vlgmr.msra.gmra.mxu0 %v9361_v7  ;;  %v6287_v3 = vor.u32 %v7468_v52, %v6286_v49  ;;  %v6456_v49 = vld [vmem:[#allocation2 + $0x938] sm:$0xf0]  ;;  %v6715_v52 = vor.u32 %v7569_v39, %v6712_v31 }
 0x48c   :  { %4044 = vmatpush.bf16.msrb.mxu2 %v6703_v63  ;;  %4070 = vmatpush.bf16.msrb.mxu0 %v6707_v4  ;;  %v6254_v63 = vld [vmem:[#allocation2 + $0x790] sm:$0xf]  ;;  %v7528_v4 = vld [vmem:[#allocation2 + $0x9d4] sm:$0xf] }
 0x48d   :  { %v6547_v14 = vor.u32 %v7528_v4, %v6544_v5  ;;  %v3170_v4 = vadd.f32 %v3168_v51, %v2982_v50  ;;  %v6328_v50 = vld [vmem:[#allocation2 + $0x838] sm:$0xf0] }
 0x48e   :  { %4032 = vmatpush.bf16.msrb.mxu3 %v6415_v27  ;;  %4057 = vmatpush.bf16.msrb.mxu1 %v6451_v12  ;;  %v7460_v27 = vld [vmem:[#allocation2 + $0x7ac] sm:$0xf0]  ;;  %v7464_v12 = vld [vmem:[#allocation2 + $0x7d4] sm:$0xf] }
 0x48f   :  { %v6291_v26 = vor.u32 %v7464_v12, %v6288_v38  ;;  %v6648_v12 = vld [vmem:[#allocation2 + $0xab8] sm:$0xf0] }
 0x490   :  { %4045 = vmatpush.bf16.msrb.mxu2 %v6671_v13  ;;  %4071 = vmatpush.bf16.msrb.mxu0 %v6675_v17  ;;  %v6255_v13 = vor.u32 %v7460_v27, %v6254_v63  ;;  %v6512_v17 = vld [vmem:[#allocation2 + $0x9b0] sm:$0xf0]  ;;  %v3033_v18 = vpop.f32.mrf.mxu3  ;;  %v3046_v33 = vpop.f32.mrf.mxu0  ;;  %v7501_v63 = vld [vmem:[#allocation2 + $0x8f4] sm:$0xf0]  ;;  %v6651_v24 = vor.u32 %v7553_v11, %v6648_v12  ;;  %v6264_v12 = vld [vmem:[#allocation2 + $0x7b8] sm:$0xf0] }
 0x492   :  { %4033 = vmatpush.bf16.msrb.mxu3 %v6383_v35  ;;  %4058 = vmatpush.bf16.msrb.mxu1 %v6419_v29  ;;  %v7520_v35 = vld [vmem:[#allocation2 + $0x994] sm:$0xf]  ;;  %v6488_v29 = vld [vmem:[#allocation2 + $0x978] sm:$0xf0] }
 0x493   :  { %v6491_v42 = vor.u32 %v7513_v28, %v6488_v29  ;;  %v6616_v28 = vld [vmem:[#allocation2 + $0xa78] sm:$0xf0] }
 0x494   :  { %4046 = vmatpush.bf16.msrb.mxu2 %v6639_v32  ;;  %4072 = vmatpush.bf16.msrb.mxu0 %v6643_v36  ;;  %v3059_v32 = vpop.f32.mrf.mxu1  ;;  %v6515_v36 = vor.u32 %v7520_v35, %v6512_v17  ;;  %v7493_v35 = vld [vmem:[#allocation2 + $0x8b4] sm:$0xf0]  ;;  %v6619_v39 = vor.u32 %v7545_v25, %v6616_v28  ;;  %v7176_v25 = vld [vmem:[#allocation2 + $0xee0] sm:$0xf0] }
 0x495   :  { %v9386_v16 = vadd.f32 %v3059_v32, %v3046_v33  ;;  %v6582_v17 = vld [vmem:[#allocation2 + $0xa18] sm:$0xf] }
 0x496   :  { %4034 = vmatpush.bf16.msrb.mxu3 %v6351_v30  ;;  %4059 = vmatpush.bf16.msrb.mxu1 %v6387_v43  ;;  %v6256_v30 = vld [vmem:[#allocation2 + $0x7b0] sm:$0xf0]  ;;  %v6454_v43 = vld [vmem:[#allocation2 + $0x918] sm:$0xf]  ;;  %v3020_v54 = vpop.f32.mrf.mxu2 }
 0x497   :  { %v6259_v46 = vor.u32 %v7456_v34, %v6256_v30  ;;  %v3034_v59 = vadd.f32 %v3033_v18, %v3020_v54  ;;  %v7489_v18 = vld [vmem:[#allocation2 + $0x89c] sm:$0xf]  ;;  %v6358_v33 = vld [vmem:[#allocation2 + $0x858] sm:$0xf]  ;;  %v7634_v54 = vld [vmem:[#allocation2 + $0xd1c] sm:$0xf0] }
 0x498   :  { %4047 = vmatpush.bf16.msrb.mxu2 %v6607_v44  ;;  %4073 = vmatpush.bf16.msrb.mxu0 %v6611_v48  ;;  %v7509_v44 = vld [vmem:[#allocation2 + $0x934] sm:$0xf0]  ;;  %v7505_v48 = vld [vmem:[#allocation2 + $0x91c] sm:$0xf]  ;;  %v3035_v2 = vpop.f32.mrf.mxu3  ;;  %v3048_v9 = vpop.f32.mrf.mxu0 }
 0x499   :  { %v6455_v55 = vor.u32 %v7509_v44, %v6454_v43  ;;  %v3172_v5 = vrot.slane %v3034_v59, 2  ;;  %v7485_v34 = vld [vmem:[#allocation2 + $0x874] sm:$0xf0]  ;;  %v6296_v2 = vld [vmem:[#allocation2 + $0x7f8] sm:$0xf0] }
 0x49a   :  { %4035 = vmatpush.bf16.msrb.mxu3 %v6319_v47  ;;  %4060 = vmatpush.bf16.msrb.mxu1 %v6355_v56  ;;  %v7557_v47 = vld [vmem:[#allocation2 + $0xab4] sm:$0xf0]  ;;  %v7561_v56 = vld [vmem:[#allocation2 + $0xadc] sm:$0xf]  ;;  %v6359_v31 = vor.u32 %v7485_v34, %v6358_v33 }
 0x49b   :  { %v6647_v60 = vor.u32 %v7557_v47, %v6646_v45  ;;  %v3174_v38 = vadd.f32 %v3172_v5, %v3170_v4  ;;  %v6550_v30 = vld [vmem:[#allocation2 + $0x9d8] sm:$0xf]  ;;  %v7521_v9 = vld [vmem:[#allocation2 + $0x99c] sm:$0xf] }
 0x49c   :  { %4048 = vmatpush.bf16.msrb.mxu2 %v6575_v58  ;;  %4074 = vmatpush.bf16.msrb.mxu0 %v6579_v62  ;;  %v6680_v58 = vld [vmem:[#allocation2 + $0xaf8] sm:$0xf0]  ;;  %v6422_v62 = vld [vmem:[#allocation2 + $0x8d8] sm:$0xf]  ;;  %v3061_v27 = vpop.f32.mrf.mxu1 }
 0x49d   :  { %v6683_v8 = vor.u32 %v7561_v56, %v6680_v58  ;;  %v6326_v45 = vld [vmem:[#allocation2 + $0x818] sm:$0xf]  ;;  %v7529_v56 = vld [vmem:[#allocation2 + $0x9dc] sm:$0xf] }
 0x49e   :  { %4036 = vmatpush.bf16.msrb.mxu3 %v6287_v3  ;;  %4061 = vmatpush.bf16.msrb.mxu1 %v6323_v6  ;;  %v6459_v3 = vor.u32 %v7505_v48, %v6456_v49  ;;  %v3176_v6 = vrot.slane %v9386_v16, 3  ;;  %v3022_v29 = vpop.f32.mrf.mxu2  ;;  %v6360_v16 = vld [vmem:[#allocation2 + $0x878] sm:$0xf0]  ;;  %v6518_v47 = vld [vmem:[#allocation2 + $0x998] sm:$0xf] }
 0x49f   :  { %v7525_v48 = vld [vmem:[#allocation2 + $0x9b4] sm:$0xf0]  ;;  %v7473_v49 = vld [vmem:[#allocation2 + $0x81c] sm:$0xf] }
 0x4a0   :  { %4049 = vmatpush.bf16.msrb.mxu2 %v6543_v10  ;;  %4075 = vmatpush.bf16.msrb.mxu0 %v6547_v14  ;;  %v6423_v10 = vor.u32 %v7501_v63, %v6422_v62  ;;  %v6427_v14 = vor.u32 %v7497_v0, %v6424_v1  ;;  %v9398_v22 = vadd.f32 %v3176_v6, %v3174_v38  ;;  %v6552_v58 = vld [vmem:[#allocation2 + $0x9f8] sm:$0xf0]  ;;  %v7469_v62 = vld [vmem:[#allocation2 + $0x7f4] sm:$0xf0]  ;;  %v7626_v1 = vld [vmem:[#allocation2 + $0xcdc] sm:$0xf0] }
 0x4a1   :  { %v6519_v59 = vor.u32 %v7525_v48, %v6518_v47  ;;  %v6555_v0 = vor.u32 %v7529_v56, %v6552_v58  ;;  %v6262_v27 = vld [vmem:[#allocation2 + $0x798] sm:$0xf]  ;;  %v7630_v38 = vld [vmem:[#allocation2 + $0xd04] sm:$0xf]  ;;  %v6822_v58 = vld [vmem:[#allocation2 + $0xc00] sm:$0xf] }
 0x4a2   :  { %4037 = vmatpush.bf16.msrb.mxu3 %v6255_v13  ;;  %4062 = vmatpush.bf16.msrb.mxu1 %v6291_v26  ;;  %v6615_v13 = vor.u32 %v7549_v61, %v6614_v53  ;;  %v6391_v26 = vor.u32 %v7493_v35, %v6390_v15  ;;  %v7465_v53 = vld [vmem:[#allocation2 + $0x7dc] sm:$0xf]  ;;  %v6918_v61 = vld [vmem:[#allocation2 + $0xcc0] sm:$0xf]  ;;  %v7461_v4 = vld [vmem:[#allocation2 + $0x7b4] sm:$0xf0] }
 0x4a3   :  { %v6299_v11 = vor.u32 %v7465_v53, %v6296_v2  ;;  %v6919_v15 = vor.u32 %v7626_v1, %v6918_v61  ;;  %v6886_v35 = vld [vmem:[#allocation2 + $0xc80] sm:$0xf]  ;;  %v6263_v29 = vor.u32 %v7461_v4, %v6262_v27  ;;  %v7112_v53 = vld [vmem:[#allocation2 + $0xe60] sm:$0xf0] }
 0x4a4   :  { %4050 = vmatpush.bf16.msrb.mxu2 %v6511_v20  ;;  %4076 = vmatpush.bf16.msrb.mxu0 %v6515_v36  ;;  %v6395_v20 = vor.u32 %v7489_v18, %v6392_v19  ;;  %v7533_v36 = vld [vmem:[#allocation2 + $0x9f4] sm:$0xf0]  ;;  %v7606_v1 = vld [vmem:[#allocation2 + $0xc44] sm:$0xf] }
 0x4a5   :  { %4038 = vmatmul.bf16.vlgmr.msrb.gmra.mxu3 %v9361_v7  ;;  %v6551_v43 = vor.u32 %v7533_v36, %v6550_v30  ;;  %v7622_v30 = vld [vmem:[#allocation2 + $0xcc4] sm:$0xf] }
 0x4a6   :  { %4096 = vmatpush.bf16.msra.mxu3 %v6711_v23  ;;  %4063 = vmatpush.bf16.msrb.mxu1 %v6259_v46  ;;  %v7541_v23 = vld [vmem:[#allocation2 + $0xa34] sm:$0xf0]  ;;  %v6920_v36 = vld [vmem:[#allocation2 + $0xce0] sm:$0xf0] }
 0x4a7   :  { %6720 = vmatmul.msk.bf16.vlgmr.msrb.gmra.mxu2 %vm1988_vm4, %v9363_v21  ;;  %6721 = vmatmul.msk.bf16.vlgmr.msrb.gmra.mxu0 %vm1988_vm4, %v9363_v21  ;;  %v6583_v32 = vor.u32 %v7541_v23, %v6582_v17  ;;  %v7477_v46 = vld [vmem:[#allocation2 + $0x834] sm:$0xf0]  ;;  %v7174_v17 = vld [vmem:[#allocation2 + $0xec0] sm:$0xf]  ;;  %v6923_v48 = vor.u32 %v7622_v30, %v6920_v36  ;;  %v6856_v27 = vld [vmem:[#allocation2 + $0xc60] sm:$0xf0] }
 0x4a8   :  { %4082 = vmatpush.bf16.msra.mxu2 %v6487_v37  ;;  %4108 = vmatpush.bf16.msra.mxu0 %v6491_v42  ;;  %v7481_v37 = vld [vmem:[#allocation2 + $0x85c] sm:$0xf]  ;;  %v7690_v23 = vld [vmem:[#allocation2 + $0xedc] sm:$0xf0] }
 0x4a9   :  { %4064 = vmatmul.bf16.vlgmr.msrb.gmra.mxu1 %v9361_v7  ;;  %v6584_v42 = vld [vmem:[#allocation2 + $0xa38] sm:$0xf0]  ;;  %v6363_v44 = vor.u32 %v7481_v37, %v6360_v16  ;;  %v7175_v34 = vor.u32 %v7690_v23, %v7174_v17  ;;  %v6758_v17 = vld [vmem:[#allocation2 + $0xb80] sm:$0xf] }
 0x4aa   :  { %4097 = vmatpush.bf16.msra.mxu3 %v6679_v41  ;;  %4122 = vmatpush.bf16.msra.mxu1 %v6715_v52  ;;  %v7537_v41 = vld [vmem:[#allocation2 + $0xa1c] sm:$0xf]  ;;  %v6950_v52 = vld [vmem:[#allocation2 + $0xd00] sm:$0xf] }
 0x4ab   :  { %v6587_v51 = vor.u32 %v7537_v41, %v6584_v42  ;;  %v6951_v63 = vor.u32 %v7634_v54, %v6950_v52  ;;  %v7142_v41 = vld [vmem:[#allocation2 + $0xe80] sm:$0xf]  ;;  %v6888_v52 = vld [vmem:[#allocation2 + $0xca0] sm:$0xf0] }
 0x4ac   :  { %4083 = vmatpush.bf16.msra.mxu2 %v6455_v55  ;;  %4109 = vmatpush.bf16.msra.mxu0 %v6459_v3  ;;  %v6327_v55 = vor.u32 %v7477_v46, %v6326_v45  ;;  %v6294_v3 = vld [vmem:[#allocation2 + $0x7d8] sm:$0xf]  ;;  %v3111_v6 = vpop.f32.mrf.mxu0  ;;  %v7682_v42 = vld [vmem:[#allocation2 + $0xe9c] sm:$0xf0]  ;;  %v7144_v45 = vld [vmem:[#allocation2 + $0xea0] sm:$0xf0] }
 0x4ad   :  { %v6295_v5 = vor.u32 %v7469_v62, %v6294_v3  ;;  %v7602_v62 = vld [vmem:[#allocation2 + $0xc1c] sm:$0xf0] }
 0x4ae   :  { %4098 = vmatpush.bf16.msra.mxu3 %v6647_v60  ;;  %4123 = vmatpush.bf16.msra.mxu1 %v6683_v8  ;;  %v6331_v60 = vor.u32 %v7473_v49, %v6328_v50  ;;  %v7457_v8 = vld [vmem:[#allocation2 + $0x79c] sm:$0xf]  ;;  %v3098_v18 = vpop.f32.mrf.mxu1  ;;  %v7143_v50 = vor.u32 %v7682_v42, %v7142_v41  ;;  %v7046_v23 = vld [vmem:[#allocation2 + $0xdc0] sm:$0xf]  ;;  %v7182_v41 = vld [vmem:[#allocation2 + $0xec8] sm:$0xf] }
 0x4af   :  { %v3112_v28 = vadd.f32 %v3111_v6, %v3098_v18  ;;  %v6267_v33 = vor.u32 %v7457_v8, %v6264_v12  ;;  %v6790_v8 = vld [vmem:[#allocation2 + $0xbc0] sm:$0xf]  ;;  %v7080_v12 = vld [vmem:[#allocation2 + $0xe20] sm:$0xf0]  ;;  %v7691_v42 = vld [vmem:[#allocation2 + $0xee4] sm:$0xf0] }
 0x4b0   :  { %4084 = vmatpush.bf16.msra.mxu2 %v6423_v10  ;;  %4110 = vmatpush.bf16.msra.mxu0 %v6427_v14  ;;  %v6520_v10 = vld [vmem:[#allocation2 + $0x9b8] sm:$0xf0]  ;;  %v3072_v14 = vpop.f32.mrf.mxu3  ;;  %v7658_v18 = vld [vmem:[#allocation2 + $0xddc] sm:$0xf0] }
 0x4b1   :  { %v6523_v19 = vor.u32 %v7521_v9, %v6520_v10  ;;  %v3184_v47 = vrot.slane %v3112_v28, 5  ;;  %v7078_v9 = vld [vmem:[#allocation2 + $0xe00] sm:$0xf]  ;;  %v7047_v28 = vor.u32 %v7658_v18, %v7046_v23 }
 0x4b2   :  { %4099 = vmatpush.bf16.msra.mxu3 %v6615_v13  ;;  %4124 = vmatpush.bf16.msra.mxu1 %v6651_v24  ;;  %v6952_v13 = vld [vmem:[#allocation2 + $0xd20] sm:$0xf0]  ;;  %v7618_v24 = vld [vmem:[#allocation2 + $0xc9c] sm:$0xf0] }
 0x4b3   :  { %v6887_v16 = vor.u32 %v7618_v24, %v6886_v35  ;;  %v7666_v10 = vld [vmem:[#allocation2 + $0xe1c] sm:$0xf0]  ;;  %v7654_v24 = vld [vmem:[#allocation2 + $0xdc4] sm:$0xf] }
 0x4b4   :  { %4085 = vmatpush.bf16.msra.mxu2 %v6391_v26  ;;  %4111 = vmatpush.bf16.msra.mxu0 %v6395_v20  ;;  %v7686_v26 = vld [vmem:[#allocation2 + $0xec4] sm:$0xf]  ;;  %v3085_v20 = vpop.f32.mrf.mxu2  ;;  %v3113_v49 = vpop.f32.mrf.mxu0  ;;  %v7014_v30 = vld [vmem:[#allocation2 + $0xd80] sm:$0xf] }
 0x4b5   :  { %v3086_v37 = vadd.f32 %v3085_v20, %v3072_v14  ;;  %v6824_v14 = vld [vmem:[#allocation2 + $0xc20] sm:$0xf0]  ;;  %v7650_v36 = vld [vmem:[#allocation2 + $0xd9c] sm:$0xf0] }
 0x4b6   :  { %4100 = vmatpush.bf16.msra.mxu3 %v6583_v32  ;;  %4125 = vmatpush.bf16.msra.mxu1 %v6619_v39  ;;  %v6955_v32 = vor.u32 %v7630_v38, %v6952_v13  ;;  %v7179_v39 = vor.u32 %v7686_v26, %v7176_v25  ;;  %v3100_v2 = vpop.f32.mrf.mxu1  ;;  %v6859_v38 = vor.u32 %v7606_v1, %v6856_v27  ;;  %v7048_v26 = vld [vmem:[#allocation2 + $0xde0] sm:$0xf0] }
 0x4b7   :  { %v3180_v46 = vrot.slane %v3086_v37, 4  ;;  %v7079_v13 = vor.u32 %v7666_v10, %v7078_v9  ;;  %v7578_v37 = vld [vmem:[#allocation2 + $0xb5c] sm:$0xf0]  ;;  %v4286_v2 = vunpack.c.h.b16 %v9289_v40  ;;  %v7574_v1 = vld [vmem:[#allocation2 + $0xb44] sm:$0xf] }
 0x4b8   :  { %4086 = vmatpush.bf16.msra.mxu2 %v6359_v31  ;;  %4112 = vmatpush.bf16.msra.mxu0 %v6363_v44  ;;  %v6854_v31 = vld [vmem:[#allocation2 + $0xc40] sm:$0xf]  ;;  %v7678_v44 = vld [vmem:[#allocation2 + $0xe84] sm:$0xf]  ;;  %v3074_v3 = vpop.f32.mrf.mxu3  ;;  %v7687_v9 = vld [vmem:[#allocation2 + $0xecc] sm:$0xf] }
 0x4b9   :  { %v3182_v54 = vadd.f32 %v3180_v46, %v9398_v22  ;;  %v7147_v56 = vor.u32 %v7678_v44, %v7144_v45  ;;  %v6982_v44 = vld [vmem:[#allocation2 + $0xd40] sm:$0xf]  ;;  %v7582_v45 = vld [vmem:[#allocation2 + $0xb84] sm:$0xf]  ;;  %v7683_v3 = vld [vmem:[#allocation2 + $0xea4] sm:$0xf0] }
 0x4ba   :  { %4101 = vmatpush.bf16.msra.mxu3 %v6551_v43  ;;  %4126 = vmatpush.bf16.msra.mxu1 %v6587_v51  ;;  %v7610_v43 = vld [vmem:[#allocation2 + $0xc5c] sm:$0xf0]  ;;  %v7614_v51 = vld [vmem:[#allocation2 + $0xc84] sm:$0xf]  ;;  %v7184_v10 = vld [vmem:[#allocation2 + $0xee8] sm:$0xf0] }
 0x4bb   :  { %v9406_v61 = vadd.f32 %v3184_v47, %v3182_v54  ;;  %v6891_v22 = vor.u32 %v7614_v51, %v6888_v52  ;;  %v6760_v46 = vld [vmem:[#allocation2 + $0xba0] sm:$0xf0]  ;;  %v4285_v47 = vunpack.c.l.b16 %v9289_v40  ;;  %v7183_v54 = vor.u32 %v7691_v42, %v7182_v41  ;;  %v7627_v40 = vld [vmem:[#allocation2 + $0xce4] sm:$0xf0]  ;;  %v1261_v42 = vld [vmem:[%s9547_s4] sm:$0x1] }
 0x4bc   :  { %4087 = vmatpush.bf16.msra.mxu2 %v6327_v55  ;;  %4113 = vmatpush.bf16.msra.mxu0 %v6331_v60  ;;  %v6855_v55 = vor.u32 %v7610_v43, %v6854_v31  ;;  %v7674_v60 = vld [vmem:[#allocation2 + $0xe5c] sm:$0xf0]  ;;  %v3087_v4 = vpop.f32.mrf.mxu2  ;;  %v7015_v43 = vor.u32 %v7650_v36, %v7014_v30  ;;  %v7638_v51 = vld [vmem:[#allocation2 + $0xd44] sm:$0xf]  ;;  %v7615_v30 = vld [vmem:[#allocation2 + $0xc8c] sm:$0xf] }
 0x4bd   :  { %v6984_v52 = vld [vmem:[#allocation2 + $0xd60] sm:$0xf0]  ;;  %v9411_v4 = vpack.c.b16 %v4285_v47, %v4285_v47  ;;  %v6896_v36 = vld [vmem:[#allocation2 + $0xca8] sm:$0xf0]  ;;  %s5209_s4 = sshll.u32 %s7723_s12, 4  ;;  %s5210_s4 = int_to_ptr.vmem [resolvable:$true] %s5209_s4 }
 0x4be   :  { %4102 = vmatpush.bf16.msra.mxu3 %v6519_v59  ;;  %4127 = vmatpush.bf16.msra.mxu1 %v6555_v0  ;;  %v7110_v59 = vld [vmem:[#allocation2 + $0xe40] sm:$0xf]  ;;  %v6728_v27 = vld [vmem:[#allocation2 + $0xb60] sm:$0xf0] }
 0x4bf   :  { %v7111_v0 = vor.u32 %v7674_v60, %v7110_v59  ;;  %v7150_v59 = vld [vmem:[#allocation2 + $0xe88] sm:$0xf]  ;;  %v6763_v60 = vor.u32 %v7582_v45, %v6760_v46  ;;  %v7120_v45 = vld [vmem:[#allocation2 + $0xe68] sm:$0xf0] }
 0x4c0   :  { %4088 = vmatpush.bf16.msra.mxu2 %v6295_v5  ;;  %4114 = vmatpush.bf16.msra.mxu0 %v6299_v11  ;;  %v6823_v5 = vor.u32 %v7602_v62, %v6822_v58  ;;  %v7662_v11 = vld [vmem:[#allocation2 + $0xe04] sm:$0xf]  ;;  %v7635_v58 = vld [vmem:[#allocation2 + $0xd24] sm:$0xf0]  ;;  %v7631_v62 = vld [vmem:[#allocation2 + $0xd0c] sm:$0xf] }
 0x4c1   :  { %6722 = vmatmul.msk.bf16.vlgmr.msra.gmra.mxu3 %vm1988_vm4, %v9363_v21  ;;  %v7083_v35 = vor.u32 %v7662_v11, %v7080_v12  ;;  %v6926_v12 = vld [vmem:[#allocation2 + $0xcc8] sm:$0xf] }
 0x4c2   :  { %4893 = vmatpush.bf16.msrb.mxu3 %v6951_v63  ;;  %4128 = vmatpush.bf16.msra.mxu1 %v6523_v19  ;;  %v7670_v63 = vld [vmem:[#allocation2 + $0xe44] sm:$0xf]  ;;  %v7586_v19 = vld [vmem:[#allocation2 + $0xb9c] sm:$0xf0]  ;;  %v6927_v18 = vor.u32 %v7627_v40, %v6926_v12  ;;  %v6798_v12 = vld [vmem:[#allocation2 + $0xbc8] sm:$0xf] }
 0x4c3   :  { %v7115_v6 = vor.u32 %v7670_v63, %v7112_v53  ;;  %v6759_v20 = vor.u32 %v7586_v19, %v6758_v17  ;;  %v6960_v63 = vld [vmem:[#allocation2 + $0xd28] sm:$0xf0]  ;;  %v7187_v17 = vor.u32 %v7687_v9, %v7184_v10  ;;  %v7595_v40 = vld [vmem:[#allocation2 + $0xbe4] sm:$0xf0] }
 0x4c4   :  { %4089 = vmatpush.bf16.msra.mxu2 %v6263_v29  ;;  %4115 = vmatpush.bf16.msra.mxu0 %v6267_v33  ;;  %v7590_v29 = vld [vmem:[#allocation2 + $0xbc4] sm:$0xf]  ;;  %v7051_v33 = vor.u32 %v7654_v24, %v7048_v26  ;;  %v6963_v11 = vor.u32 %v7631_v62, %v6960_v63  ;;  %v7679_v19 = vld [vmem:[#allocation2 + $0xe8c] sm:$0xf] }
 0x4c5   :  { %6723 = vmatmul.msk.bf16.vlgmr.msra.gmra.mxu1 %vm1988_vm4, %v9363_v21  ;;  %v7594_v21 = vld [vmem:[#allocation2 + $0xbdc] sm:$0xf0]  ;;  %v7152_v24 = vld [vmem:[#allocation2 + $0xea8] sm:$0xf0] }
 0x4c6   :  { %4894 = vmatpush.bf16.msrb.mxu3 %v6919_v15  ;;  %4919 = vmatpush.bf16.msrb.mxu1 %v6955_v32  ;;  %v6791_v15 = vor.u32 %v7594_v21, %v6790_v8  ;;  %v6792_v32 = vld [vmem:[#allocation2 + $0xbe0] sm:$0xf0]  ;;  %v7151_v21 = vor.u32 %v7683_v3, %v7150_v59  ;;  %v7088_v3 = vld [vmem:[#allocation2 + $0xe28] sm:$0xf0] }
 0x4c7   :  { %4090 = vmatmul.bf16.vlgmr.msra.gmra.mxu2 %v9361_v7  ;;  %4116 = vmatmul.bf16.vlgmr.msra.gmra.mxu0 %v9361_v7  ;;  %v7598_v7 = vld [vmem:[#allocation2 + $0xc04] sm:$0xf]  ;;  %v6795_v31 = vor.u32 %v7590_v29, %v6792_v32  ;;  %v6894_v29 = vld [vmem:[#allocation2 + $0xc88] sm:$0xf]  ;;  %v7655_v9 = vld [vmem:[#allocation2 + $0xdcc] sm:$0xf] }
 0x4c8   :  { %4907 = vmatpush.bf16.msrb.mxu2 %v7175_v34  ;;  %4933 = vmatpush.bf16.msrb.mxu0 %v7179_v39  ;;  %v6827_v25 = vor.u32 %v7598_v7, %v6824_v14  ;;  %v6726_v34 = vld [vmem:[#allocation2 + $0xb40] sm:$0xf]  ;;  %v7016_v39 = vld [vmem:[#allocation2 + $0xda0] sm:$0xf0]  ;;  %v7675_v7 = vld [vmem:[#allocation2 + $0xe64] sm:$0xf0] }
 0x4c9   :  { %v7623_v14 = vld [vmem:[#allocation2 + $0xccc] sm:$0xf]  ;;  %v7619_v32 = vld [vmem:[#allocation2 + $0xca4] sm:$0xf0] }
 0x4ca   :  { %4895 = vmatpush.bf16.msrb.mxu3 %v6887_v16  ;;  %4920 = vmatpush.bf16.msrb.mxu1 %v6923_v48  ;;  %v7646_v16 = vld [vmem:[#allocation2 + $0xd84] sm:$0xf]  ;;  %v6727_v48 = vor.u32 %v7578_v37, %v6726_v34  ;;  %v3163_v53 = vpop.f32.mrf.mxu1  ;;  %v7667_v34 = vld [vmem:[#allocation2 + $0xe24] sm:$0xf0]  ;;  %v7056_v10 = vld [vmem:[#allocation2 + $0xde8] sm:$0xf0] }
 0x4cb   :  { %v7019_v49 = vor.u32 %v7646_v16, %v7016_v39 }
 0x4cc   :  { %4908 = vmatpush.bf16.msrb.mxu2 %v7143_v50  ;;  %4934 = vmatpush.bf16.msrb.mxu0 %v7147_v56  ;;  %v7642_v50 = vld [vmem:[#allocation2 + $0xd5c] sm:$0xf0]  ;;  %v6958_v56 = vld [vmem:[#allocation2 + $0xd08] sm:$0xf] }
 0x4ce   :  { %4896 = vmatpush.bf16.msrb.mxu3 %v6855_v55  ;;  %4921 = vmatpush.bf16.msrb.mxu1 %v6891_v22  ;;  %v3137_v55 = vpop.f32.mrf.mxu3  ;;  %v6983_v22 = vor.u32 %v7642_v50, %v6982_v44  ;;  %v7671_v44 = vld [vmem:[#allocation2 + $0xe4c] sm:$0xf]  ;;  %v7611_v50 = vld [vmem:[#allocation2 + $0xc64] sm:$0xf0] }
 0x4cf   :  { %v7123_v59 = vor.u32 %v7671_v44, %v7120_v45  ;;  %v6736_v45 = vld [vmem:[#allocation2 + $0xb68] sm:$0xf0] }
 0x4d0   :  { %4909 = vmatpush.bf16.msrb.mxu2 %v7111_v0  ;;  %4935 = vmatpush.bf16.msrb.mxu0 %v7115_v6  ;;  %v3150_v0 = vpop.f32.mrf.mxu0  ;;  %v6959_v6 = vor.u32 %v7635_v58, %v6958_v56  ;;  %v2228_v56 = vadd.f32 %v9372_v57, %v1261_v42  ;;  %v6832_v57 = vld [vmem:[#allocation2 + $0xc28] sm:$0xf0] }
 0x4d1   :  { %v9413_v8 = vadd.f32 %v3163_v53, %v3150_v0  ;;  %v7603_v0 = vld [vmem:[#allocation2 + $0xc24] sm:$0xf0]  ;;  %v6992_v42 = vld [vmem:[#allocation2 + $0xd68] sm:$0xf0] }
 0x4d2   :  { %4897 = vmatpush.bf16.msrb.mxu3 %v6823_v5  ;;  %4922 = vmatpush.bf16.msrb.mxu1 %v6859_v38  ;;  %v6987_v5 = vor.u32 %v7638_v51, %v6984_v52  ;;  %v7118_v38 = vld [vmem:[#allocation2 + $0xe48] sm:$0xf]  ;;  %v3124_v23 = vpop.f32.mrf.mxu2  ;;  %v3165_v37 = vpop.f32.mrf.mxu1 }
 0x4d3   :  { %v3138_v26 = vadd.f32 %v3137_v55, %v3124_v23  ;;  %v3192_v39 = vrot.slane %v9413_v8, 7  ;;  %v7054_v51 = vld [vmem:[#allocation2 + $0xdc8] sm:$0xf]  ;;  %v6864_v55 = vld [vmem:[#allocation2 + $0xc68] sm:$0xf0] }
 0x4d4   :  { %4910 = vmatpush.bf16.msrb.mxu2 %v7079_v13  ;;  %4936 = vmatpush.bf16.msrb.mxu0 %v7083_v35  ;;  %v6731_v13 = vor.u32 %v7574_v1, %v6728_v27  ;;  %v9415_v35 = vpack.c.b16 %v4286_v2, %v4286_v2  ;;  %v7659_v52 = vld [vmem:[#allocation2 + $0xde4] sm:$0xf0]  ;;  %v7636_v23 = vld [vmem:[#allocation2 + $0xd2c] sm:$0xf0] }
 0x4d5   :  { %v3188_v16 = vrot.slane %v3138_v26, 6  ;;  %v7055_v53 = vor.u32 %v7659_v52, %v7054_v51  ;;  %v7022_v1 = vld [vmem:[#allocation2 + $0xd88] sm:$0xf]  ;;  %v7692_v51 = vld [vmem:[#allocation2 + $0xeec] sm:$0xf0] }
 0x4d6   :  { %4898 = vmatpush.bf16.msrb.mxu3 %v6791_v15  ;;  %4923 = vmatpush.bf16.msrb.mxu1 %v6827_v25  ;;  %v6928_v15 = vld [vmem:[#allocation2 + $0xce8] sm:$0xf0]  ;;  %v7119_v25 = vor.u32 %v7675_v7, %v7118_v38  ;;  %v7651_v27 = vld [vmem:[#allocation2 + $0xda4] sm:$0xf0] }
 0x4d7   :  { %v3190_v46 = vadd.f32 %v3188_v16, %v9406_v61  ;;  %v7663_v61 = vld [vmem:[#allocation2 + $0xe0c] sm:$0xf]  ;;  %v6990_v38 = vld [vmem:[#allocation2 + $0xd48] sm:$0xf] }
 0x4d8   :  { %4911 = vmatpush.bf16.msrb.mxu2 %v7047_v28  ;;  %4937 = vmatpush.bf16.msrb.mxu0 %v7051_v33  ;;  %v6931_v28 = vor.u32 %v7623_v14, %v6928_v15  ;;  %v3139_v33 = vpop.f32.mrf.mxu3  ;;  %v3152_v41 = vpop.f32.mrf.mxu0  ;;  %v7591_v7 = vld [vmem:[#allocation2 + $0xbcc] sm:$0xf]  ;;  %v7059_v15 = vor.u32 %v7655_v9, %v7056_v10  ;;  %v6734_v37 = vld [vmem:[#allocation2 + $0xb48] sm:$0xf]  ;;  %v7612_v10 = vld [vmem:[#allocation2 + $0xc6c] sm:$0xf0] }
 0x4d9   :  { %v3194_v58 = vadd.f32 %v3192_v39, %v3190_v46  ;;  %v6800_v14 = vld [vmem:[#allocation2 + $0xbe8] sm:$0xf0]  ;;  %v7579_v16 = vld [vmem:[#allocation2 + $0xb64] sm:$0xf0]  ;;  %v7632_v46 = vld [vmem:[#allocation2 + $0xd14] sm:$0xf] }
 0x4da   :  { %4899 = vmatpush.bf16.msrb.mxu3 %v6759_v20  ;;  %4924 = vmatpush.bf16.msrb.mxu1 %v6795_v31  ;;  %v7086_v20 = vld [vmem:[#allocation2 + $0xe08] sm:$0xf]  ;;  %v7155_v31 = vor.u32 %v7679_v19, %v7152_v24  ;;  %v3126_v62 = vpop.f32.mrf.mxu2  ;;  %v7647_v19 = vld [vmem:[#allocation2 + $0xd8c] sm:$0xf] }
 0x4db   :  { %v7087_v47 = vor.u32 %v7667_v34, %v7086_v20  ;;  %v9429_v63 = vadd.f32 %v3194_v58, %v2228_v56  ;;  %v7024_v24 = vld [vmem:[#allocation2 + $0xda8] sm:$0xf0]  ;;  %v6934_v34 = vld [vmem:[#allocation2 + $0xcd0] sm:$0xf]  ;;  %v7688_v56 = vld [vmem:[#allocation2 + $0xed4] sm:$0xf] }
 0x4dc   :  { %4912 = vmatpush.bf16.msrb.mxu2 %v7015_v43  ;;  %4938 = vmatpush.bf16.msrb.mxu0 %v7019_v49  ;;  %v6895_v43 = vor.u32 %v7619_v32, %v6894_v29  ;;  %v6862_v49 = vld [vmem:[#allocation2 + $0xc48] sm:$0xf]  ;;  %v7583_v20 = vld [vmem:[#allocation2 + $0xb8c] sm:$0xf]  ;;  %v7192_v58 = vld [vmem:[#allocation2 + $0xef0] sm:$0xf0] }
 0x4dd   :  { %v7587_v29 = vld [vmem:[#allocation2 + $0xba4] sm:$0xf0]  ;;  %v6768_v33 = vld [vmem:[#allocation2 + $0xba8] sm:$0xf0] }
 0x4de   :  { %4900 = vmatpush.bf16.msrb.mxu3 %v6727_v48  ;;  %4925 = vmatpush.bf16.msrb.mxu1 %v6763_v60  ;;  %v6899_v48 = vor.u32 %v7615_v30, %v6896_v36  ;;  %v6863_v60 = vor.u32 %v7611_v50, %v6862_v49  ;;  %v7027_v30 = vor.u32 %v7647_v19, %v7024_v24  ;;  %v7628_v36 = vld [vmem:[#allocation2 + $0xcec] sm:$0xf0]  ;;  %v7639_v41 = vld [vmem:[#allocation2 + $0xd4c] sm:$0xf] }
 0x4df   :  { %v6771_v44 = vor.u32 %v7583_v20, %v6768_v33  ;;  %v6902_v49 = vld [vmem:[#allocation2 + $0xc90] sm:$0xf]  ;;  %v7608_v33 = vld [vmem:[#allocation2 + $0xc54] sm:$0xf] }
 0x4e0   :  { %4913 = vmatpush.bf16.msrb.mxu2 %v6983_v22  ;;  %4939 = vmatpush.bf16.msrb.mxu0 %v6987_v5  ;;  %v6830_v22 = vld [vmem:[#allocation2 + $0xc08] sm:$0xf]  ;;  %v7599_v5 = vld [vmem:[#allocation2 + $0xc0c] sm:$0xf]  ;;  %v7190_v50 = vld [vmem:[#allocation2 + $0xed0] sm:$0xf] }
 0x4e1   :  { %4901 = vmatmul.bf16.vlgmr.msrb.gmra.mxu3 %v9411_v4  ;;  %v6831_v8 = vor.u32 %v7603_v0, %v6830_v22  ;;  %v7624_v22 = vld [vmem:[#allocation2 + $0xcd4] sm:$0xf]  ;;  %v7676_v19 = vld [vmem:[#allocation2 + $0xe6c] sm:$0xf0] }
 0x4e2   :  { %4959 = vmatpush.bf16.msra.mxu3 %v7183_v54  ;;  %4926 = vmatpush.bf16.msrb.mxu1 %v6731_v13  ;;  %v7607_v54 = vld [vmem:[#allocation2 + $0xc4c] sm:$0xf]  ;;  %v7643_v13 = vld [vmem:[#allocation2 + $0xd64] sm:$0xf0]  ;;  %v6936_v0 = vld [vmem:[#allocation2 + $0xcf0] sm:$0xf0] }
 0x4e3   :  { %7204 = vmatmul.msk.bf16.vlgmr.msrb.gmra.mxu2 %vm1988_vm4, %v9415_v35  ;;  %7205 = vmatmul.msk.bf16.vlgmr.msrb.gmra.mxu0 %vm1988_vm4, %v9415_v35  ;;  %v6867_v2 = vor.u32 %v7607_v54, %v6864_v55  ;;  %v6991_v26 = vor.u32 %v7643_v13, %v6990_v38  ;;  %v6995_v54 = vor.u32 %v7639_v41, %v6992_v42  ;;  %v7620_v55 = vld [vmem:[#allocation2 + $0xcac] sm:$0xf0]  ;;  %v7664_v42 = vld [vmem:[#allocation2 + $0xe14] sm:$0xf] }
 0x4e4   :  { %4945 = vmatpush.bf16.msra.mxu2 %v6959_v6  ;;  %4971 = vmatpush.bf16.msra.mxu0 %v6963_v11  ;;  %v7091_v6 = vor.u32 %v7663_v61, %v7088_v3  ;;  %v6835_v11 = vor.u32 %v7599_v5, %v6832_v57  ;;  %v7195_v5 = vor.u32 %v7688_v56, %v7192_v58  ;;  %v7158_v57 = vld [vmem:[#allocation2 + $0xe90] sm:$0xf]  ;;  %v7064_v56 = vld [vmem:[#allocation2 + $0xdf0] sm:$0xf0] }
 0x4e5   :  { %4927 = vmatmul.bf16.vlgmr.msrb.gmra.mxu1 %v9411_v4  ;;  %v7596_v41 = vld [vmem:[#allocation2 + $0xbec] sm:$0xf0] }
 0x4e6   :  { %4960 = vmatpush.bf16.msra.mxu3 %v7151_v21  ;;  %4985 = vmatpush.bf16.msra.mxu1 %v7187_v17  ;;  %v7023_v21 = vor.u32 %v7651_v27, %v7022_v1  ;;  %v6966_v17 = vld [vmem:[#allocation2 + $0xd10] sm:$0xf]  ;;  %v6903_v27 = vor.u32 %v7620_v55, %v6902_v49  ;;  %v7656_v55 = vld [vmem:[#allocation2 + $0xdd4] sm:$0xf] }
 0x4e7   :  { %v6967_v32 = vor.u32 %v7636_v23, %v6966_v17  ;;  %v6838_v23 = vld [vmem:[#allocation2 + $0xc10] sm:$0xf] }
 0x4e8   :  { %4946 = vmatpush.bf16.msra.mxu2 %v6927_v18  ;;  %4972 = vmatpush.bf16.msra.mxu0 %v6931_v28  ;;  %v6799_v18 = vor.u32 %v7595_v40, %v6798_v12  ;;  %v6766_v28 = vld [vmem:[#allocation2 + $0xb88] sm:$0xf]  ;;  %v6939_v12 = vor.u32 %v7624_v22, %v6936_v0  ;;  %v7652_v22 = vld [vmem:[#allocation2 + $0xdac] sm:$0xf0] }
 0x4e9   :  { %v6767_v39 = vor.u32 %v7587_v29, %v6766_v28  ;;  %v7128_v28 = vld [vmem:[#allocation2 + $0xe70] sm:$0xf0]  ;;  %v7580_v0 = vld [vmem:[#allocation2 + $0xb6c] sm:$0xf0] }
 0x4ea   :  { %4961 = vmatpush.bf16.msra.mxu3 %v7119_v25  ;;  %4986 = vmatpush.bf16.msra.mxu1 %v7155_v31  ;;  %v6803_v25 = vor.u32 %v7591_v7, %v6800_v14  ;;  %v7575_v31 = vld [vmem:[#allocation2 + $0xb4c] sm:$0xf]  ;;  %v7616_v7 = vld [vmem:[#allocation2 + $0xc94] sm:$0xf] }
 0x4eb   :  { %v6739_v62 = vor.u32 %v7575_v31, %v6736_v45  ;;  %v6904_v14 = vld [vmem:[#allocation2 + $0xcb0] sm:$0xf0]  ;;  %v7668_v31 = vld [vmem:[#allocation2 + $0xe2c] sm:$0xf0] }
 0x4ec   :  { %4947 = vmatpush.bf16.msra.mxu2 %v6895_v43  ;;  %4973 = vmatpush.bf16.msra.mxu0 %v6899_v48  ;;  %v3974_v43 = vpop.f32.mrf.mxu0  ;;  %v6935_v48 = vor.u32 %v7628_v36, %v6934_v34  ;;  %v3935_v52 = vpop.f32.mrf.mxu3  ;;  %v6872_v34 = vld [vmem:[#allocation2 + $0xc70] sm:$0xf0] }
 0x4ee   :  { %4962 = vmatpush.bf16.msra.mxu3 %v7087_v47  ;;  %4987 = vmatpush.bf16.msra.mxu1 %v7123_v59  ;;  %v6968_v47 = vld [vmem:[#allocation2 + $0xd30] sm:$0xf0]  ;;  %v3961_v59 = vpop.f32.mrf.mxu1  ;;  %v3948_v1 = vpop.f32.mrf.mxu2 }
 0x4ef   :  { %v6971_v61 = vor.u32 %v7632_v46, %v6968_v47  ;;  %v3975_v3 = vadd.f32 %v3974_v43, %v3961_v59  ;;  %v7096_v43 = vld [vmem:[#allocation2 + $0xe30] sm:$0xf0] }
 0x4f0   :  { %4948 = vmatpush.bf16.msra.mxu2 %v6863_v60  ;;  %4974 = vmatpush.bf16.msra.mxu0 %v6867_v2  ;;  %v6735_v60 = vor.u32 %v7579_v16, %v6734_v37  ;;  %v6870_v2 = vld [vmem:[#allocation2 + $0xc50] sm:$0xf]  ;;  %v7600_v46 = vld [vmem:[#allocation2 + $0xc14] sm:$0xf]  ;;  %v7099_v49 = vor.u32 %v7664_v42, %v7096_v43  ;;  %v7629_v42 = vld [vmem:[#allocation2 + $0xcf4] sm:$0xf0] }
 0x4f1   :  { %v4135_v9 = vrot.slane %v3975_v3, 1  ;;  %v6806_v16 = vld [vmem:[#allocation2 + $0xbd0] sm:$0xf]  ;;  %v6840_v47 = vld [vmem:[#allocation2 + $0xc30] sm:$0xf0] }
 0x4f2   :  { %4963 = vmatpush.bf16.msra.mxu3 %v7055_v53  ;;  %4988 = vmatpush.bf16.msra.mxu1 %v7091_v6  ;;  %v7191_v53 = vor.u32 %v7692_v51, %v7190_v50  ;;  %v7684_v6 = vld [vmem:[#allocation2 + $0xeac] sm:$0xf0]  ;;  %v6843_v58 = vor.u32 %v7600_v46, %v6840_v47  ;;  %v7134_v43 = vld [vmem:[#allocation2 + $0xe58] sm:$0xf]  ;;  %v7625_v46 = vld [vmem:[#allocation2 + $0xcdc] sm:$0xf] }
 0x4f3   :  { %v7159_v13 = vor.u32 %v7684_v6, %v7158_v57  ;;  %v6774_v50 = vld [vmem:[#allocation2 + $0xb90] sm:$0xf]  ;;  %v7198_v57 = vld [vmem:[#allocation2 + $0xed8] sm:$0xf]  ;;  %v6944_v47 = vld [vmem:[#allocation2 + $0xcf8] sm:$0xf0] }
 0x4f4   :  { %4949 = vmatpush.bf16.msra.mxu2 %v6831_v8  ;;  %4975 = vmatpush.bf16.msra.mxu0 %v6835_v11  ;;  %v3949_v8 = vadd.f32 %v3948_v1, %v3935_v52  ;;  %v7160_v11 = vld [vmem:[#allocation2 + $0xeb0] sm:$0xf0]  ;;  %v3976_v38 = vpop.f32.mrf.mxu0  ;;  %v3937_v24 = vpop.f32.mrf.mxu3  ;;  %v7062_v51 = vld [vmem:[#allocation2 + $0xdd0] sm:$0xf]  ;;  %v7693_v6 = vld [vmem:[#allocation2 + $0xef4] sm:$0xf0] }
 0x4f5   :  { %v7660_v52 = vld [vmem:[#allocation2 + $0xdec] sm:$0xf0]  ;;  %v7648_v1 = vld [vmem:[#allocation2 + $0xd94] sm:$0xf]  ;;  %v7685_v24 = vld [vmem:[#allocation2 + $0xeb4] sm:$0xf0] }
 0x4f6   :  { %4964 = vmatpush.bf16.msra.mxu3 %v7023_v21  ;;  %4989 = vmatpush.bf16.msra.mxu1 %v7059_v15  ;;  %v7680_v21 = vld [vmem:[#allocation2 + $0xe94] sm:$0xf]  ;;  %v9433_v40 = vadd.f32 %v4135_v9, %v3949_v8  ;;  %v6871_v15 = vor.u32 %v7612_v10, %v6870_v2  ;;  %v3963_v29 = vpop.f32.mrf.mxu1  ;;  %v7063_v59 = vor.u32 %v7660_v52, %v7062_v51  ;;  %v7030_v2 = vld [vmem:[#allocation2 + $0xd90] sm:$0xf]  ;;  %v7681_v51 = vld [vmem:[#allocation2 + $0xe9c] sm:$0xf] }
 0x4f7   :  { %v7163_v17 = vor.u32 %v7680_v21, %v7160_v11  ;;  %v7031_v8 = vor.u32 %v7652_v22, %v7030_v2  ;;  %v6998_v9 = vld [vmem:[#allocation2 + $0xd50] sm:$0xf]  ;;  %v7584_v10 = vld [vmem:[#allocation2 + $0xb94] sm:$0xf]  ;;  %v7168_v52 = vld [vmem:[#allocation2 + $0xeb8] sm:$0xf0] }
 0x4f8   :  { %4950 = vmatpush.bf16.msra.mxu2 %v6799_v18  ;;  %4976 = vmatpush.bf16.msra.mxu0 %v6803_v25  ;;  %v7126_v18 = vld [vmem:[#allocation2 + $0xe50] sm:$0xf]  ;;  %v7672_v25 = vld [vmem:[#allocation2 + $0xe54] sm:$0xf] }
 0x4f9   :  { %v7127_v20 = vor.u32 %v7676_v19, %v7126_v18  ;;  %v7131_v37 = vor.u32 %v7672_v25, %v7128_v28  ;;  %v6776_v21 = vld [vmem:[#allocation2 + $0xbb0] sm:$0xf0]  ;;  %v7644_v38 = vld [vmem:[#allocation2 + $0xd6c] sm:$0xf0]  ;;  %v7166_v18 = vld [vmem:[#allocation2 + $0xe98] sm:$0xf] }
 0x4fa   :  { %4965 = vmatpush.bf16.msra.mxu3 %v6991_v26  ;;  %4990 = vmatpush.bf16.msra.mxu1 %v7027_v30  ;;  %v7604_v26 = vld [vmem:[#allocation2 + $0xc2c] sm:$0xf0]  ;;  %v3950_v30 = vpop.f32.mrf.mxu2  ;;  %v6779_v19 = vor.u32 %v7584_v10, %v6776_v21  ;;  %v6976_v25 = vld [vmem:[#allocation2 + $0xd38] sm:$0xf0]  ;;  %v6999_v29 = vor.u32 %v7644_v38, %v6998_v9  ;;  %v6878_v21 = vld [vmem:[#allocation2 + $0xc58] sm:$0xf] }
 0x4fb   :  { %v6839_v36 = vor.u32 %v7604_v26, %v6838_v23  ;;  %v7637_v23 = vld [vmem:[#allocation2 + $0xd34] sm:$0xf0]  ;;  %v7633_v26 = vld [vmem:[#allocation2 + $0xd1c] sm:$0xf] }
 0x4fc   :  { %4951 = vmatpush.bf16.msra.mxu2 %v6767_v39  ;;  %4977 = vmatpush.bf16.msra.mxu0 %v6771_v44  ;;  %v7094_v39 = vld [vmem:[#allocation2 + $0xe10] sm:$0xf]  ;;  %v6875_v44 = vor.u32 %v7608_v33, %v6872_v34  ;;  %v6744_v33 = vld [vmem:[#allocation2 + $0xb70] sm:$0xf0]  ;;  %v7661_v38 = vld [vmem:[#allocation2 + $0xdf4] sm:$0xf0] }
 0x4fd   :  { %7206 = vmatmul.msk.bf16.vlgmr.msra.gmra.mxu3 %vm1988_vm4, %v9415_v35  ;;  %v7095_v45 = vor.u32 %v7668_v31, %v7094_v39  ;;  %v7167_v39 = vor.u32 %v7685_v24, %v7166_v18  ;;  %v6979_v31 = vor.u32 %v7633_v26, %v6976_v25  ;;  %v6846_v26 = vld [vmem:[#allocation2 + $0xc18] sm:$0xf] }
 0x4fe   :  { %4997 = vmatpush.bf16.msrb.mxu3 %v6967_v32  ;;  %4991 = vmatpush.bf16.msra.mxu1 %v6995_v54  ;;  %v6907_v32 = vor.u32 %v7616_v7, %v6904_v14  ;;  %v7588_v54 = vld [vmem:[#allocation2 + $0xbac] sm:$0xf0]  ;;  %v7000_v7 = vld [vmem:[#allocation2 + $0xd70] sm:$0xf0]  ;;  %v7199_v14 = vor.u32 %v7693_v6, %v7198_v57  ;;  %v7673_v57 = vld [vmem:[#allocation2 + $0xe5c] sm:$0xf] }
 0x4ff   :  { %v6775_v3 = vor.u32 %v7588_v54, %v6774_v50  ;;  %v7136_v6 = vld [vmem:[#allocation2 + $0xe78] sm:$0xf0]  ;;  %v7605_v25 = vld [vmem:[#allocation2 + $0xc34] sm:$0xf0] }
 0x500   :  { %4952 = vmatpush.bf16.msra.mxu2 %v6735_v60  ;;  %4978 = vmatpush.bf16.msra.mxu0 %v6739_v62  ;;  %v7592_v60 = vld [vmem:[#allocation2 + $0xbd4] sm:$0xf]  ;;  %v7067_v62 = vor.u32 %v7656_v55, %v7064_v56  ;;  %v6947_v56 = vor.u32 %v7625_v46, %v6944_v47  ;;  %v7649_v47 = vld [vmem:[#allocation2 + $0xd9c] sm:$0xf] }
 0x501   :  { %7207 = vmatmul.msk.bf16.vlgmr.msra.gmra.mxu1 %vm1988_vm4, %v9415_v35 }
 0x502   :  { %4998 = vmatpush.bf16.msrb.mxu3 %v6935_v48  ;;  %5023 = vmatpush.bf16.msrb.mxu1 %v6971_v61  ;;  %v6807_v48 = vor.u32 %v7596_v41, %v6806_v16  ;;  %v6808_v61 = vld [vmem:[#allocation2 + $0xbf0] sm:$0xf0]  ;;  %v7200_v16 = vld [vmem:[#allocation2 + $0xef8] sm:$0xf0]  ;;  %v6942_v41 = vld [vmem:[#allocation2 + $0xcd8] sm:$0xf] }
 0x503   :  { %4953 = vmatmul.bf16.vlgmr.msra.gmra.mxu2 %v9411_v4  ;;  %4979 = vmatmul.bf16.vlgmr.msra.gmra.mxu0 %v9411_v4  ;;  %v6943_v50 = vor.u32 %v7629_v42, %v6942_v41  ;;  %v7006_v41 = vld [vmem:[#allocation2 + $0xd58] sm:$0xf] }
 0x504   :  { %5011 = vmatpush.bf16.msrb.mxu2 %v7191_v53  ;;  %5037 = vmatpush.bf16.msrb.mxu0 %v7195_v5  ;;  %v6742_v53 = vld [vmem:[#allocation2 + $0xb50] sm:$0xf]  ;;  %v6811_v5 = vor.u32 %v7592_v60, %v6808_v61  ;;  %v7102_v60 = vld [vmem:[#allocation2 + $0xe18] sm:$0xf] }
 0x505   :  { %v6743_v11 = vor.u32 %v7580_v0, %v6742_v53  ;;  %v6912_v53 = vld [vmem:[#allocation2 + $0xcb8] sm:$0xf0]  ;;  %v7645_v42 = vld [vmem:[#allocation2 + $0xd74] sm:$0xf0] }
 0x506   :  { %4999 = vmatpush.bf16.msrb.mxu3 %v6903_v27  ;;  %5024 = vmatpush.bf16.msrb.mxu1 %v6939_v12  ;;  %v7032_v27 = vld [vmem:[#allocation2 + $0xdb0] sm:$0xf0]  ;;  %v4026_v28 = vpop.f32.mrf.mxu1 }
 0x507   :  { %v7035_v12 = vor.u32 %v7648_v1, %v7032_v27  ;;  %v7171_v1 = vor.u32 %v7681_v51, %v7168_v52  ;;  %v6782_v51 = vld [vmem:[#allocation2 + $0xb98] sm:$0xf] }
 0x508   :  { %5012 = vmatpush.bf16.msrb.mxu2 %v7159_v13  ;;  %5038 = vmatpush.bf16.msrb.mxu0 %v7163_v17  ;;  %v7640_v13 = vld [vmem:[#allocation2 + $0xd54] sm:$0xf]  ;;  %v6974_v17 = vld [vmem:[#allocation2 + $0xd18] sm:$0xf] }
 0x509   :  { %v7003_v34 = vor.u32 %v7640_v13, %v7000_v7  ;;  %v6975_v30 = vor.u32 %v7637_v23, %v6974_v17  ;;  %v7609_v13 = vld [vmem:[#allocation2 + $0xc5c] sm:$0xf]  ;;  %v7589_v52 = vld [vmem:[#allocation2 + $0xbb4] sm:$0xf0] }
 0x50a   :  { %5000 = vmatpush.bf16.msrb.mxu3 %v6871_v15  ;;  %5025 = vmatpush.bf16.msrb.mxu1 %v6907_v32  ;;  %v4000_v15 = vpop.f32.mrf.mxu3  ;;  %v4013_v32 = vpop.f32.mrf.mxu0  ;;  %v6880_v7 = vld [vmem:[#allocation2 + $0xc78] sm:$0xf0] }
 0x50b   :  { %v7665_v23 = vld [vmem:[#allocation2 + $0xe1c] sm:$0xf]  ;;  %v6883_v24 = vor.u32 %v7609_v13, %v6880_v7 }
 0x50c   :  { %5013 = vmatpush.bf16.msrb.mxu2 %v7127_v20  ;;  %5039 = vmatpush.bf16.msrb.mxu0 %v7131_v37  ;;  %v7576_v20 = vld [vmem:[#allocation2 + $0xb54] sm:$0xf]  ;;  %v7689_v37 = vld [vmem:[#allocation2 + $0xedc] sm:$0xf] }
 0x50e   :  { %5001 = vmatpush.bf16.msrb.mxu3 %v6839_v36  ;;  %5026 = vmatpush.bf16.msrb.mxu1 %v6875_v44  ;;  %v4027_v36 = vadd.f32 %v4026_v28, %v4013_v32  ;;  %v6747_v44 = vor.u32 %v7576_v20, %v6744_v33  ;;  %v4028_v2 = vpop.f32.mrf.mxu1  ;;  %v7038_v28 = vld [vmem:[#allocation2 + $0xd98] sm:$0xf]  ;;  %v7601_v32 = vld [vmem:[#allocation2 + $0xc1c] sm:$0xf] }
 0x50f   :  { %v6848_v20 = vld [vmem:[#allocation2 + $0xc38] sm:$0xf0] }
 0x510   :  { %5014 = vmatpush.bf16.msrb.mxu2 %v7095_v45  ;;  %5040 = vmatpush.bf16.msrb.mxu0 %v7099_v49  ;;  %v7677_v45 = vld [vmem:[#allocation2 + $0xe74] sm:$0xf0]  ;;  %v3987_v49 = vpop.f32.mrf.mxu2  ;;  %v4143_v0 = vrot.slane %v4027_v36, 3  ;;  %v7072_v36 = vld [vmem:[#allocation2 + $0xdf8] sm:$0xf0] }
 0x511   :  { %v4001_v54 = vadd.f32 %v4000_v15, %v3987_v49  ;;  %v7135_v55 = vor.u32 %v7677_v45, %v7134_v43  ;;  %v7139_v15 = vor.u32 %v7673_v57, %v7136_v6  ;;  %v7593_v43 = vld [vmem:[#allocation2 + $0xbdc] sm:$0xf]  ;;  %v7007_v49 = vor.u32 %v7645_v42, %v7006_v41 }
 0x512   :  { %5002 = vmatpush.bf16.msrb.mxu3 %v6807_v48  ;;  %5027 = vmatpush.bf16.msrb.mxu1 %v6843_v58  ;;  %v7203_v48 = vor.u32 %v7689_v37, %v7200_v16  ;;  %v6910_v58 = vld [vmem:[#allocation2 + $0xc98] sm:$0xf]  ;;  %v4002_v61 = vpop.f32.mrf.mxu3  ;;  %v4015_v27 = vpop.f32.mrf.mxu0  ;;  %v6851_v16 = vor.u32 %v7601_v32, %v6848_v20 }
 0x513   :  { %v4139_v22 = vrot.slane %v4001_v54, 2  ;;  %v7585_v54 = vld [vmem:[#allocation2 + $0xb9c] sm:$0xf] }
 0x514   :  { %5015 = vmatpush.bf16.msrb.mxu2 %v7063_v59  ;;  %5041 = vmatpush.bf16.msrb.mxu0 %v7067_v62  ;;  %v7621_v59 = vld [vmem:[#allocation2 + $0xcb4] sm:$0xf0]  ;;  %v7617_v62 = vld [vmem:[#allocation2 + $0xc9c] sm:$0xf] }
 0x515   :  { %v6915_v10 = vor.u32 %v7617_v62, %v6912_v53  ;;  %v7008_v61 = vld [vmem:[#allocation2 + $0xd78] sm:$0xf0]  ;;  %v6750_v62 = vld [vmem:[#allocation2 + $0xb58] sm:$0xf] }
 0x516   :  { %5003 = vmatpush.bf16.msrb.mxu3 %v6775_v3  ;;  %5028 = vmatpush.bf16.msrb.mxu1 %v6811_v5  ;;  %v7669_v3 = vld [vmem:[#allocation2 + $0xe34] sm:$0xf0]  ;;  %v6911_v5 = vor.u32 %v7621_v59, %v6910_v58  ;;  %v6783_v58 = vor.u32 %v7589_v52, %v6782_v51  ;;  %v5144_v52 = vld [vmem:[%s9548_s5 + $0x68] sm:$0xff] }
 0x517   :  { %v7103_v9 = vor.u32 %v7669_v3, %v7102_v60  ;;  %v7641_v60 = vld [vmem:[#allocation2 + $0xd5c] sm:$0xf]  ;;  %v7581_v53 = vld [vmem:[#allocation2 + $0xb74] sm:$0xf0] }
 0x518   :  { %5016 = vmatpush.bf16.msrb.mxu2 %v7031_v8  ;;  %5042 = vmatpush.bf16.msrb.mxu0 %v7035_v12  ;;  %v4141_v8 = vadd.f32 %v4139_v22, %v9433_v40  ;;  %v7070_v12 = vld [vmem:[#allocation2 + $0xdd8] sm:$0xf]  ;;  %v7104_v40 = vld [vmem:[#allocation2 + $0xe38] sm:$0xf0]  ;;  %v3989_v18 = vpop.f32.mrf.mxu2  ;;  %v7011_v27 = vor.u32 %v7641_v60, %v7008_v61  ;;  %v6751_v57 = vor.u32 %v7581_v53, %v6750_v62  ;;  %v5140_v60 = vld [vmem:[%s9548_s5 + $0x48] sm:$0xff] }
 0x519   :  { %v7107_v33 = vor.u32 %v7665_v23, %v7104_v40  ;;  %v7577_v22 = vld [vmem:[#allocation2 + $0xb5c] sm:$0xf]  ;;  %v5139_v61 = vld [vmem:[%s9548_s5 + $0x40] sm:$0xff] }
 0x51a   :  { %5004 = vmatpush.bf16.msrb.mxu3 %v6743_v11  ;;  %5029 = vmatpush.bf16.msrb.mxu1 %v6779_v19  ;;  %v7613_v11 = vld [vmem:[#allocation2 + $0xc74] sm:$0xf0]  ;;  %v7071_v19 = vor.u32 %v7661_v38, %v7070_v12 }
 0x51b   :  { %v6879_v17 = vor.u32 %v7613_v11, %v6878_v21  ;;  %v5138_v62 = vld [vmem:[%s9548_s5 + $0x38] sm:$0xff] }
 0x51c   :  { %5017 = vmatpush.bf16.msrb.mxu2 %v6999_v29  ;;  %5043 = vmatpush.bf16.msrb.mxu0 %v7003_v34  ;;  %v7653_v29 = vld [vmem:[#allocation2 + $0xdb4] sm:$0xf0]  ;;  %v6847_v34 = vor.u32 %v7605_v25, %v6846_v26 }
 0x51d   :  { %5005 = vmatmul.bf16.vlgmr.msrb.gmra.mxu3 %v9411_v4  ;;  %v7039_v37 = vor.u32 %v7653_v29, %v7038_v28 }
 0x51e   :  { %5063 = vmatpush.bf16.msra.mxu3 %v7199_v14  ;;  %5030 = vmatpush.bf16.msrb.mxu1 %v6747_v44  ;;  %v9446_v14 = vadd.f32 %v4143_v0, %v4141_v8  ;;  %v6816_v44 = vld [vmem:[#allocation2 + $0xbf8] sm:$0xf0] }
 0x51f   :  { %7208 = vmatmul.msk.bf16.vlgmr.msrb.gmra.mxu2 %vm1988_vm4, %v9415_v35  ;;  %7209 = vmatmul.msk.bf16.vlgmr.msrb.gmra.mxu0 %vm1988_vm4, %v9415_v35  ;;  %v6752_v0 = vld [vmem:[#allocation2 + $0xb78] sm:$0xf0] }
 0x520   :  { %5049 = vmatpush.bf16.msra.mxu2 %v6975_v30  ;;  %5075 = vmatpush.bf16.msra.mxu0 %v6979_v31  ;;  %v7657_v30 = vld [vmem:[#allocation2 + $0xddc] sm:$0xf]  ;;  %v7597_v31 = vld [vmem:[#allocation2 + $0xbf4] sm:$0xf0]  ;;  %v6755_v8 = vor.u32 %v7577_v22, %v6752_v0  ;;  %v5136_v0 = vld [vmem:[%s9548_s5 + $0x28] sm:$0xff] }
 0x521   :  { %5031 = vmatmul.bf16.vlgmr.msrb.gmra.mxu1 %v9411_v4  ;;  %v7075_v45 = vor.u32 %v7657_v30, %v7072_v36 }
 0x522   :  { %5064 = vmatpush.bf16.msra.mxu3 %v7167_v39  ;;  %5089 = vmatpush.bf16.msra.mxu1 %v7203_v48  ;;  %v6814_v39 = vld [vmem:[#allocation2 + $0xbd8] sm:$0xf]  ;;  %v7040_v48 = vld [vmem:[#allocation2 + $0xdb8] sm:$0xf0] }
 0x523   :  { %v6815_v46 = vor.u32 %v7597_v31, %v6814_v39 }
 0x524   :  { %5050 = vmatpush.bf16.msra.mxu2 %v6943_v50  ;;  %5076 = vmatpush.bf16.msra.mxu0 %v6947_v56  ;;  %v6819_v50 = vor.u32 %v7593_v43, %v6816_v44  ;;  %v7043_v56 = vor.u32 %v7649_v47, %v7040_v48  ;;  %v4078_v59 = vpop.f32.mrf.mxu0 }
 0x526   :  { %5065 = vmatpush.bf16.msra.mxu3 %v7135_v55  ;;  %5090 = vmatpush.bf16.msra.mxu1 %v7171_v1  ;;  %v6784_v55 = vld [vmem:[#allocation2 + $0xbb8] sm:$0xf0]  ;;  %v4065_v1 = vpop.f32.mrf.mxu1 }
 0x527   :  { %v6787_v3 = vor.u32 %v7585_v54, %v6784_v55  ;;  %v5143_v55 = vld [vmem:[%s9548_s5 + $0x60] sm:$0xff] }
 0x528   :  { %5051 = vmatpush.bf16.msra.mxu2 %v6911_v5  ;;  %5077 = vmatpush.bf16.msra.mxu0 %v6915_v10  ;;  %v4039_v2 = vpop.f32.mrf.mxu3  ;;  %v4079_v5 = vadd.f32 %v4078_v59, %v4065_v1  ;;  %v5141_v59 = vld [vmem:[%s9548_s5 + $0x50] sm:$0xff] }
 0x52a   :  { %5066 = vmatpush.bf16.msra.mxu3 %v7103_v9  ;;  %5091 = vmatpush.bf16.msra.mxu1 %v7139_v15  ;;  %v4052_v6 = vpop.f32.mrf.mxu2  ;;  %v4151_v21 = vrot.slane %v4079_v5, 5 }
 0x52b   :  { %v4053_v9 = vadd.f32 %v4052_v6, %v4039_v2  ;;  %v5137_v2 = vld [vmem:[%s9548_s5 + $0x30] sm:$0xff] }
 0x52c   :  { %5052 = vmatpush.bf16.msra.mxu2 %v6879_v17  ;;  %5078 = vmatpush.bf16.msra.mxu0 %v6883_v24  ;;  %v4080_v11 = vpop.f32.mrf.mxu0 }
 0x52d   :  { %v4147_v10 = vrot.slane %v4053_v9, 4  ;;  %v5131_v11 = vld [vmem:[%s9548_s5] sm:$0xff] }
 0x52e   :  { %5067 = vmatpush.bf16.msra.mxu3 %v7071_v19  ;;  %5092 = vmatpush.bf16.msra.mxu1 %v7107_v33  ;;  %v4067_v13 = vpop.f32.mrf.mxu1 }
 0x52f   :  { %v4149_v12 = vadd.f32 %v4147_v10, %v9446_v14  ;;  %v5132_v10 = vld [vmem:[%s9548_s5 + $0x8] sm:$0xff] }
 0x530   :  { %5053 = vmatpush.bf16.msra.mxu2 %v6847_v34  ;;  %5079 = vmatpush.bf16.msra.mxu0 %v6851_v16  ;;  %v4041_v38 = vpop.f32.mrf.mxu3  ;;  %v5174_v13 = vld [vmem:[%s9550_s7 + $0x28] sm:$0xff] }
 0x531   :  { %v4153_v7 = vadd.f32 %v4151_v21, %v4149_v12  ;;  %v5176_v12 = vld [vmem:[%s9550_s7 + $0x38] sm:$0xff]  ;;  %v5175_v38 = vld [vmem:[%s9550_s7 + $0x30] sm:$0xff] }
 0x532   :  { %5068 = vmatpush.bf16.msra.mxu3 %v7039_v37  ;;  %5093 = vmatpush.bf16.msra.mxu1 %v7075_v45  ;;  %v4054_v15 = vpop.f32.mrf.mxu2 }
 0x533   :  { %v5173_v15 = vld [vmem:[%s9550_s7 + $0x20] sm:$0xff] }
 0x534   :  { %5054 = vmatpush.bf16.msra.mxu2 %v6815_v46  ;;  %5080 = vmatpush.bf16.msra.mxu0 %v6819_v50  ;;  %v5145_v50 = vld [vmem:[%s9548_s5 + $0x70] sm:$0xff] }
 0x536   :  { %5069 = vmatpush.bf16.msra.mxu3 %v7007_v49  ;;  %5094 = vmatpush.bf16.msra.mxu1 %v7043_v56  ;;  %v5142_v56 = vld [vmem:[%s9548_s5 + $0x58] sm:$0xff] }
 0x538   :  { %5055 = vmatpush.bf16.msra.mxu2 %v6783_v58  ;;  %5081 = vmatpush.bf16.msra.mxu0 %v6787_v3 }
 0x539   :  { %7210 = vmatmul.msk.bf16.vlgmr.msra.gmra.mxu3 %vm1988_vm4, %v9415_v35 }
 0x53a   :  { %5095 = vmatpush.bf16.msra.mxu1 %v7011_v27  ;;  %v5135_v27 = vld [vmem:[%s9548_s5 + $0x20] sm:$0xff] }
 0x53c   :  { %5056 = vmatpush.bf16.msra.mxu2 %v6751_v57  ;;  %5082 = vmatpush.bf16.msra.mxu0 %v6755_v8  ;;  %v5134_v57 = vld [vmem:[%s9548_s5 + $0x18] sm:$0xff]  ;;  %v5133_v8 = vld [vmem:[%s9548_s5 + $0x10] sm:$0xff] }
 0x53d   :  { %7211 = vmatmul.msk.bf16.vlgmr.msra.gmra.mxu1 %vm1988_vm4, %v9415_v35 }
 0x53f   :  { %5057 = vmatmul.bf16.vlgmr.msra.gmra.mxu2 %v9411_v4  ;;  %5083 = vmatmul.bf16.vlgmr.msra.gmra.mxu0 %v9411_v4 }
 0x540   :  { %5190 = vmatpush.msrb.mxu2 %v5176_v12 }
 0x542   :  { %v4130_v23 = vpop.f32.mrf.mxu1  ;;  %5191 = vmatpush.msrb.mxu2 %v5175_v38 }
 0x544   :  { %v4104_v17 = vpop.f32.mrf.mxu3  ;;  %v4117_v40 = vpop.f32.mrf.mxu0  ;;  %5192 = vmatpush.msrb.mxu2 %v5174_v13 }
 0x545   :  { %v4131_v18 = vadd.f32 %v4130_v23, %v4117_v40 }
 0x546   :  { %5193 = vmatpush.msrb.mxu2 %v5173_v15 }
 0x547   :  { %v4159_v28 = vrot.slane %v4131_v18, 7  ;;  %v5171_v18 = vld [vmem:[%s9550_s7 + $0x10] sm:$0xff] }
 0x54a   :  { %v4091_v19 = vpop.f32.mrf.mxu2  ;;  %v4132_v25 = vpop.f32.mrf.mxu1 }
 0x54b   :  { %v4105_v24 = vadd.f32 %v4104_v17, %v4091_v19  ;;  %v5172_v17 = vld [vmem:[%s9550_s7 + $0x18] sm:$0xff] }
 0x54c   :  { %v4106_v26 = vpop.f32.mrf.mxu3  ;;  %v4119_v29 = vpop.f32.mrf.mxu0  ;;  %5194 = vmatpush.msrb.mxu2 %v5172_v17 }
 0x54d   :  { %v4155_v14 = vrot.slane %v4105_v24, 6 }
 0x54e   :  { %5195 = vmatpush.msrb.mxu2 %v5171_v18 }
 0x54f   :  { %v4157_v35 = vadd.f32 %v4155_v14, %v4153_v7 }
 0x551   :  { %v4161_v32 = vadd.f32 %v4159_v28, %v4157_v35 }
 0x552   :  { %v4093_v20 = vpop.f32.mrf.mxu2 }
 0x553   :  { %v9456_v33 = vadd.f32 %v4161_v32, %v9429_v63  ;;  %v5146_v63 = vld [vmem:[%s9548_s5 + $0x78] sm:$0xff] }
 0x554   :  { %5148 = vmatpush.msrb.mxu3 %v5146_v63  ;;  %v5169_v63 = vld [vmem:[%s9550_s7] sm:$0xff] }
 0x556   :  { %5149 = vmatpush.msrb.mxu3 %v5145_v50 }
 0x558   :  { %5150 = vmatpush.msrb.mxu3 %v5144_v52  ;;  %v5177_v52 = vld [vmem:[%s9551_s8] sm:$0x1] }
 0x55a   :  { %5151 = vmatpush.msrb.mxu3 %v5143_v55 }
 0x55c   :  { %5152 = vmatpush.msrb.mxu3 %v5142_v56 }
 0x55e   :  { %5153 = vmatpush.msrb.mxu3 %v5141_v59 }
 0x560   :  { %v4941_v34 = vpop.f32.mrf.mxu0  ;;  %5154 = vmatpush.msrb.mxu3 %v5140_v60 }
 0x562   :  { %v4928_v30 = vpop.f32.mrf.mxu1  ;;  %5155 = vmatpush.msrb.mxu3 %v5139_v61 }
 0x563   :  { %v4942_v36 = vadd.f32 %v4941_v34, %v4928_v30 }
 0x564   :  { %v4902_v4 = vpop.f32.mrf.mxu3  ;;  %5156 = vmatpush.msrb.mxu3 %v5138_v62 }
 0x565   :  { %v5102_v39 = vrot.slane %v4942_v36, 1 }
 0x566   :  { %v4915_v37 = vpop.f32.mrf.mxu2  ;;  %5157 = vmatpush.msrb.mxu3 %v5137_v2 }
 0x567   :  { %v4916_v16 = vadd.f32 %v4915_v37, %v4902_v4 }
 0x568   :  { %v4943_v41 = vpop.f32.mrf.mxu0  ;;  %5158 = vmatpush.msrb.mxu3 %v5136_v0 }
 0x569   :  { %v9458_v31 = vadd.f32 %v5102_v39, %v4916_v16 }
 0x56a   :  { %v4930_v43 = vpop.f32.mrf.mxu1  ;;  %5159 = vmatpush.msrb.mxu3 %v5135_v27 }
 0x56c   :  { %v4904_v42 = vpop.f32.mrf.mxu3  ;;  %5160 = vmatpush.msrb.mxu3 %v5134_v57 }
 0x56e   :  { %v4917_v44 = vpop.f32.mrf.mxu2  ;;  %5161 = vmatpush.msrb.mxu3 %v5133_v8 }
 0x570   :  { %5162 = vmatpush.msrb.mxu3 %v5132_v10 }
 0x572   :  { %5163 = vmatpush.msrb.mxu3 %v5131_v11 }
 0x57e   :  { %v4993_v46 = vpop.f32.mrf.mxu1 }
 0x580   :  { %v4967_v45 = vpop.f32.mrf.mxu3  ;;  %v4980_v47 = vpop.f32.mrf.mxu0 }
 0x581   :  { %v4994_v40 = vadd.f32 %v4993_v46, %v4980_v47 }
 0x583   :  { %v5110_v26 = vrot.slane %v4994_v40, 3 }
 0x586   :  { %v4954_v48 = vpop.f32.mrf.mxu2  ;;  %v4995_v51 = vpop.f32.mrf.mxu1 }
 0x587   :  { %v4968_v7 = vadd.f32 %v4967_v45, %v4954_v48  ;;  %v5170_v48 = vld [vmem:[%s9550_s7 + $0x8] sm:$0xff]  ;;  %s5211_s7 = sshll.u32 %s9552_s9, 4  ;;  %s5212_s7 = int_to_ptr.hbm [resolvable:$true] %s5211_s7 }
 0x588   :  { %v4969_v49 = vpop.f32.mrf.mxu3  ;;  %v4982_v54 = vpop.f32.mrf.mxu0  ;;  %5196 = vmatpush.msrb.mxu2 %v5170_v48 }
 0x589   :  { %v5106_v23 = vrot.slane %v4968_v7, 2  ;;  %v5147_v49 = vld [vmem:[%s9549_s6] sm:$0x1] }
 0x58a   :  { %5197 = vmatpush.msrb.mxu2 %v5169_v63 }
 0x58b   :  { %v5108_v24 = vadd.f32 %v5106_v23, %v9458_v31 }
 0x58d   :  { %v5112_v32 = vadd.f32 %v5110_v26, %v5108_v24 }
 0x58e   :  { %v4956_v58 = vpop.f32.mrf.mxu2 }
 0x59c   :  { %v5045_v3 = vpop.f32.mrf.mxu0 }
 0x59e   :  { %v5032_v22 = vpop.f32.mrf.mxu1 }
 0x59f   :  { %v5046_v29 = vadd.f32 %v5045_v3, %v5032_v22 }
 0x5a0   :  { %v5006_v53 = vpop.f32.mrf.mxu3 }
 0x5a1   :  { %v5118_v34 = vrot.slane %v5046_v29, 5 }
 0x5a2   :  { %v5019_v1 = vpop.f32.mrf.mxu2 }
 0x5a3   :  { %v5020_v19 = vadd.f32 %v5019_v1, %v5006_v53 }
 0x5a4   :  { %v5047_v5 = vpop.f32.mrf.mxu0 }
 0x5a5   :  { %v5114_v28 = vrot.slane %v5020_v19, 4 }
 0x5a6   :  { %v5034_v9 = vpop.f32.mrf.mxu1 }
 0x5a7   :  { %v5116_v20 = vadd.f32 %v5114_v28, %v5112_v32 }
 0x5a8   :  { %v5008_v6 = vpop.f32.mrf.mxu3 }
 0x5a9   :  { %v5120_v39 = vadd.f32 %v5118_v34, %v5116_v20 }
 0x5aa   :  { %v5021_v21 = vpop.f32.mrf.mxu2 }
 0x5ba   :  { %v5097_v14 = vpop.f32.mrf.mxu1 }
 0x5bc   :  { %v5071_v25 = vpop.f32.mrf.mxu3  ;;  %v5084_v35 = vpop.f32.mrf.mxu0 }
 0x5bd   :  { %v5098_v4 = vadd.f32 %v5097_v14, %v5084_v35 }
 0x5bf   :  { %v5126_v41 = vrot.slane %v5098_v4, 7 }
 0x5c2   :  { %v5058_v30 = vpop.f32.mrf.mxu2  ;;  %v5099_v16 = vpop.f32.mrf.mxu1 }
 0x5c3   :  { %v5072_v36 = vadd.f32 %v5071_v25, %v5058_v30 }
 0x5c4   :  { %v5073_v37 = vpop.f32.mrf.mxu3  ;;  %v5086_v43 = vpop.f32.mrf.mxu0 }
 0x5c5   :  { %v5122_v42 = vrot.slane %v5072_v36, 6 }
 0x5c7   :  { %v5124_v44 = vadd.f32 %v5122_v42, %v5120_v39 }
 0x5c9   :  { %v5128_v31 = vadd.f32 %v5126_v41, %v5124_v44 }
 0x5ca   :  { %v5060_v45 = vpop.f32.mrf.mxu2 }
 0x5cb   :  { %v5129_v46 = vadd.f32 %v5128_v31, %v9456_v33 }
 0x5cd   :  { %v5130_v47 = vmax.f32 %v5129_v46, 0.0 }
 0x5cf   :  { %5164 = vmatmul.f32.vlgmr.msrb.gmra.mxu3 %v5130_v47 }
 0x652   :  { %v5165_v50 = vpop.f32.mrf.mxu3 }
 0x653   :  { %v5166_v51 = vadd.f32 %v5165_v50, %v5147_v49 }
 0x655   :  { %v5168_v33 = vmax.f32 %v5166_v51, 0.0 }
 0x657   :  { %7212 = vmatmul.msk.f32.vlgmr.msrb.gmra.mxu2 %vm5178_vm5, %v5168_v33 }
 0x6da   :  { %v5199_v54 = vpop.f32.mrf.mxu2 }
 0x6db   :  { %v5200_v55 = vadd.f32 %v5199_v54, %v5177_v52 }
 0x6dd   :  { %5203 = vst.msk [vmem:[#allocation4] sm:$0x1] %vm5202_vm6, %v5200_v55 }
 0x6de   :  { %5214 = dma.vmem_to_hbm [thread:$0]  %s5210_s4, 16, %s5212_s7, [#allocation5]  }
 0x6df   :  { %7721 = dma.done.wait [#allocation5], 16  }
 0x6e0   :  { %7722 = vsyncadd [#allocation5], 4294967280 }
 0x6e1   :  { %5219 = vsyncpa [#allocation5], 1 }
 0x6e2   :  { %5220 = vsyncmov [#allocation3] }
 0x6e5   :  { %s5221_s6 = vpop.sfrf %5220 }
 0x6e6   :  { %p7213_p0 = scmp.ne.s32.totalorder %s5221_s6, 0 }
 0x6e8   :  { %5225 = shalt.err (%p7213_p0)  }

</bundles_post_ra>
